<compile_context>
chip_gen: v5e
topology: v5e:2x2
jax: 0.10.0
libtpu: 0.0.40
codegen_flags: <defaults>
</compile_context>

<pallas_src>
import functools

import jax
import jax.numpy as jnp
from jax.experimental import pallas as pl
from jax.experimental.pallas import tpu as pltpu


# --------------------------------------------------------------------------
# Shared math helpers (used by both the kernel and the pure-JAX reference).
# --------------------------------------------------------------------------
def _activation(x, kind):
    if kind is None or kind == "none":
        return x
    if kind == "gelu":
        return jax.nn.gelu(x, approximate=True)
    if kind == "relu":
        return jnp.maximum(x, 0.0)
    if kind == "leaky_relu":
        return jnp.where(x >= 0.0, x, 0.01 * x)
    if kind == "squared_relu":
        r = jnp.maximum(x, 0.0)
        return r * r
    raise ValueError(f"unknown activation: {kind}")


def _hash_bits(seed_u32, rows_u32, cols_u32):
    """Stateless per-element uint32 hash of (seed, row, col) -> uniform bits."""
    h = seed_u32 + rows_u32 * jnp.uint32(0x9E3779B1) + cols_u32 * jnp.uint32(0x85EBCA77)
    # lowbias32-style finalizer
    h = h ^ (h >> 16)
    h = h * jnp.uint32(0x7FEB352D)
    h = h ^ (h >> 15)
    h = h * jnp.uint32(0x846CA68B)
    h = h ^ (h >> 16)
    return h


def _drop_threshold(p):
    return jnp.uint32(min(int(round(p * 4294967296.0)), 4294967295))


# --------------------------------------------------------------------------
# Kernel
# --------------------------------------------------------------------------
def _fused_dropout_bias_kernel(seed_ref, x_ref, *refs, block_m, p, scale,
                               activation, use_bias, training):
    # seed_ref: SMEM (1,) int32  -- base RNG seed (scalar-prefetched)
    # x_ref:    VMEM (block_m, N)
    # bias_ref: VMEM (1, N)      -- only present if use_bias
    # o_ref:    VMEM (block_m, N)
    if use_bias:
        bias_ref, o_ref = refs
    else:
        (o_ref,) = refs

    x = x_ref[...].astype(jnp.float32)
    if use_bias:
        x = x + bias_ref[...].astype(jnp.float32)  # broadcast (1, N) over rows

    y = _activation(x, activation) * scale

    if training and p > 0.0:
        i = pl.program_id(0)
        rows = (jax.lax.broadcasted_iota(jnp.int32, y.shape, 0)
                + i * block_m).astype(jnp.uint32)
        cols = jax.lax.broadcasted_iota(jnp.int32, y.shape, 1).astype(jnp.uint32)
        seed_u32 = seed_ref[0].astype(jnp.uint32)
        bits = _hash_bits(seed_u32, rows, cols)
        keep = bits >= _drop_threshold(p)           # P(keep) = 1 - p, pure int compare
        y = jnp.where(keep, y * (1.0 / (1.0 - p)), 0.0)

    o_ref[...] = y.astype(o_ref.dtype)


# --------------------------------------------------------------------------
# Wrapper
# --------------------------------------------------------------------------
def _choose_block_m(M, N, target_bytes=2 * 1024 * 1024):
    """~2 MiB f32 tiles; multiple of 8 sublanes, clamped to [8, 1024] and M."""
    rows = max(8, min(1024, target_bytes // (4 * max(N, 1))))
    rows = (rows // 8) * 8
    return M if rows >= M else rows


def fused_dropout_bias(x, bias=None, *, p, activation=None, scale=1.0,
                       training=True, seed=0, block_m=None):
    """Forward of FusedDropoutBias.  bias may be None."""
    orig_shape = x.shape
    N = orig_shape[-1]
    x2d = x.reshape(-1, N)
    M = x2d.shape[0]

    assert 0.0 <= p < 1.0, f"p={p} must be in [0, 1)"

    use_bias = bias is not None
    if use_bias:
        assert bias.shape == (N,)
        bias2d = bias.reshape(1, N).astype(x.dtype)

    if block_m is None:
        block_m = _choose_block_m(M, N)
    else:
        block_m = min(int(block_m), M)
        if block_m < M:
            assert block_m % 8 == 0, "block_m must be a multiple of 8"

    grid = (pl.cdiv(M, block_m),)
    seeds = jnp.asarray([seed], dtype=jnp.int32)

    kernel = functools.partial(
        _fused_dropout_bias_kernel,
        block_m=block_m, p=float(p), scale=float(scale),
        activation=activation, use_bias=use_bias, training=training,
    )

    # Lane-dense blocks: full feature dim per block, 1-D grid over rows.
    in_specs = [pl.BlockSpec((block_m, N), lambda i, s: (i, 0))]
    args = [x2d]
    if use_bias:
        # Constant block index -> bias is DMA'd once, not per step.
        in_specs.append(pl.BlockSpec((1, N), lambda i, s: (0, 0)))
        args.append(bias2d)

    out2d = pl.pallas_call(
        kernel,
        out_shape=jax.ShapeDtypeStruct((M, N), x.dtype),
        grid_spec=pltpu.PrefetchScalarGridSpec(
            num_scalar_prefetch=1,
            grid=grid,
            in_specs=in_specs,
            out_specs=pl.BlockSpec((block_m, N), lambda i, s: (i, 0)),
        ),
        compiler_params=pltpu.CompilerParams(
            dimension_semantics=("parallel",),
            vmem_limit_bytes=32 * 1024 * 1024,  # safe on v5e/v6e/v7x
        ),
    )(seeds, *args)

    return out2d.reshape(orig_shape)


# --------------------------------------------------------------------------
# Pure-JAX reference (bit-identical mask: same hash over global indices).
# --------------------------------------------------------------------------
def _reference(x, bias, *, p, activation, scale, training, seed):
    N = x.shape[-1]
    x2d = x.reshape(-1, N).astype(jnp.float32)
    if bias is not None:
        x2d = x2d + bias.reshape(1, N).astype(jnp.float32)
    y = _activation(x2d, activation) * scale
    if training and p > 0.0:
        M = x2d.shape[0]
        rows = jax.lax.broadcasted_iota(jnp.int32, (M, N), 0).astype(jnp.uint32)
        cols = jax.lax.broadcasted_iota(jnp.int32, (M, N), 1).astype(jnp.uint32)
        bits = _hash_bits(jnp.uint32(seed), rows, cols)
        keep = bits >= _drop_threshold(p)
        y = jnp.where(keep, y * (1.0 / (1.0 - p)), 0.0)
    return y.astype(x.dtype).reshape(x.shape)


if __name__ == "__main__":
    key = jax.random.PRNGKey(0)
    kx, kb = jax.random.split(key)

    # Small shape consistent with the module's fused path (hidden > 512).
    batch, seq, hidden = 2, 100, 768
    x = jax.random.normal(kx, (batch, seq, hidden), dtype=jnp.float32)
    bias = 0.1 * jax.random.normal(kb, (hidden,), dtype=jnp.float32)

    p, scale, seed = 0.1, 1.0, 1234

    # 1) training, gelu + bias, auto tiling
    out = fused_dropout_bias(x, bias, p=p, activation="gelu", scale=scale,
                             training=True, seed=seed)
    jax.block_until_ready(out)
    assert out.shape == x.shape and out.dtype == x.dtype
    ref = _reference(x, bias, p=p, activation="gelu", scale=scale,
                     training=True, seed=seed)
    assert jnp.allclose(out, ref, atol=1e-5, rtol=1e-4)

    # drop-rate sanity (loose)
    frac_zero = float(jnp.mean((out == 0.0).astype(jnp.float32)))
    assert abs(frac_zero - p) < 0.03, f"drop rate {frac_zero} vs p={p}"

    # 2) same config, explicit small tile (grid of 4 with a partial last
    #    block); mask is tiling-independent so the result must be identical.
    out_small_tile = fused_dropout_bias(x, bias, p=p, activation="gelu",
                                        scale=scale, training=True, seed=seed,
                                        block_m=64)
    jax.block_until_ready(out_small_tile)
    assert jnp.allclose(out_small_tile, ref, atol=1e-5, rtol=1e-4)

    # 3) eval mode (no dropout)
    out_eval = fused_dropout_bias(x, bias, p=p, activation="gelu", scale=scale,
                                  training=False)
    jax.block_until_ready(out_eval)
    ref_eval = _reference(x, bias, p=p, activation="gelu", scale=scale,
                          training=False, seed=seed)
    assert jnp.allclose(out_eval, ref_eval, atol=1e-5, rtol=1e-4)

    # 4) no bias, relu, different p
    out_nb = fused_dropout_bias(x, None, p=0.25, activation="relu", scale=2.0,
                                training=True, seed=seed)
    jax.block_until_ready(out_nb)
    ref_nb = _reference(x, None, p=0.25, activation="relu", scale=2.0,
                        training=True, seed=seed)
    assert jnp.allclose(out_nb, ref_nb, atol=1e-5, rtol=1e-4)

    print("KERNEL_OK")
</pallas_src>

<mosaic_0001>
module attributes {stable_mosaic.version = 11 : i64} {
  func.func @_fused_dropout_bias_kernel(%arg0: i32, %arg1: memref<1xi32, #tpu.memory_space<smem>>, %arg2: memref<200x768xf32, #tpu.memory_space<vmem>>, %arg3: memref<1x768xf32, #tpu.memory_space<vmem>>, %arg4: memref<200x768xf32, #tpu.memory_space<vmem>>) attributes {dimension_semantics = [#tpu.dimension_semantics<parallel>], iteration_bounds = array<i64: 1>, scalar_prefetch = 1 : i64, scratch_operands = 0 : i64, tpu.core_type = #tpu.core_type<tc>, window_params = [{transform_indices = @transform_0, window_bounds = array<i64: 200, 768>}, {pipeline_mode = #tpu.pipeline_mode<synchronous>, transform_indices = @transform_1, window_bounds = array<i64: 1, 768>}, {transform_indices = @transform_2, window_bounds = array<i64: 200, 768>}]} {
    %c0 = arith.constant 0 : index
    %c0_0 = arith.constant 0 : index
    %0 = vector.load %arg2[%c0, %c0_0] : memref<200x768xf32, #tpu.memory_space<vmem>>, vector<200x768xf32>
    %c0_1 = arith.constant 0 : index
    %c0_2 = arith.constant 0 : index
    %1 = vector.load %arg3[%c0_1, %c0_2] : memref<1x768xf32, #tpu.memory_space<vmem>>, vector<1x768xf32>
    %2 = vector.broadcast %1 : vector<1x768xf32> to vector<200x768xf32>
    %3 = arith.addf %0, %2 : vector<200x768xf32>
    %4 = arith.mulf %3, %3 : vector<200x768xf32>
    %5 = arith.mulf %3, %4 : vector<200x768xf32>
    %cst = arith.constant 4.471500e-02 : f32
    %6 = vector.broadcast %cst : f32 to vector<200x768xf32>
    %7 = arith.mulf %6, %5 : vector<200x768xf32>
    %8 = arith.addf %3, %7 : vector<200x768xf32>
    %cst_3 = arith.constant 0.797884583 : f32
    %9 = vector.broadcast %cst_3 : f32 to vector<200x768xf32>
    %10 = arith.mulf %9, %8 : vector<200x768xf32>
    %11 = math.tanh %10 : vector<200x768xf32>
    %cst_4 = arith.constant 1.000000e+00 : f32
    %12 = vector.broadcast %cst_4 : f32 to vector<200x768xf32>
    %13 = arith.addf %12, %11 : vector<200x768xf32>
    %cst_5 = arith.constant 5.000000e-01 : f32
    %14 = vector.broadcast %cst_5 : f32 to vector<200x768xf32>
    %15 = arith.mulf %14, %13 : vector<200x768xf32>
    %16 = arith.mulf %3, %15 : vector<200x768xf32>
    %cst_6 = arith.constant 1.000000e+00 : f32
    %17 = vector.broadcast %cst_6 : f32 to vector<200x768xf32>
    %18 = arith.mulf %16, %17 : vector<200x768xf32>
    %19 = tpu.iota {dimensions = array<i32: 0>} : vector<200x768xi32>
    %c200_i32 = arith.constant 200 : i32
    %20 = arith.muli %arg0, %c200_i32 : i32
    %21 = vector.broadcast %20 : i32 to vector<200x768xi32>
    %22 = arith.addi %19, %21 : vector<200x768xi32>
    %23 = tpu.iota {dimensions = array<i32: 1>} : vector<200x768xi32>
    %c0_7 = arith.constant 0 : index
    %24 = memref.load %arg1[%c0_7] : memref<1xi32, #tpu.memory_space<smem>>
    %c-1640531535_i32 = arith.constant -1640531535 : i32
    %25 = vector.broadcast %c-1640531535_i32 : i32 to vector<200x768xi32>
    %26 = arith.muli %22, %25 : vector<200x768xi32>
    %27 = vector.broadcast %24 : i32 to vector<200x768xi32>
    %28 = arith.addi %27, %26 : vector<200x768xi32>
    %c-2048144777_i32 = arith.constant -2048144777 : i32
    %29 = vector.broadcast %c-2048144777_i32 : i32 to vector<200x768xi32>
    %30 = arith.muli %23, %29 : vector<200x768xi32>
    %31 = arith.addi %28, %30 : vector<200x768xi32>
    %c16_i32 = arith.constant 16 : i32
    %32 = vector.broadcast %c16_i32 : i32 to vector<200x768xi32>
    %33 = arith.shrui %31, %32 : vector<200x768xi32>
    %34 = arith.xori %31, %33 : vector<200x768xi32>
    %c2146121005_i32 = arith.constant 2146121005 : i32
    %35 = vector.broadcast %c2146121005_i32 : i32 to vector<200x768xi32>
    %36 = arith.muli %34, %35 : vector<200x768xi32>
    %c15_i32 = arith.constant 15 : i32
    %37 = vector.broadcast %c15_i32 : i32 to vector<200x768xi32>
    %38 = arith.shrui %36, %37 : vector<200x768xi32>
    %39 = arith.xori %36, %38 : vector<200x768xi32>
    %c-2073254261_i32 = arith.constant -2073254261 : i32
    %40 = vector.broadcast %c-2073254261_i32 : i32 to vector<200x768xi32>
    %41 = arith.muli %39, %40 : vector<200x768xi32>
    %c16_i32_8 = arith.constant 16 : i32
    %42 = vector.broadcast %c16_i32_8 : i32 to vector<200x768xi32>
    %43 = arith.shrui %41, %42 : vector<200x768xi32>
    %44 = arith.xori %41, %43 : vector<200x768xi32>
    %c429496730_i32 = arith.constant 429496730 : i32
    %45 = vector.broadcast %c429496730_i32 : i32 to vector<200x768xi32>
    %46 = arith.cmpi uge, %44, %45 : vector<200x768xi32>
    %cst_9 = arith.constant 1.11111116 : f32
    %47 = vector.broadcast %cst_9 : f32 to vector<200x768xf32>
    %48 = arith.mulf %18, %47 : vector<200x768xf32>
    %cst_10 = arith.constant 0.000000e+00 : f32
    %49 = vector.broadcast %cst_10 : f32 to vector<200x768xf32>
    %50 = arith.select %46, %48, %49 : vector<200x768xi1>, vector<200x768xf32>
    %c0_11 = arith.constant 0 : index
    %c0_12 = arith.constant 0 : index
    %51 = vector.load %arg4[%c0_11, %c0_12] : memref<200x768xf32, #tpu.memory_space<vmem>>, vector<200x768xf32>
    tpu.vector_store %arg4[%c0_11, %c0_12], %50 {strides = array<i32>} : memref<200x768xf32, #tpu.memory_space<vmem>>, vector<200x768xf32>,
    return
  }
  func.func @transform_0(%arg0: i32, %arg1: memref<1xi32, #tpu.memory_space<smem>>) -> (i32, i32) {
    %c0_i32 = arith.constant 0 : i32
    %c0_i32_0 = arith.constant 0 : i32
    return %arg0, %c0_i32 : i32, i32
  }
  func.func @transform_1(%arg0: i32, %arg1: memref<1xi32, #tpu.memory_space<smem>>) -> (i32, i32) {
    %c0_i32 = arith.constant 0 : i32
    %c0_i32_0 = arith.constant 0 : i32
    %c0_i32_1 = arith.constant 0 : i32
    return %c0_i32, %c0_i32_0 : i32, i32
  }
  func.func @transform_2(%arg0: i32, %arg1: memref<1xi32, #tpu.memory_space<smem>>) -> (i32, i32) {
    %c0_i32 = arith.constant 0 : i32
    %c0_i32_0 = arith.constant 0 : i32
    return %arg0, %c0_i32 : i32, i32
  }
}

</mosaic_0001>

<bundles_post_ra>
// kernel: tpu_custom_call.1
= control target key start
LH: loop header
LB: loop body
LE: loop exit
PB: predicated region body
PF: predicated region fallthrough
CT: control target
= control target key end

     0   :  { %9 = vsyncpa [#allocation5], 0  ;;  %s6718_s0 = inlined_call_operand.<no memory space> [shape: s32[1], index: 0, kind: input, shape index: {}]   ;;  %s6719_s1 = inlined_call_operand.hbm [shape: f32[200,768], index: 1, kind: input, shape index: {}]   ;;  %s6720_s2 = inlined_call_operand.hbm [shape: f32[1,768], index: 2, kind: input, shape index: {}]   ;;  %s6721_s3 = inlined_call_operand.hbm [shape: f32[200,768], index: 3, kind: output, shape index: {}]  }
   0x1   :  { %10 = vsyncpa [#allocation8], 0 }
   0x2   :  { %11 = vsyncpa [#allocation6], 0  ;;  %s16_s14 = sshll.u32 %s6719_s1, 4  ;;  %s4629_s15 = smov [#allocation4]   ;;  %s17_s14 = int_to_ptr.hbm [resolvable:$true] %s16_s14 }
   0x3   :  { %s18_s16 = sshll.u32 %s4629_s15, 4  ;;  %s30_s19 = sshll.u32 %s6720_s2, 4  ;;  %s19_s16 = int_to_ptr.vmem [resolvable:$true] %s18_s16  ;;  %s31_s19 = int_to_ptr.hbm [resolvable:$true] %s30_s19 }
   0x4   :  { %s4630_s20 = smov 768   ;;  %s4631_s21 = smov 48  }
   0x5   :  { %24 = dma.hbm_to_vmem [thread:$0]  %s17_s14, 19200, %s19_s16, [#allocation5], %s4630_s20, %s4630_s20, %s4631_s21  }
   0x6   :  { %s4632_s22 = smov [#allocation7]  }
   0x7   :  { %s32_s23 = sshll.u32 %s4632_s22, 4  ;;  %s33_s23 = int_to_ptr.vmem [resolvable:$true] %s32_s23 }
   0x8   :  { %35 = dma.hbm_to_vmem [thread:$0]  %s31_s19, 96, %s33_s23, [#allocation8]  }
   0x9   :  { %4623 = dma.done.wait [#allocation5], 19200  }
   0xa   :  { %4624 = vsyncadd [#allocation5], 4294948096 }
   0xb   :  { %4625 = dma.done.wait [#allocation8], 96  }
   0xc   :  { %4626 = vsyncadd [#allocation8], 4294967200  ;;  %v1708_v0 = vlaneseq  ;;  %v4668_v3 = vstv %s6718_s0  ;;  %v44_v15 = vld [vmem:[#allocation4] sm:$0xff]  ;;  %v4687_v16 = vld [vmem:[#allocation7] sm:$0x3f]  ;;  %s4633_s0 = smov [#allocation9]  }
   0xd   :  { %v45_v17 = vld [vmem:[#allocation4 + $0x8] sm:$0xff]  ;;  %v4692_v19 = vperm.slane %v4687_v16, 0  ;;  %v4697_v21 = vperm.slane %v4687_v16, 1  ;;  %v46_v23 = vld [vmem:[#allocation4 + $0x10] sm:$0xff]  ;;  %v47_v24 = vld [vmem:[#allocation4 + $0x18] sm:$0xff]  ;;  %v4702_v25 = vperm.slane %v4687_v16, 2 }
   0xe   :  { %v4663_v1 = vshrl.u32 %v1708_v0, 7  ;;  %v1762_v2 = vand.u32 127, %v1708_v0  ;;  %v4707_v27 = vperm.slane %v4687_v16, 3  ;;  %v50_v53 = vld [vmem:[#allocation4 + $0x30] sm:$0xff]  ;;  %s4080_s24 = sshll.u32 %s4633_s0, 4  ;;  %s4082_s27 = sshll.u32 %s6721_s3, 4  ;;  %s4081_s24 = int_to_ptr.vmem [resolvable:$true] %s4080_s24  ;;  %s4083_s27 = int_to_ptr.hbm [resolvable:$true] %s4082_s27 }
   0xf   :  { %v4712_v29 = vadd.f32 %v4692_v19, %v44_v15  ;;  %v4715_v31 = vadd.f32 %v4697_v21, %v45_v17  ;;  %v4718_v33 = vadd.f32 %v4702_v25, %v46_v23  ;;  %v4740_v23 = vadd.f32 %v4692_v19, %v50_v53 }
  0x10   :  { %v1769_v4 = vmul.u32 2654435761, %v4663_v1  ;;  %v4671_v5 = vmul.u32 2246822519, %v1762_v2  ;;  %v1763_v6 = vadd.s32 128, %v1762_v2  ;;  %v1764_v7 = vadd.s32 256, %v1762_v2 }
  0x11   :  { %v1765_v8 = vadd.s32 384, %v1762_v2  ;;  %v4673_v9 = vadd.s32 512, %v1762_v2  ;;  %v4675_v10 = vadd.s32 640, %v1762_v2  ;;  %v4685_v14 = vadd.s32 8, %v4663_v1 }
  0x12   :  { %v4678_v11 = vadd.s32 %v4668_v3, %v1769_v4  ;;  %v4680_v12 = vmul.u32 2246822519, %v1763_v6  ;;  %v4682_v13 = vmul.u32 2246822519, %v1764_v7  ;;  %v4721_v35 = vadd.f32 %v4707_v27, %v47_v24  ;;  %v51_v4 = vld [vmem:[#allocation4 + $0x38] sm:$0xff] }
  0x13   :  { %v4689_v18 = vmul.u32 2246822519, %v1765_v8  ;;  %v358_v37 = vmul.f32 %v4712_v29, %v4712_v29  ;;  %v359_v39 = vmul.f32 %v4715_v31, %v4715_v31  ;;  %v360_v41 = vmul.f32 %v4718_v33, %v4718_v33 }
  0x14   :  { %v1826_v20 = vadd.s32 %v4671_v5, %v4678_v11  ;;  %v1827_v22 = vadd.s32 %v4680_v12, %v4678_v11  ;;  %v1828_v26 = vadd.s32 %v4682_v13, %v4678_v11  ;;  %v361_v43 = vmul.f32 %v4721_v35, %v4721_v35 }
  0x15   :  { %v1829_v28 = vadd.s32 %v4689_v18, %v4678_v11  ;;  %v508_v45 = vmul.f32 %v358_v37, %v4712_v29  ;;  %v509_v47 = vmul.f32 %v359_v39, %v4715_v31  ;;  %v510_v49 = vmul.f32 %v360_v41, %v4718_v33  ;;  %v48_v37 = vld [vmem:[#allocation4 + $0x20] sm:$0xff] }
  0x16   :  { %v1976_v30 = vshrl.u32 %v1826_v20, 16  ;;  %v1977_v32 = vshrl.u32 %v1827_v22, 16  ;;  %v1978_v34 = vshrl.u32 %v1828_v26, 16  ;;  %v511_v51 = vmul.f32 %v361_v43, %v4721_v35 }
  0x17   :  { %v1979_v36 = vshrl.u32 %v1829_v28, 16  ;;  %v658_v54 = vmul.f32 0.044715, %v508_v45  ;;  %v659_v56 = vmul.f32 0.044715, %v509_v47  ;;  %v49_v47 = vld [vmem:[#allocation4 + $0x28] sm:$0xff] }
  0x18   :  { %v2126_v38 = vxor.u32 %v1976_v30, %v1826_v20  ;;  %v2127_v40 = vxor.u32 %v1977_v32, %v1827_v22  ;;  %v2128_v42 = vxor.u32 %v1978_v34, %v1828_v26  ;;  %v660_v58 = vmul.f32 0.044715, %v510_v49 }
  0x19   :  { %v2129_v44 = vxor.u32 %v1979_v36, %v1829_v28  ;;  %v661_v60 = vmul.f32 0.044715, %v511_v51  ;;  %v808_v62 = vadd.f32 %v658_v54, %v4712_v29  ;;  %v809_v0 = vadd.f32 %v659_v56, %v4715_v31 }
  0x1a   :  { %v2276_v46 = vmul.u32 2146121005, %v2126_v38  ;;  %v2277_v48 = vmul.u32 2146121005, %v2127_v40  ;;  %v2278_v50 = vmul.u32 2146121005, %v2128_v42  ;;  %v810_v6 = vadd.f32 %v660_v58, %v4718_v33 }
  0x1b   :  { %v2279_v52 = vmul.u32 2146121005, %v2129_v44  ;;  %v811_v8 = vadd.f32 %v661_v60, %v4721_v35  ;;  %v958_v17 = vmul.f32 0.7978846, %v808_v62  ;;  %v959_v22 = vmul.f32 0.7978846, %v809_v0 }
  0x1c   :  { %v2426_v55 = vshrl.u32 %v2276_v46, 15  ;;  %v2427_v57 = vshrl.u32 %v2277_v48, 15  ;;  %v2428_v59 = vshrl.u32 %v2278_v50, 15  ;;  %v960_v26 = vmul.f32 0.7978846, %v810_v6 }
  0x1d   :  { %v2429_v61 = vshrl.u32 %v2279_v52, 15  ;;  %v4743_v30 = vadd.f32 %v4697_v21, %v51_v4  ;;  %4251 = vtanh.f32 %v958_v17  ;;  %v961_v34 = vmul.f32 0.7978846, %v811_v8 }
  0x1e   :  { %v2576_v63 = vxor.u32 %v2426_v55, %v2276_v46  ;;  %v2577_v2 = vxor.u32 %v2427_v57, %v2277_v48  ;;  %v2578_v7 = vxor.u32 %v2428_v59, %v2278_v50  ;;  %4253 = vtanh.f32 %v959_v22 }
  0x1f   :  { %v2579_v15 = vxor.u32 %v2429_v61, %v2279_v52  ;;  %v4746_v40 = vperm.slane %v4687_v16, 4  ;;  %4255 = vtanh.f32 %v960_v26  ;;  %v4749_v43 = vmul.u32 2246822519, %v4673_v9 }
  0x20   :  { %v2726_v20 = vmul.u32 2221713035, %v2576_v63  ;;  %v2727_v24 = vmul.u32 2221713035, %v2577_v2  ;;  %v2728_v28 = vmul.u32 2221713035, %v2578_v7  ;;  %4257 = vtanh.f32 %v961_v34 }
  0x21   :  { %v2729_v36 = vmul.u32 2221713035, %v2579_v15  ;;  %v4752_v46 = vadd.f32 %v4746_v40, %v48_v37  ;;  %v1830_v50 = vadd.s32 %v4749_v43, %v4678_v11  ;;  %v4757_v51 = vperm.slane %v4687_v16, 5 }
  0x22   :  { %v2876_v32 = vshrl.u32 %v2726_v20, 16  ;;  %v2877_v38 = vshrl.u32 %v2727_v24, 16  ;;  %v2878_v39 = vshrl.u32 %v2728_v28, 16  ;;  %v4762_v54 = vmul.u32 2246822519, %v4675_v10 }
  0x23   :  { %v2879_v42 = vshrl.u32 %v2729_v36, 16  ;;  %v362_v9 = vmul.f32 %v4752_v46, %v4752_v46  ;;  %v4252_v55 = vpop.eup %4251  ;;  %v1980_v58 = vshrl.u32 %v1830_v50, 16  ;;  %v4769_v59 = vadd.f32 %v4757_v51, %v49_v47 }
  0x24   :  { %v3026_v41 = vxor.u32 %v2876_v32, %v2726_v20  ;;  %v3027_v44 = vxor.u32 %v2877_v38, %v2727_v24  ;;  %v3028_v45 = vxor.u32 %v2878_v39, %v2728_v28  ;;  %v4254_v16 = vpop.eup %4253  ;;  %v1258_v60 = vadd.f32 1.0, %v4252_v55 }
  0x25   :  { %v3029_v49 = vxor.u32 %v2879_v42, %v2729_v36  ;;  %v512_v10 = vmul.f32 %v362_v9, %v4752_v46  ;;  %v4256_v63 = vpop.eup %4255  ;;  %v1259_v0 = vadd.f32 1.0, %v4254_v16  ;;  %v2130_v4 = vxor.u32 %v1980_v58, %v1830_v50  ;;  %v52_v9 = vld [vmem:[#allocation4 + $0x40] sm:$0xff] }
  0x26   :  { %v4096_v48 = vxor.u32 2147483648, %v3026_v41  ;;  %v4097_v52 = vxor.u32 2147483648, %v3027_v44  ;;  %v4098_v53 = vxor.u32 2147483648, %v3028_v45  ;;  %v363_v6 = vmul.f32 %v4769_v59, %v4769_v59  ;;  %v4258_v7 = vpop.eup %4257 }
  0x27   :  { %v4099_v57 = vxor.u32 2147483648, %v3029_v49  ;;  %v1408_v8 = vmul.f32 0.5, %v1258_v60  ;;  %v1260_v15 = vadd.f32 1.0, %v4256_v63  ;;  %v662_v17 = vmul.f32 0.044715, %v512_v10  ;;  %v53_v10 = vld [vmem:[#allocation4 + $0x48] sm:$0xff] }
  0x28   :  { %vm4764_vm0 = vcmp.ge.s32.totalorder %v4096_v48, 2576980378  ;;  %vm4771_vm1 = vcmp.ge.s32.totalorder %v4097_v52, 2576980378  ;;  %vm4775_vm2 = vcmp.ge.s32.totalorder %v4098_v53, 2576980378  ;;  %v1831_v20 = vadd.s32 %v4762_v54, %v4678_v11 }
  0x29   :  { %vm4780_vm3 = vcmp.ge.s32.totalorder %v4099_v57, 2576980378  ;;  %v1409_v22 = vmul.f32 0.5, %v1259_v0  ;;  %v1261_v24 = vadd.f32 1.0, %v4258_v7  ;;  %v2280_v26 = vmul.u32 2146121005, %v2130_v4 }
  0x2a   :  { %v513_v28 = vmul.f32 %v363_v6, %v4769_v59  ;;  %v1558_v32 = vmul.f32 %v1408_v8, %v4712_v29  ;;  %v1410_v34 = vmul.f32 0.5, %v1260_v15  ;;  %v812_v36 = vadd.f32 %v662_v17, %v4752_v46  ;;  %v54_v6 = vld [vmem:[#allocation4 + $0x50] sm:$0xff] }
  0x2b   :  { %v1981_v37 = vshrl.u32 %v1831_v20, 16  ;;  %v1559_v38 = vmul.f32 %v1409_v22, %v4715_v31  ;;  %v1411_v39 = vmul.f32 0.5, %v1261_v24  ;;  %v2430_v41 = vshrl.u32 %v2280_v26, 15 }
  0x2c   :  { %v663_v42 = vmul.f32 0.044715, %v513_v28  ;;  %v3626_v44 = vmul.f32 1.1111112, %v1558_v32  ;;  %v1560_v45 = vmul.f32 %v1410_v34, %v4718_v33  ;;  %v962_v11 = vmul.f32 0.7978846, %v812_v36 }
  0x2d   :  { %v2131_v47 = vxor.u32 %v1981_v37, %v1831_v20  ;;  %v3627_v48 = vmul.f32 1.1111112, %v1559_v38  ;;  %v1561_v49 = vmul.f32 %v1411_v39, %v4721_v35  ;;  %v2580_v50 = vxor.u32 %v2430_v41, %v2280_v26 }
  0x2e   :  { %v813_v29 = vadd.f32 %v663_v42, %v4769_v59  ;;  %v3776_v52 = vsel %vm4764_vm0, %v3626_v44, 0.0  ;;  %v3628_v53 = vmul.f32 1.1111112, %v1560_v45  ;;  %4259 = vtanh.f32 %v962_v11 }
  0x2f   :  { %v2281_v31 = vmul.u32 2146121005, %v2131_v47  ;;  %3926 = vst [vmem:[#allocation9] sm:$0xff] %v3776_v52  ;;  %v3777_v55 = vsel %vm4771_vm1, %v3627_v48, 0.0  ;;  %v3629_v33 = vmul.f32 1.1111112, %v1561_v49  ;;  %v364_v58 = vmul.f32 %v4740_v23, %v4740_v23 }
  0x30   :  { %v2730_v57 = vmul.u32 2221713035, %v2580_v50  ;;  %3927 = vst [vmem:[#allocation9 + $0x8] sm:$0xff] %v3777_v55  ;;  %v3778_v35 = vsel %vm4775_vm2, %v3628_v53, 0.0  ;;  %v963_v16 = vmul.f32 0.7978846, %v813_v29  ;;  %v365_v60 = vmul.f32 %v4743_v30, %v4743_v30 }
  0x31   :  { %v2431_v56 = vshrl.u32 %v2281_v31, 15  ;;  %3928 = vst [vmem:[#allocation9 + $0x10] sm:$0xff] %v3778_v35  ;;  %v3779_v61 = vsel %vm4780_vm3, %v3629_v33, 0.0  ;;  %v514_v0 = vmul.f32 %v364_v58, %v4740_v23  ;;  %v1770_v4 = vmul.u32 2654435761, %v4685_v14 }
  0x32   :  { %v2880_v63 = vshrl.u32 %v2730_v57, 16  ;;  %3929 = vst [vmem:[#allocation9 + $0x18] sm:$0xff] %v3779_v61  ;;  %4261 = vtanh.f32 %v963_v16  ;;  %v515_v7 = vmul.f32 %v365_v60, %v4743_v30  ;;  %v4811_v8 = vadd.f32 %v4702_v25, %v52_v9 }
  0x33   :  { %v2581_v62 = vxor.u32 %v2431_v56, %v2281_v31  ;;  %v664_v17 = vmul.f32 0.044715, %v514_v0  ;;  %v4814_v20 = vadd.s32 %v4668_v3, %v1770_v4  ;;  %v4817_v2 = vadd.f32 %v4707_v27, %v53_v10 }
  0x34   :  { %v3030_v15 = vxor.u32 %v2880_v63, %v2730_v57  ;;  %v4260_v22 = vpop.eup %4259  ;;  %v665_v14 = vmul.f32 0.044715, %v515_v7  ;;  %v366_v26 = vmul.f32 %v4811_v8, %v4811_v8  ;;  %v4822_v28 = vadd.f32 %v4746_v40, %v54_v6 }
  0x35   :  { %v2731_v24 = vmul.u32 2221713035, %v2581_v62  ;;  %v1262_v32 = vadd.f32 1.0, %v4260_v22  ;;  %v814_v36 = vadd.f32 %v664_v17, %v4740_v23  ;;  %v1832_v37 = vadd.s32 %v4671_v5, %v4814_v20 }
  0x36   :  { %v4100_v34 = vxor.u32 2147483648, %v3030_v15  ;;  %v815_v39 = vadd.f32 %v665_v14, %v4743_v30  ;;  %v1833_v41 = vadd.s32 %v4680_v12, %v4814_v20  ;;  %v516_v42 = vmul.f32 %v366_v26, %v4811_v8 }
  0x37   :  { %v2881_v38 = vshrl.u32 %v2731_v24, 16  ;;  %v1412_v44 = vmul.f32 0.5, %v1262_v32  ;;  %v964_v11 = vmul.f32 0.7978846, %v814_v36  ;;  %v1982_v47 = vshrl.u32 %v1832_v37, 16 }
  0x38   :  { %vm4831_vm4 = vcmp.ge.s32.totalorder %v4100_v34, 2576980378  ;;  %v4262_v48 = vpop.eup %4261  ;;  %v965_v50 = vmul.f32 0.7978846, %v815_v39  ;;  %v1983_v29 = vshrl.u32 %v1833_v41, 16  ;;  %v1834_v56 = vadd.s32 %v4682_v13, %v4814_v20 }
  0x39   :  { %v3031_v49 = vxor.u32 %v2881_v38, %v2731_v24  ;;  %v666_v52 = vmul.f32 0.044715, %v516_v42  ;;  %v1562_v53 = vmul.f32 %v1412_v44, %v4752_v46  ;;  %v1263_v31 = vadd.f32 1.0, %v4262_v48 }
  0x3a   :  { %4263 = vtanh.f32 %v964_v11  ;;  %v2132_v9 = vxor.u32 %v1982_v47, %v1832_v37  ;;  %v2133_v33 = vxor.u32 %v1983_v29, %v1833_v41  ;;  %v367_v61 = vmul.f32 %v4817_v2, %v4817_v2 }
  0x3b   :  { %v4101_v55 = vxor.u32 2147483648, %v3031_v49  ;;  %4265 = vtanh.f32 %v965_v50  ;;  %v816_v57 = vadd.f32 %v666_v52, %v4811_v8  ;;  %v3630_v58 = vmul.f32 1.1111112, %v1562_v53 }
  0x3c   :  { %v1413_v35 = vmul.f32 0.5, %v1263_v31  ;;  %v2282_v16 = vmul.u32 2146121005, %v2132_v9  ;;  %v2283_v10 = vmul.u32 2146121005, %v2133_v33  ;;  %v1984_v6 = vshrl.u32 %v1834_v56, 16 }
  0x3d   :  { %vm4839_vm5 = vcmp.ge.s32.totalorder %v4101_v55, 2576980378  ;;  %v966_v46 = vmul.f32 0.7978846, %v816_v57  ;;  %v3780_v63 = vsel %vm4831_vm4, %v3630_v58, 0.0  ;;  %v517_v7 = vmul.f32 %v367_v61, %v4817_v2 }
  0x3e   :  { %v1563_v0 = vmul.f32 %v1413_v35, %v4769_v59  ;;  %v2432_v4 = vshrl.u32 %v2282_v16, 15  ;;  %3930 = vst [vmem:[#allocation9 + $0x20] sm:$0xff] %v3780_v63  ;;  %v2433_v62 = vshrl.u32 %v2283_v10, 15  ;;  %v1835_v15 = vadd.s32 %v4689_v18, %v4814_v20 }
  0x3f   :  { %4267 = vtanh.f32 %v966_v46  ;;  %v2134_v14 = vxor.u32 %v1984_v6, %v1834_v56  ;;  %v368_v26 = vmul.f32 %v4822_v28, %v4822_v28  ;;  %v667_v36 = vmul.f32 0.044715, %v517_v7 }
  0x40   :  { %v4264_v17 = vpop.eup %4263  ;;  %v3631_v22 = vmul.f32 1.1111112, %v1563_v0  ;;  %v2582_v24 = vxor.u32 %v2432_v4, %v2282_v16  ;;  %v2583_v59 = vxor.u32 %v2433_v62, %v2283_v10  ;;  %v1985_v37 = vshrl.u32 %v1835_v15, 16  ;;  %v55_v10 = vld [vmem:[#allocation4 + $0x58] sm:$0xff] }
  0x41   :  { %v4266_v32 = vpop.eup %4265  ;;  %v1264_v34 = vadd.f32 1.0, %v4264_v17  ;;  %v2284_v42 = vmul.u32 2146121005, %v2134_v14  ;;  %v817_v11 = vadd.f32 %v667_v36, %v4817_v2  ;;  %v518_v29 = vmul.f32 %v368_v26, %v4822_v28  ;;  %v56_v14 = vld [vmem:[#allocation4 + $0x60] sm:$0xff] }
  0x42   :  { %v3781_v38 = vsel %vm4839_vm5, %v3631_v22, 0.0  ;;  %v2732_v39 = vmul.u32 2221713035, %v2582_v24  ;;  %v1265_v41 = vadd.f32 1.0, %v4266_v32  ;;  %v2733_v45 = vmul.u32 2221713035, %v2583_v59 }
  0x43   :  { %3931 = vst [vmem:[#allocation9 + $0x28] sm:$0xff] %v3781_v38  ;;  %v1414_v44 = vmul.f32 0.5, %v1264_v34  ;;  %v2135_v47 = vxor.u32 %v1985_v37, %v1835_v15  ;;  %v2434_v50 = vshrl.u32 %v2284_v42, 15  ;;  %v967_v9 = vmul.f32 0.7978846, %v817_v11 }
  0x44   :  { %v2882_v48 = vshrl.u32 %v2732_v39, 16  ;;  %v1415_v49 = vmul.f32 0.5, %v1265_v41  ;;  %v2883_v31 = vshrl.u32 %v2733_v45, 16  ;;  %v1836_v62 = vadd.s32 %v4749_v43, %v4814_v20 }
  0x45   :  { %v4268_v52 = vpop.eup %4267  ;;  %v1564_v53 = vmul.f32 %v1414_v44, %v4740_v23  ;;  %v2285_v55 = vmul.u32 2146121005, %v2135_v47  ;;  %v2584_v35 = vxor.u32 %v2434_v50, %v2284_v42  ;;  %4269 = vtanh.f32 %v967_v9 }
  0x46   :  { %v3032_v33 = vxor.u32 %v2882_v48, %v2732_v39  ;;  %v1565_v57 = vmul.f32 %v1415_v49, %v4743_v30  ;;  %v1266_v58 = vadd.f32 1.0, %v4268_v52  ;;  %v3033_v56 = vxor.u32 %v2883_v31, %v2733_v45  ;;  %v57_v52 = vld [vmem:[#allocation4 + $0x68] sm:$0xff] }
  0x47   :  { %v3632_v16 = vmul.f32 1.1111112, %v1564_v53  ;;  %v2435_v60 = vshrl.u32 %v2285_v55, 15  ;;  %v2734_v0 = vmul.u32 2221713035, %v2584_v35  ;;  %v4863_v15 = vadd.f32 %v4757_v51, %v55_v10  ;;  %v58_v35 = vld [vmem:[#allocation4 + $0x70] sm:$0xff] }
  0x48   :  { %v4102_v46 = vxor.u32 2147483648, %v3032_v33  ;;  %v3633_v61 = vmul.f32 1.1111112, %v1565_v57  ;;  %v1416_v63 = vmul.f32 0.5, %v1266_v58  ;;  %v4103_v4 = vxor.u32 2147483648, %v3033_v56 }
  0x49   :  { %v2585_v6 = vxor.u32 %v2435_v60, %v2285_v55  ;;  %v668_v23 = vmul.f32 0.044715, %v518_v29  ;;  %v2884_v7 = vshrl.u32 %v2734_v0, 16  ;;  %v1986_v59 = vshrl.u32 %v1836_v62, 16 }
  0x4a   :  { %vm3196_vm6 = vcmp.ge.s32.totalorder %v4102_v46, 2576980378  ;;  %v1566_v30 = vmul.f32 %v1416_v63, %v4811_v8  ;;  %vm3199_vm7 = vcmp.ge.s32.totalorder %v4103_v4, 2576980378  ;;  %v369_v8 = vmul.f32 %v4863_v15, %v4863_v15 }
  0x4b   :  { %v3782_v17 = vsel %vm3196_vm6, %v3632_v16, 0.0  ;;  %v2735_v22 = vmul.u32 2221713035, %v2585_v6  ;;  %v818_v24 = vadd.f32 %v668_v23, %v4822_v28  ;;  %v3783_v26 = vsel %vm3199_vm7, %v3633_v61, 0.0  ;;  %v4270_v36 = vpop.eup %4269 }
  0x4c   :  { %3932 = vst [vmem:[#allocation9 + $0x30] sm:$0xff] %v3782_v17  ;;  %v3034_v32 = vxor.u32 %v2884_v7, %v2734_v0  ;;  %v3634_v34 = vmul.f32 1.1111112, %v1566_v30  ;;  %v1837_v39 = vadd.s32 %v4762_v54, %v4814_v20  ;;  %v1267_v42 = vadd.f32 1.0, %v4270_v36 }
  0x4d   :  { %3933 = vst [vmem:[#allocation9 + $0x38] sm:$0xff] %v3783_v26  ;;  %v2885_v37 = vshrl.u32 %v2735_v22, 16  ;;  %v968_v38 = vmul.f32 0.7978846, %v818_v24  ;;  %v2136_v44 = vxor.u32 %v1986_v59, %v1836_v62  ;;  %v4871_v45 = vadd.f32 %v4692_v19, %v56_v14 }
  0x4e   :  { %v4104_v41 = vxor.u32 2147483648, %v3034_v32  ;;  %v519_v47 = vmul.f32 %v369_v8, %v4863_v15  ;;  %v1987_v48 = vshrl.u32 %v1837_v39, 16  ;;  %v1417_v49 = vmul.f32 0.5, %v1267_v42 }
  0x4f   :  { %v3035_v11 = vxor.u32 %v2885_v37, %v2735_v22  ;;  %4271 = vtanh.f32 %v968_v38  ;;  %v2286_v50 = vmul.u32 2146121005, %v2136_v44  ;;  %v370_v29 = vmul.f32 %v4871_v45, %v4871_v45 }
  0x50   :  { %vm3202_vm8 = vcmp.ge.s32.totalorder %v4104_v41, 2576980378  ;;  %v669_v31 = vmul.f32 0.044715, %v519_v47  ;;  %v2137_v9 = vxor.u32 %v1987_v48, %v1837_v39  ;;  %v1567_v55 = vmul.f32 %v1417_v49, %v4817_v2 }
  0x51   :  { %v3784_v53 = vsel %vm3202_vm8, %v3634_v34, 0.0  ;;  %v4105_v20 = vxor.u32 2147483648, %v3035_v11  ;;  %v2436_v33 = vshrl.u32 %v2286_v50, 15  ;;  %v520_v57 = vmul.f32 %v370_v29, %v4871_v45 }
  0x52   :  { %3934 = vst [vmem:[#allocation9 + $0x40] sm:$0xff] %v3784_v53  ;;  %v1711_v58 = vadd.s32 16, %v4663_v1  ;;  %v819_v56 = vadd.f32 %v669_v31, %v4863_v15  ;;  %v2287_v60 = vmul.u32 2146121005, %v2137_v9  ;;  %v4885_v10 = vadd.f32 %v4697_v21, %v57_v52 }
  0x53   :  { %vm4879_vm9 = vcmp.ge.s32.totalorder %v4105_v20, 2576980378  ;;  %v3635_v46 = vmul.f32 1.1111112, %v1567_v55  ;;  %v2586_v61 = vxor.u32 %v2436_v33, %v2286_v50  ;;  %v670_v63 = vmul.f32 0.044715, %v520_v57 }
  0x54   :  { %v1771_v2 = vmul.u32 2654435761, %v1711_v58  ;;  %v969_v4 = vmul.f32 0.7978846, %v819_v56  ;;  %v2437_v6 = vshrl.u32 %v2287_v60, 15  ;;  %v371_v23 = vmul.f32 %v4885_v10, %v4885_v10 }
  0x55   :  { %v4272_v0 = vpop.eup %4271  ;;  %v4890_v62 = vadd.f32 %v4702_v25, %v58_v35  ;;  %v3785_v30 = vsel %vm4879_vm9, %v3635_v46, 0.0  ;;  %v2736_v17 = vmul.u32 2221713035, %v2586_v61  ;;  %v820_v22 = vadd.f32 %v670_v63, %v4871_v45  ;;  %v59_v35 = vld [vmem:[#allocation4 + $0x78] sm:$0xff] }
  0x56   :  { %v1268_v7 = vadd.f32 1.0, %v4272_v0  ;;  %3935 = vst [vmem:[#allocation9 + $0x48] sm:$0xff] %v3785_v30  ;;  %4273 = vtanh.f32 %v969_v4  ;;  %v2587_v24 = vxor.u32 %v2437_v6, %v2287_v60  ;;  %v4896_v14 = vadd.s32 %v4668_v3, %v1771_v2 }
  0x57   :  { %v521_v26 = vmul.f32 %v371_v23, %v4885_v10  ;;  %v2886_v34 = vshrl.u32 %v2736_v17, 16  ;;  %v970_v59 = vmul.f32 0.7978846, %v820_v22  ;;  %v372_v36 = vmul.f32 %v4890_v62, %v4890_v62 }
  0x58   :  { %v1418_v32 = vmul.f32 0.5, %v1268_v7  ;;  %v2737_v37 = vmul.u32 2221713035, %v2587_v24  ;;  %v1838_v38 = vadd.s32 %v4671_v5, %v4896_v14  ;;  %v1839_v39 = vadd.s32 %v4680_v12, %v4896_v14  ;;  %v60_v7 = vld [vmem:[#allocation4 + $0x80] sm:$0xff] }
  0x59   :  { %v671_v8 = vmul.f32 0.044715, %v521_v26  ;;  %v3036_v42 = vxor.u32 %v2886_v34, %v2736_v17  ;;  %4275 = vtanh.f32 %v970_v59  ;;  %v522_v44 = vmul.f32 %v372_v36, %v4890_v62 }
  0x5a   :  { %v1568_v41 = vmul.f32 %v1418_v32, %v4822_v28  ;;  %v2887_v11 = vshrl.u32 %v2737_v37, 16  ;;  %v1988_v47 = vshrl.u32 %v1838_v38, 16  ;;  %v1989_v49 = vshrl.u32 %v1839_v39, 16 }
  0x5b   :  { %v821_v48 = vadd.f32 %v671_v8, %v4885_v10  ;;  %v4106_v50 = vxor.u32 2147483648, %v3036_v42  ;;  %v672_v52 = vmul.f32 0.044715, %v522_v44  ;;  %v1840_v53 = vadd.s32 %v4682_v13, %v4896_v14 }
  0x5c   :  { %v3636_v29 = vmul.f32 1.1111112, %v1568_v41  ;;  %v4274_v20 = vpop.eup %4273  ;;  %v3037_v31 = vxor.u32 %v2887_v11, %v2737_v37  ;;  %v2138_v9 = vxor.u32 %v1988_v47, %v1838_v38  ;;  %v2139_v28 = vxor.u32 %v1989_v49, %v1839_v39 }
  0x5d   :  { %v971_v55 = vmul.f32 0.7978846, %v821_v48  ;;  %vm3208_vm10 = vcmp.ge.s32.totalorder %v4106_v50, 2576980378  ;;  %v1269_v33 = vadd.f32 1.0, %v4274_v20  ;;  %v822_v57 = vadd.f32 %v672_v52, %v4890_v62 }
  0x5e   :  { %v1990_v58 = vshrl.u32 %v1840_v53, 16  ;;  %v3786_v16 = vsel %vm3208_vm10, %v3636_v29, 0.0  ;;  %v4107_v56 = vxor.u32 2147483648, %v3037_v31  ;;  %v2288_v60 = vmul.u32 2146121005, %v2138_v9 }
  0x5f   :  { %4277 = vtanh.f32 %v971_v55  ;;  %v4276_v46 = vpop.eup %4275  ;;  %3936 = vst [vmem:[#allocation9 + $0x50] sm:$0xff] %v3786_v16  ;;  %v1419_v61 = vmul.f32 0.5, %v1269_v33  ;;  %v2289_v63 = vmul.u32 2146121005, %v2139_v28  ;;  %v972_v2 = vmul.f32 0.7978846, %v822_v57 }
  0x60   :  { %v2140_v0 = vxor.u32 %v1990_v58, %v1840_v53  ;;  %vm4911_vm11 = vcmp.ge.s32.totalorder %v4107_v56, 2576980378  ;;  %v1270_v6 = vadd.f32 1.0, %v4276_v46  ;;  %v2438_v23 = vshrl.u32 %v2288_v60, 15 }
  0x61   :  { %v4916_v30 = vadd.f32 %v4707_v27, %v59_v35  ;;  %v1569_v17 = vmul.f32 %v1419_v61, %v4863_v15  ;;  %v2439_v22 = vshrl.u32 %v2289_v63, 15  ;;  %4279 = vtanh.f32 %v972_v2 }
  0x62   :  { %v2290_v24 = vmul.u32 2146121005, %v2140_v0  ;;  %v1420_v26 = vmul.f32 0.5, %v1270_v6  ;;  %v2588_v32 = vxor.u32 %v2438_v23, %v2288_v60  ;;  %v1841_v59 = vadd.s32 %v4689_v18, %v4896_v14 }
  0x63   :  { %v373_v34 = vmul.f32 %v4916_v30, %v4916_v30  ;;  %v3637_v36 = vmul.f32 1.1111112, %v1569_v17  ;;  %v2589_v37 = vxor.u32 %v2439_v22, %v2289_v63  ;;  %v4924_v8 = vadd.f32 %v4746_v40, %v60_v7  ;;  %v61_v22 = vld [vmem:[#allocation4 + $0x88] sm:$0xff] }
  0x64   :  { %v2440_v38 = vshrl.u32 %v2290_v24, 15  ;;  %v1570_v15 = vmul.f32 %v1420_v26, %v4871_v45  ;;  %v2738_v41 = vmul.u32 2221713035, %v2588_v32  ;;  %v1991_v44 = vshrl.u32 %v1841_v59, 16  ;;  %v62_v32 = vld [vmem:[#allocation4 + $0x90] sm:$0xff] }
  0x65   :  { %v4278_v39 = vpop.eup %4277  ;;  %v523_v42 = vmul.f32 %v373_v34, %v4916_v30  ;;  %v3787_v11 = vsel %vm4911_vm11, %v3637_v36, 0.0  ;;  %v2739_v48 = vmul.u32 2221713035, %v2589_v37  ;;  %v374_v45 = vmul.f32 %v4924_v8, %v4924_v8 }
  0x66   :  { %v1271_v47 = vadd.f32 1.0, %v4278_v39  ;;  %v2590_v49 = vxor.u32 %v2440_v38, %v2290_v24  ;;  %3937 = vst [vmem:[#allocation9 + $0x58] sm:$0xff] %v3787_v11  ;;  %v2888_v50 = vshrl.u32 %v2738_v41, 16  ;;  %v3638_v29 = vmul.f32 1.1111112, %v1570_v15  ;;  %v63_v15 = vld [vmem:[#allocation4 + $0x98] sm:$0xff] }
  0x67   :  { %v673_v52 = vmul.f32 0.044715, %v523_v42  ;;  %v2141_v53 = vxor.u32 %v1991_v44, %v1841_v59  ;;  %v4280_v20 = vpop.eup %4279  ;;  %v2889_v9 = vshrl.u32 %v2739_v48, 16  ;;  %v524_v60 = vmul.f32 %v374_v45, %v4924_v8 }
  0x68   :  { %v1421_v31 = vmul.f32 0.5, %v1271_v47  ;;  %v2740_v55 = vmul.u32 2221713035, %v2590_v49  ;;  %v3038_v28 = vxor.u32 %v2888_v50, %v2738_v41  ;;  %v1272_v33 = vadd.f32 1.0, %v4280_v20 }
  0x69   :  { %v823_v57 = vadd.f32 %v673_v52, %v4916_v30  ;;  %v2291_v58 = vmul.u32 2146121005, %v2141_v53  ;;  %v3039_v16 = vxor.u32 %v2889_v9, %v2739_v48  ;;  %v674_v23 = vmul.f32 0.044715, %v524_v60 }
  0x6a   :  { %v1571_v35 = vmul.f32 %v1421_v31, %v4885_v10  ;;  %v2890_v56 = vshrl.u32 %v2740_v55, 16  ;;  %v4108_v46 = vxor.u32 2147483648, %v3038_v28  ;;  %v1422_v61 = vmul.f32 0.5, %v1272_v33 }
  0x6b   :  { %v973_v63 = vmul.f32 0.7978846, %v823_v57  ;;  %v2441_v2 = vshrl.u32 %v2291_v58, 15  ;;  %v4109_v0 = vxor.u32 2147483648, %v3039_v16  ;;  %v824_v26 = vadd.f32 %v674_v23, %v4924_v8 }
  0x6c   :  { %v3639_v4 = vmul.f32 1.1111112, %v1571_v35  ;;  %v3040_v6 = vxor.u32 %v2890_v56, %v2740_v55  ;;  %vm3214_vm12 = vcmp.ge.s32.totalorder %v4108_v46, 2576980378  ;;  %v1572_v7 = vmul.f32 %v1422_v61, %v4890_v62 }
  0x6d   :  { %4281 = vtanh.f32 %v973_v63  ;;  %v2591_v17 = vxor.u32 %v2441_v2, %v2291_v58  ;;  %v3788_v24 = vsel %vm3214_vm12, %v3638_v29, 0.0  ;;  %vm3217_vm13 = vcmp.ge.s32.totalorder %v4109_v0, 2576980378 }
  0x6e   :  { %v4110_v10 = vxor.u32 2147483648, %v3040_v6  ;;  %3938 = vst [vmem:[#allocation9 + $0x60] sm:$0xff] %v3788_v24  ;;  %v3789_v34 = vsel %vm3217_vm13, %v3639_v4, 0.0  ;;  %v3640_v59 = vmul.f32 1.1111112, %v1572_v7  ;;  %v1842_v37 = vadd.s32 %v4749_v43, %v4896_v14 }
  0x6f   :  { %v2741_v36 = vmul.u32 2221713035, %v2591_v17  ;;  %3939 = vst [vmem:[#allocation9 + $0x68] sm:$0xff] %v3789_v34  ;;  %v974_v38 = vmul.f32 0.7978846, %v824_v26  ;;  %v4940_v62 = vadd.f32 %v4757_v51, %v61_v22  ;;  %v1843_v39 = vadd.s32 %v4762_v54, %v4896_v14 }
  0x70   :  { %vm3220_vm14 = vcmp.ge.s32.totalorder %v4110_v10, 2576980378  ;;  %v1992_v44 = vshrl.u32 %v1842_v37, 16  ;;  %v4945_v11 = vadd.f32 %v4692_v19, %v62_v32  ;;  %v1712_v49 = vadd.s32 24, %v4663_v1 }
  0x71   :  { %v3790_v41 = vsel %vm3220_vm14, %v3640_v59, 0.0  ;;  %v2891_v42 = vshrl.u32 %v2741_v36, 16  ;;  %4283 = vtanh.f32 %v974_v38  ;;  %v375_v47 = vmul.f32 %v4940_v62, %v4940_v62  ;;  %v64_v38 = vld [vmem:[#allocation4 + $0xa0] sm:$0xff] }
  0x72   :  { %3940 = vst [vmem:[#allocation9 + $0x70] sm:$0xff] %v3790_v41  ;;  %v1993_v48 = vshrl.u32 %v1843_v39, 16  ;;  %v2142_v52 = vxor.u32 %v1992_v44, %v1842_v37  ;;  %v376_v14 = vmul.f32 %v4945_v11, %v4945_v11  ;;  %v4953_v53 = vadd.f32 %v4697_v21, %v63_v15 }
  0x73   :  { %v4282_v50 = vpop.eup %4281  ;;  %v3041_v29 = vxor.u32 %v2891_v42, %v2741_v36  ;;  %v525_v31 = vmul.f32 %v375_v47, %v4940_v62  ;;  %v1772_v55 = vmul.u32 2654435761, %v1712_v49 }
  0x74   :  { %v1273_v20 = vadd.f32 1.0, %v4282_v50  ;;  %v2143_v9 = vxor.u32 %v1993_v48, %v1843_v39  ;;  %v2292_v28 = vmul.u32 2146121005, %v2142_v52  ;;  %v526_v33 = vmul.f32 %v376_v14, %v4945_v11  ;;  %v65_v52 = vld [vmem:[#allocation4 + $0xa8] sm:$0xff] }
  0x75   :  { %v4111_v45 = vxor.u32 2147483648, %v3041_v29  ;;  %v377_v57 = vmul.f32 %v4953_v53, %v4953_v53  ;;  %v675_v35 = vmul.f32 0.044715, %v525_v31  ;;  %v4960_v56 = vadd.s32 %v4668_v3, %v1772_v55 }
  0x76   :  { %v1423_v58 = vmul.f32 0.5, %v1273_v20  ;;  %v2293_v16 = vmul.u32 2146121005, %v2143_v9  ;;  %v2442_v46 = vshrl.u32 %v2292_v28, 15  ;;  %v676_v61 = vmul.f32 0.044715, %v526_v33 }
  0x77   :  { %vm4962_vm15 = vcmp.ge.s32.totalorder %v4111_v45, 2576980378  ;;  %v527_v63 = vmul.f32 %v377_v57, %v4953_v53  ;;  %v4284_v2 = vpop.eup %4283  ;;  %v825_v4 = vadd.f32 %v675_v35, %v4940_v62  ;;  %v1844_v23 = vadd.s32 %v4671_v5, %v4960_v56 }
  0x78   :  { %v1573_v0 = vmul.f32 %v1423_v58, %v4916_v30  ;;  %v2443_v6 = vshrl.u32 %v2293_v16, 15  ;;  %v1274_v7 = vadd.f32 1.0, %v4284_v2  ;;  %v2592_v17 = vxor.u32 %v2442_v46, %v2292_v28 }
  0x79   :  { %v826_v22 = vadd.f32 %v676_v61, %v4945_v11  ;;  %v677_v24 = vmul.f32 0.044715, %v527_v63  ;;  %v975_v26 = vmul.f32 0.7978846, %v825_v4  ;;  %v1994_v34 = vshrl.u32 %v1844_v23, 16 }
  0x7a   :  { %v3641_v10 = vmul.f32 1.1111112, %v1573_v0  ;;  %v2593_v32 = vxor.u32 %v2443_v6, %v2293_v16  ;;  %v1424_v59 = vmul.f32 0.5, %v1274_v7  ;;  %v2742_v36 = vmul.u32 2221713035, %v2592_v17 }
  0x7b   :  { %v976_v37 = vmul.f32 0.7978846, %v826_v22  ;;  %v827_v30 = vadd.f32 %v677_v24, %v4953_v53  ;;  %4285 = vtanh.f32 %v975_v26  ;;  %v2144_v41 = vxor.u32 %v1994_v34, %v1844_v23 }
  0x7c   :  { %v3791_v39 = vsel %vm4962_vm15, %v3641_v10, 0.0  ;;  %v2743_v15 = vmul.u32 2221713035, %v2593_v32  ;;  %v1574_v42 = vmul.f32 %v1424_v59, %v4924_v8  ;;  %v2892_v44 = vshrl.u32 %v2742_v36, 16 }
  0x7d   :  { %3941 = vst [vmem:[#allocation9 + $0x78] sm:$0xff] %v3791_v39  ;;  %4287 = vtanh.f32 %v976_v37  ;;  %v977_v47 = vmul.f32 0.7978846, %v827_v30  ;;  %v2294_v49 = vmul.u32 2146121005, %v2144_v41  ;;  %v1845_v50 = vadd.s32 %v4680_v12, %v4960_v56 }
  0x7e   :  { %v2893_v48 = vshrl.u32 %v2743_v15, 16  ;;  %v4979_v29 = vadd.f32 %v4702_v25, %v64_v38  ;;  %v3042_v14 = vxor.u32 %v2892_v44, %v2742_v36  ;;  %v3642_v20 = vmul.f32 1.1111112, %v1574_v42 }
  0x7f   :  { %4289 = vtanh.f32 %v977_v47  ;;  %v1846_v31 = vadd.s32 %v4682_v13, %v4960_v56  ;;  %v2444_v8 = vshrl.u32 %v2294_v49, 15  ;;  %v1995_v55 = vshrl.u32 %v1845_v50, 16 }
  0x80   :  { %v3043_v9 = vxor.u32 %v2893_v48, %v2743_v15  ;;  %v378_v45 = vmul.f32 %v4979_v29, %v4979_v29  ;;  %v4112_v28 = vxor.u32 2147483648, %v3042_v14  ;;  %v4986_v57 = vadd.f32 %v4707_v27, %v65_v52  ;;  %v66_v14 = vld [vmem:[#allocation4 + $0xb0] sm:$0xff] }
  0x81   :  { %v1996_v33 = vshrl.u32 %v1846_v31, 16  ;;  %v1847_v58 = vadd.s32 %v4689_v18, %v4960_v56  ;;  %v4286_v35 = vpop.eup %4285  ;;  %v2594_v60 = vxor.u32 %v2444_v8, %v2294_v49  ;;  %v2145_v46 = vxor.u32 %v1995_v55, %v1845_v50  ;;  %v67_v8 = vld [vmem:[#allocation4 + $0xb8] sm:$0xff] }
  0x82   :  { %v4113_v16 = vxor.u32 2147483648, %v3043_v9  ;;  %v528_v61 = vmul.f32 %v378_v45, %v4979_v29  ;;  %vm3226_vm0 = vcmp.ge.s32.totalorder %v4112_v28, 2576980378  ;;  %v1275_v2 = vadd.f32 1.0, %v4286_v35  ;;  %v68_v28 = vld [vmem:[#allocation4 + $0xc0] sm:$0xff] }
  0x83   :  { %v4288_v63 = vpop.eup %4287  ;;  %v2146_v0 = vxor.u32 %v1996_v33, %v1846_v31  ;;  %v379_v4 = vmul.f32 %v4986_v57, %v4986_v57  ;;  %v3792_v6 = vsel %vm3226_vm0, %v3642_v20, 0.0  ;;  %v2744_v17 = vmul.u32 2221713035, %v2594_v60 }
  0x84   :  { %vm4993_vm1 = vcmp.ge.s32.totalorder %v4113_v16, 2576980378  ;;  %v1276_v7 = vadd.f32 1.0, %v4288_v63  ;;  %3942 = vst [vmem:[#allocation9 + $0x80] sm:$0xff] %v3792_v6  ;;  %v1425_v24 = vmul.f32 0.5, %v1275_v2  ;;  %v1997_v35 = vshrl.u32 %v1847_v58, 16 }
  0x85   :  { %v4290_v22 = vpop.eup %4289  ;;  %v2295_v10 = vmul.u32 2146121005, %v2145_v46  ;;  %v678_v26 = vmul.f32 0.044715, %v528_v61  ;;  %v529_v32 = vmul.f32 %v379_v4, %v4986_v57  ;;  %v2894_v59 = vshrl.u32 %v2744_v17, 16 }
  0x86   :  { %v1426_v34 = vmul.f32 0.5, %v1276_v7  ;;  %v1277_v36 = vadd.f32 1.0, %v4290_v22  ;;  %v2296_v37 = vmul.u32 2146121005, %v2146_v0  ;;  %v1575_v30 = vmul.f32 %v1425_v24, %v4940_v62 }
  0x87   :  { %v2445_v38 = vshrl.u32 %v2295_v10, 15  ;;  %v828_v39 = vadd.f32 %v678_v26, %v4979_v29  ;;  %v679_v15 = vmul.f32 0.044715, %v529_v32  ;;  %v3044_v42 = vxor.u32 %v2894_v59, %v2744_v17 }
  0x88   :  { %v1576_v41 = vmul.f32 %v1426_v34, %v4945_v11  ;;  %v1427_v44 = vmul.f32 0.5, %v1277_v36  ;;  %v2446_v47 = vshrl.u32 %v2296_v37, 15  ;;  %v3643_v48 = vmul.f32 1.1111112, %v1575_v30 }
  0x89   :  { %v2595_v49 = vxor.u32 %v2445_v38, %v2295_v10  ;;  %v978_v50 = vmul.f32 0.7978846, %v828_v39  ;;  %v829_v52 = vadd.f32 %v679_v15, %v4986_v57  ;;  %v4114_v20 = vxor.u32 2147483648, %v3044_v42 }
  0x8a   :  { %v3644_v31 = vmul.f32 1.1111112, %v1576_v41  ;;  %v1577_v9 = vmul.f32 %v1427_v44, %v4953_v53  ;;  %v2596_v62 = vxor.u32 %v2446_v47, %v2296_v37  ;;  %v3793_v55 = vsel %vm4993_vm1, %v3643_v48, 0.0 }
  0x8b   :  { %v2745_v45 = vmul.u32 2221713035, %v2595_v49  ;;  %4291 = vtanh.f32 %v978_v50  ;;  %v979_v11 = vmul.f32 0.7978846, %v829_v52  ;;  %3943 = vst [vmem:[#allocation9 + $0x88] sm:$0xff] %v3793_v55  ;;  %v5006_v16 = vadd.f32 %v4746_v40, %v66_v14 }
  0x8c   :  { %vm3232_vm2 = vcmp.ge.s32.totalorder %v4114_v20, 2576980378  ;;  %v3645_v33 = vmul.f32 1.1111112, %v1577_v9  ;;  %v2746_v61 = vmul.u32 2221713035, %v2596_v62  ;;  %v2147_v53 = vxor.u32 %v1997_v35, %v1847_v58 }
  0x8d   :  { %v3794_v60 = vsel %vm3232_vm2, %v3644_v31, 0.0  ;;  %v2895_v46 = vshrl.u32 %v2745_v45, 16  ;;  %4293 = vtanh.f32 %v979_v11  ;;  %v380_v63 = vmul.f32 %v5006_v16, %v5006_v16 }
  0x8e   :  { %3944 = vst [vmem:[#allocation9 + $0x90] sm:$0xff] %v3794_v60  ;;  %v1848_v2 = vadd.s32 %v4749_v43, %v4960_v56  ;;  %v5013_v0 = vadd.f32 %v4757_v51, %v67_v8  ;;  %v2896_v6 = vshrl.u32 %v2746_v61, 16  ;;  %v1849_v23 = vadd.s32 %v4762_v54, %v4960_v56 }
  0x8f   :  { %v3045_v4 = vxor.u32 %v2895_v46, %v2745_v45  ;;  %v5018_v7 = vadd.f32 %v4692_v19, %v68_v28  ;;  %v2297_v17 = vmul.u32 2146121005, %v2147_v53  ;;  %v530_v58 = vmul.f32 %v380_v63, %v5006_v16  ;;  %v69_v63 = vld [vmem:[#allocation4 + $0xc8] sm:$0xff] }
  0x90   :  { %v1998_v22 = vshrl.u32 %v1848_v2, 16  ;;  %v381_v24 = vmul.f32 %v5013_v0, %v5013_v0  ;;  %v3046_v32 = vxor.u32 %v2896_v6, %v2746_v61  ;;  %v1999_v34 = vshrl.u32 %v1849_v23, 16 }
  0x91   :  { %v4292_v10 = vpop.eup %4291  ;;  %v4115_v26 = vxor.u32 2147483648, %v3045_v4  ;;  %v382_v59 = vmul.f32 %v5018_v7, %v5018_v7  ;;  %v2447_v37 = vshrl.u32 %v2297_v17, 15  ;;  %v680_v56 = vmul.f32 0.044715, %v530_v58 }
  0x92   :  { %v1278_v36 = vadd.f32 1.0, %v4292_v10  ;;  %v2148_v30 = vxor.u32 %v1998_v22, %v1848_v2  ;;  %v4116_v39 = vxor.u32 2147483648, %v3046_v32  ;;  %v531_v15 = vmul.f32 %v381_v24, %v5013_v0  ;;  %v71_v24 = vld [vmem:[#allocation4 + $0xd8] sm:$0xff] }
  0x93   :  { %v4294_v38 = vpop.eup %4293  ;;  %vm3235_vm3 = vcmp.ge.s32.totalorder %v4115_v26, 2576980378  ;;  %v2149_v41 = vxor.u32 %v1999_v34, %v1849_v23  ;;  %v2597_v48 = vxor.u32 %v2447_v37, %v2297_v17  ;;  %v830_v50 = vadd.f32 %v680_v56, %v5006_v16 }
  0x94   :  { %v3795_v42 = vsel %vm3235_vm3, %v3645_v33, 0.0  ;;  %v1428_v44 = vmul.f32 0.5, %v1278_v36  ;;  %v1279_v47 = vadd.f32 1.0, %v4294_v38  ;;  %vm5026_vm4 = vcmp.ge.s32.totalorder %v4116_v39, 2576980378 }
  0x95   :  { %3945 = vst [vmem:[#allocation9 + $0x98] sm:$0xff] %v3795_v42  ;;  %v2298_v52 = vmul.u32 2146121005, %v2148_v30  ;;  %v532_v14 = vmul.f32 %v382_v59, %v5018_v7  ;;  %v2747_v9 = vmul.u32 2221713035, %v2597_v48  ;;  %v1713_v11 = vadd.s32 32, %v4663_v1 }
  0x96   :  { %v1578_v20 = vmul.f32 %v1428_v44, %v4979_v29  ;;  %v1429_v31 = vmul.f32 0.5, %v1279_v47  ;;  %v681_v62 = vmul.f32 0.044715, %v531_v15  ;;  %v980_v8 = vmul.f32 0.7978846, %v830_v50  ;;  %v70_v29 = vld [vmem:[#allocation4 + $0xd0] sm:$0xff] }
  0x97   :  { %v2448_v55 = vshrl.u32 %v2298_v52, 15  ;;  %v2299_v45 = vmul.u32 2146121005, %v2149_v41  ;;  %v2897_v35 = vshrl.u32 %v2747_v9, 16  ;;  %v682_v53 = vmul.f32 0.044715, %v532_v14 }
  0x98   :  { %v3646_v28 = vmul.f32 1.1111112, %v1578_v20  ;;  %v1579_v33 = vmul.f32 %v1429_v31, %v4986_v57  ;;  %v831_v60 = vadd.f32 %v681_v62, %v5013_v0  ;;  %4295 = vtanh.f32 %v980_v8 }
  0x99   :  { %v2598_v46 = vxor.u32 %v2448_v55, %v2298_v52  ;;  %v2449_v61 = vshrl.u32 %v2299_v45, 15  ;;  %v3047_v4 = vxor.u32 %v2897_v35, %v2747_v9  ;;  %v832_v57 = vadd.f32 %v682_v53, %v5018_v7 }
  0x9a   :  { %v3796_v2 = vsel %vm5026_vm4, %v3646_v28, 0.0  ;;  %v3647_v6 = vmul.f32 1.1111112, %v1579_v33  ;;  %v981_v23 = vmul.f32 0.7978846, %v831_v60  ;;  %v5040_v26 = vadd.f32 %v4697_v21, %v69_v63 }
  0x9b   :  { %3946 = vst [vmem:[#allocation9 + $0xa0] sm:$0xff] %v3796_v2  ;;  %v2748_v17 = vmul.u32 2221713035, %v2598_v46  ;;  %v2599_v58 = vxor.u32 %v2449_v61, %v2299_v45  ;;  %v1773_v22 = vmul.u32 2654435761, %v1713_v11  ;;  %v4117_v10 = vxor.u32 2147483648, %v3047_v4 }
  0x9c   :  { %4297 = vtanh.f32 %v981_v23  ;;  %v5043_v32 = vadd.f32 %v4702_v25, %v70_v29  ;;  %v982_v36 = vmul.f32 0.7978846, %v832_v57  ;;  %v383_v56 = vmul.f32 %v5040_v26, %v5040_v26 }
  0x9d   :  { %v2898_v34 = vshrl.u32 %v2748_v17, 16  ;;  %v2749_v59 = vmul.u32 2221713035, %v2599_v58  ;;  %v5046_v37 = vadd.s32 %v4668_v3, %v1773_v22  ;;  %vm3241_vm5 = vcmp.ge.s32.totalorder %v4117_v10, 2576980378 }
  0x9e   :  { %v384_v30 = vmul.f32 %v5043_v32, %v5043_v32  ;;  %v5053_v38 = vadd.f32 %v4707_v27, %v71_v24  ;;  %v4296_v39 = vpop.eup %4295  ;;  %v3797_v15 = vsel %vm3241_vm5, %v3647_v6, 0.0  ;;  %4299 = vtanh.f32 %v982_v36 }
  0x9f   :  { %v3048_v41 = vxor.u32 %v2898_v34, %v2748_v17  ;;  %v2899_v42 = vshrl.u32 %v2749_v59, 16  ;;  %3947 = vst [vmem:[#allocation9 + $0xa8] sm:$0xff] %v3797_v15  ;;  %v1280_v44 = vadd.f32 1.0, %v4296_v39  ;;  %v1850_v47 = vadd.s32 %v4671_v5, %v5046_v37  ;;  %v72_v15 = vld [vmem:[#allocation4 + $0xe0] sm:$0xff] }
  0xa0   :  { %v533_v48 = vmul.f32 %v383_v56, %v5040_v26  ;;  %v1851_v49 = vadd.s32 %v4680_v12, %v5046_v37  ;;  %v534_v14 = vmul.f32 %v384_v30, %v5043_v32  ;;  %v1852_v20 = vadd.s32 %v4682_v13, %v5046_v37 }
  0xa1   :  { %v4118_v50 = vxor.u32 2147483648, %v3048_v41  ;;  %v3049_v52 = vxor.u32 %v2899_v42, %v2749_v59  ;;  %v1430_v9 = vmul.f32 0.5, %v1280_v44  ;;  %v2000_v62 = vshrl.u32 %v1850_v47, 16 }
  0xa2   :  { %v4298_v31 = vpop.eup %4297  ;;  %v683_v8 = vmul.f32 0.044715, %v533_v48  ;;  %v2001_v55 = vshrl.u32 %v1851_v49, 16  ;;  %v684_v33 = vmul.f32 0.044715, %v534_v14  ;;  %v2002_v4 = vshrl.u32 %v1852_v20, 16 }
  0xa3   :  { %vm5063_vm6 = vcmp.ge.s32.totalorder %v4118_v50, 2576980378  ;;  %v1281_v11 = vadd.f32 1.0, %v4298_v31  ;;  %v4119_v28 = vxor.u32 2147483648, %v3049_v52  ;;  %v1580_v35 = vmul.f32 %v1430_v9, %v5006_v16  ;;  %v73_v50 = vld [vmem:[#allocation4 + $0xe8] sm:$0xff] }
  0xa4   :  { %v2150_v60 = vxor.u32 %v2000_v62, %v1850_v47  ;;  %v833_v46 = vadd.f32 %v683_v8, %v5040_v26  ;;  %v2151_v61 = vxor.u32 %v2001_v55, %v1851_v49  ;;  %v4300_v53 = vpop.eup %4299  ;;  %v834_v2 = vadd.f32 %v684_v33, %v5043_v32 }
  0xa5   :  { %v1431_v63 = vmul.f32 0.5, %v1281_v11  ;;  %vm5069_vm7 = vcmp.ge.s32.totalorder %v4119_v28, 2576980378  ;;  %v3648_v6 = vmul.f32 1.1111112, %v1580_v35  ;;  %v1282_v23 = vadd.f32 1.0, %v4300_v53 }
  0xa6   :  { %v2300_v17 = vmul.u32 2146121005, %v2150_v60  ;;  %v385_v58 = vmul.f32 %v5053_v38, %v5053_v38  ;;  %v983_v57 = vmul.f32 0.7978846, %v833_v46  ;;  %v2301_v22 = vmul.u32 2146121005, %v2151_v61 }
  0xa7   :  { %v1581_v16 = vmul.f32 %v1431_v63, %v5013_v0  ;;  %v984_v24 = vmul.f32 0.7978846, %v834_v2  ;;  %v3798_v10 = vsel %vm5063_vm6, %v3648_v6, 0.0  ;;  %v1432_v34 = vmul.f32 0.5, %v1282_v23 }
  0xa8   :  { %v2450_v59 = vshrl.u32 %v2300_v17, 15  ;;  %v2152_v36 = vxor.u32 %v2002_v4, %v1852_v20  ;;  %3948 = vst [vmem:[#allocation9 + $0xb0] sm:$0xff] %v3798_v10  ;;  %4301 = vtanh.f32 %v983_v57  ;;  %v2451_v30 = vshrl.u32 %v2301_v22, 15 }
  0xa9   :  { %v3649_v56 = vmul.f32 1.1111112, %v1581_v16  ;;  %v535_v39 = vmul.f32 %v385_v58, %v5053_v38  ;;  %v1582_v41 = vmul.f32 %v1432_v34, %v5018_v7  ;;  %4303 = vtanh.f32 %v984_v24 }
  0xaa   :  { %v2600_v42 = vxor.u32 %v2450_v59, %v2300_v17  ;;  %v2302_v0 = vmul.u32 2146121005, %v2152_v36  ;;  %v2601_v47 = vxor.u32 %v2451_v30, %v2301_v22  ;;  %v1853_v49 = vadd.s32 %v4689_v18, %v5046_v37 }
  0xab   :  { %v3799_v44 = vsel %vm5069_vm7, %v3649_v56, 0.0  ;;  %v685_v48 = vmul.f32 0.044715, %v535_v39  ;;  %v3650_v14 = vmul.f32 1.1111112, %v1582_v41  ;;  %v5086_v31 = vadd.f32 %v4746_v40, %v72_v15  ;;  %v76_v15 = vld [vmem:[#allocation4 + $0x100] sm:$0xff] }
  0xac   :  { %3949 = vst [vmem:[#allocation9 + $0xb8] sm:$0xff] %v3799_v44  ;;  %v2750_v52 = vmul.u32 2221713035, %v2600_v42  ;;  %v2452_v20 = vshrl.u32 %v2302_v0, 15  ;;  %v2751_v7 = vmul.u32 2221713035, %v2601_v47  ;;  %v1854_v8 = vadd.s32 %v4749_v43, %v5046_v37 }
  0xad   :  { %v835_v9 = vadd.f32 %v685_v48, %v5053_v38  ;;  %v2003_v62 = vshrl.u32 %v1853_v49, 16  ;;  %v386_v11 = vmul.f32 %v5086_v31, %v5086_v31  ;;  %v5094_v28 = vadd.f32 %v4757_v51, %v73_v50 }
  0xae   :  { %v2900_v55 = vshrl.u32 %v2750_v52, 16  ;;  %v2602_v45 = vxor.u32 %v2452_v20, %v2302_v0  ;;  %v4302_v33 = vpop.eup %4301  ;;  %v2901_v35 = vshrl.u32 %v2751_v7, 16  ;;  %v2004_v61 = vshrl.u32 %v1854_v8, 16  ;;  %v74_v0 = vld [vmem:[#allocation4 + $0xf0] sm:$0xff] }
  0xaf   :  { %v985_v60 = vmul.f32 0.7978846, %v835_v9  ;;  %v2153_v46 = vxor.u32 %v2003_v62, %v1853_v49  ;;  %v4304_v53 = vpop.eup %4303  ;;  %v1283_v29 = vadd.f32 1.0, %v4302_v33  ;;  %v536_v4 = vmul.f32 %v386_v11, %v5086_v31  ;;  %v75_v9 = vld [vmem:[#allocation4 + $0xf8] sm:$0xff] }
  0xb0   :  { %v3050_v63 = vxor.u32 %v2900_v55, %v2750_v52  ;;  %v2752_v2 = vmul.u32 2221713035, %v2602_v45  ;;  %v3051_v6 = vxor.u32 %v2901_v35, %v2751_v7  ;;  %v1284_v23 = vadd.f32 1.0, %v4304_v53 }
  0xb1   :  { %4305 = vtanh.f32 %v985_v60  ;;  %v2303_v17 = vmul.u32 2146121005, %v2153_v46  ;;  %v1433_v16 = vmul.f32 0.5, %v1283_v29  ;;  %v686_v22 = vmul.f32 0.044715, %v536_v4 }
  0xb2   :  { %v4120_v58 = vxor.u32 2147483648, %v3050_v63  ;;  %v2902_v57 = vshrl.u32 %v2752_v2, 16  ;;  %v4121_v24 = vxor.u32 2147483648, %v3051_v6  ;;  %v1434_v10 = vmul.f32 0.5, %v1284_v23 }
  0xb3   :  { %v2453_v34 = vshrl.u32 %v2303_v17, 15  ;;  %v2154_v59 = vxor.u32 %v2004_v61, %v1854_v8  ;;  %v1583_v36 = vmul.f32 %v1433_v16, %v5040_v26  ;;  %v836_v30 = vadd.f32 %v686_v22, %v5086_v31 }
  0xb4   :  { %vm3250_vm8 = vcmp.ge.s32.totalorder %v4120_v58, 2576980378  ;;  %v3052_v56 = vxor.u32 %v2902_v57, %v2752_v2  ;;  %vm5099_vm9 = vcmp.ge.s32.totalorder %v4121_v24, 2576980378  ;;  %v1584_v41 = vmul.f32 %v1434_v10, %v5043_v32 }
  0xb5   :  { %v3800_v39 = vsel %vm3250_vm8, %v3650_v14, 0.0  ;;  %v2603_v42 = vxor.u32 %v2453_v34, %v2303_v17  ;;  %v3651_v44 = vmul.f32 1.1111112, %v1583_v36  ;;  %v986_v48 = vmul.f32 0.7978846, %v836_v30 }
  0xb6   :  { %3950 = vst [vmem:[#allocation9 + $0xc0] sm:$0xff] %v3800_v39  ;;  %v4122_v47 = vxor.u32 2147483648, %v3052_v56  ;;  %v387_v49 = vmul.f32 %v5094_v28, %v5094_v28  ;;  %v3652_v50 = vmul.f32 1.1111112, %v1584_v41  ;;  %v2304_v20 = vmul.u32 2146121005, %v2154_v59 }
  0xb7   :  { %v4306_v26 = vpop.eup %4305  ;;  %v2753_v52 = vmul.u32 2221713035, %v2603_v42  ;;  %v1855_v14 = vadd.s32 %v4762_v54, %v5046_v37  ;;  %v3801_v7 = vsel %vm5099_vm9, %v3651_v44, 0.0  ;;  %4307 = vtanh.f32 %v986_v48 }
  0xb8   :  { %vm3256_vm10 = vcmp.ge.s32.totalorder %v4122_v47, 2576980378  ;;  %v1285_v32 = vadd.f32 1.0, %v4306_v26  ;;  %3951 = vst [vmem:[#allocation9 + $0xc8] sm:$0xff] %v3801_v7  ;;  %v2454_v55 = vshrl.u32 %v2304_v20, 15  ;;  %v537_v45 = vmul.f32 %v387_v49, %v5094_v28 }
  0xb9   :  { %v3802_v62 = vsel %vm3256_vm10, %v3652_v50, 0.0  ;;  %v2903_v8 = vshrl.u32 %v2753_v52, 16  ;;  %v2005_v33 = vshrl.u32 %v1855_v14, 16  ;;  %v5112_v35 = vadd.f32 %v4692_v19, %v74_v0 }
  0xba   :  { %3952 = vst [vmem:[#allocation9 + $0xd0] sm:$0xff] %v3802_v62  ;;  %v1435_v11 = vmul.f32 0.5, %v1285_v32  ;;  %v1714_v37 = vadd.s32 40, %v4663_v1  ;;  %v2604_v46 = vxor.u32 %v2454_v55, %v2304_v20  ;;  %v687_v61 = vmul.f32 0.044715, %v537_v45 }
  0xbb   :  { %v3053_v60 = vxor.u32 %v2903_v8, %v2753_v52  ;;  %v5116_v53 = vadd.f32 %v4697_v21, %v75_v9  ;;  %v2155_v29 = vxor.u32 %v2005_v33, %v1855_v14  ;;  %v388_v2 = vmul.f32 %v5112_v35, %v5112_v35  ;;  %v77_v33 = vld [vmem:[#allocation4 + $0x108] sm:$0xff] }
  0xbc   :  { %v1585_v63 = vmul.f32 %v1435_v11, %v5053_v38  ;;  %v1774_v4 = vmul.u32 2654435761, %v1714_v37  ;;  %v2754_v23 = vmul.u32 2221713035, %v2604_v46  ;;  %v837_v17 = vadd.f32 %v687_v61, %v5094_v28 }
  0xbd   :  { %v4123_v6 = vxor.u32 2147483648, %v3053_v60  ;;  %v389_v58 = vmul.f32 %v5116_v53, %v5116_v53  ;;  %v4308_v16 = vpop.eup %4307  ;;  %v2305_v22 = vmul.u32 2146121005, %v2155_v29  ;;  %v538_v24 = vmul.f32 %v388_v2, %v5112_v35 }
  0xbe   :  { %v3653_v57 = vmul.f32 1.1111112, %v1585_v63  ;;  %v5126_v10 = vadd.s32 %v4668_v3, %v1774_v4  ;;  %v1286_v38 = vadd.f32 1.0, %v4308_v16  ;;  %v2904_v34 = vshrl.u32 %v2754_v23, 16 }
  0xbf   :  { %vm3259_vm11 = vcmp.ge.s32.totalorder %v4123_v6, 2576980378  ;;  %v987_v59 = vmul.f32 0.7978846, %v837_v17  ;;  %v2455_v56 = vshrl.u32 %v2305_v22, 15  ;;  %v539_v0 = vmul.f32 %v389_v58, %v5116_v53 }
  0xc0   :  { %v3803_v36 = vsel %vm3259_vm11, %v3653_v57, 0.0  ;;  %v688_v30 = vmul.f32 0.044715, %v538_v24  ;;  %v1856_v39 = vadd.s32 %v4671_v5, %v5126_v10  ;;  %v1436_v41 = vmul.f32 0.5, %v1286_v38 }
  0xc1   :  { %3953 = vst [vmem:[#allocation9 + $0xd8] sm:$0xff] %v3803_v36  ;;  %v3054_v42 = vxor.u32 %v2904_v34, %v2754_v23  ;;  %4309 = vtanh.f32 %v987_v59  ;;  %v2605_v44 = vxor.u32 %v2455_v56, %v2305_v22  ;;  %v1857_v49 = vadd.s32 %v4680_v12, %v5126_v10 }
  0xc2   :  { %v838_v47 = vadd.f32 %v688_v30, %v5112_v35  ;;  %v2006_v48 = vshrl.u32 %v1856_v39, 16  ;;  %v1586_v26 = vmul.f32 %v1436_v41, %v5086_v31  ;;  %v689_v52 = vmul.f32 0.044715, %v539_v0 }
  0xc3   :  { %v4124_v50 = vxor.u32 2147483648, %v3054_v42  ;;  %v5136_v20 = vadd.f32 %v4702_v25, %v76_v15  ;;  %v2755_v14 = vmul.u32 2221713035, %v2605_v44  ;;  %v2007_v9 = vshrl.u32 %v1857_v49, 16 }
  0xc4   :  { %v988_v7 = vmul.f32 0.7978846, %v838_v47  ;;  %v2156_v32 = vxor.u32 %v2006_v48, %v1856_v39  ;;  %v3654_v62 = vmul.f32 1.1111112, %v1586_v26  ;;  %v839_v8 = vadd.f32 %v689_v52, %v5116_v53  ;;  %v80_v39 = vld [vmem:[#allocation4 + $0x120] sm:$0xff] }
  0xc5   :  { %vm3262_vm12 = vcmp.ge.s32.totalorder %v4124_v50, 2576980378  ;;  %v390_v55 = vmul.f32 %v5136_v20, %v5136_v20  ;;  %v2905_v45 = vshrl.u32 %v2755_v14, 16  ;;  %v2157_v31 = vxor.u32 %v2007_v9, %v1857_v49 }
  0xc6   :  { %4311 = vtanh.f32 %v988_v7  ;;  %v2306_v11 = vmul.u32 2146121005, %v2156_v32  ;;  %v3804_v60 = vsel %vm3262_vm12, %v3654_v62, 0.0  ;;  %v989_v46 = vmul.f32 0.7978846, %v839_v8  ;;  %v78_v32 = vld [vmem:[#allocation4 + $0x110] sm:$0xff] }
  0xc7   :  { %v4310_v37 = vpop.eup %4309  ;;  %v540_v61 = vmul.f32 %v390_v55, %v5136_v20  ;;  %v1858_v63 = vadd.s32 %v4682_v13, %v5126_v10  ;;  %3954 = vst [vmem:[#allocation9 + $0xe0] sm:$0xff] %v3804_v60  ;;  %v3055_v2 = vxor.u32 %v2905_v45, %v2755_v14  ;;  %v2307_v6 = vmul.u32 2146121005, %v2157_v31 }
  0xc8   :  { %v1287_v29 = vadd.f32 1.0, %v4310_v37  ;;  %v2456_v4 = vshrl.u32 %v2306_v11, 15  ;;  %4313 = vtanh.f32 %v989_v46  ;;  %v5145_v58 = vadd.f32 %v4707_v27, %v77_v33 }
  0xc9   :  { %v690_v23 = vmul.f32 0.044715, %v540_v61  ;;  %v2008_v17 = vshrl.u32 %v1858_v63, 16  ;;  %v4125_v57 = vxor.u32 2147483648, %v3055_v2  ;;  %v2457_v24 = vshrl.u32 %v2307_v6, 15 }
  0xca   :  { %v1437_v16 = vmul.f32 0.5, %v1287_v29  ;;  %v2606_v22 = vxor.u32 %v2456_v4, %v2306_v11  ;;  %v391_v59 = vmul.f32 %v5145_v58, %v5145_v58  ;;  %v1859_v36 = vadd.s32 %v4689_v18, %v5126_v10 }
  0xcb   :  { %v840_v38 = vadd.f32 %v690_v23, %v5136_v20  ;;  %v2158_v34 = vxor.u32 %v2008_v17, %v1858_v63  ;;  %vm5153_vm13 = vcmp.ge.s32.totalorder %v4125_v57, 2576980378  ;;  %v2607_v41 = vxor.u32 %v2457_v24, %v2307_v6  ;;  %v79_v63 = vld [vmem:[#allocation4 + $0x118] sm:$0xff] }
  0xcc   :  { %v4312_v56 = vpop.eup %4311  ;;  %v1587_v30 = vmul.f32 %v1437_v16, %v5094_v28  ;;  %v2756_v15 = vmul.u32 2221713035, %v2606_v22  ;;  %v541_v47 = vmul.f32 %v391_v59, %v5145_v58  ;;  %v2009_v50 = vshrl.u32 %v1859_v36, 16 }
  0xcd   :  { %v1288_v42 = vadd.f32 1.0, %v4312_v56  ;;  %v990_v0 = vmul.f32 0.7978846, %v840_v38  ;;  %v2308_v44 = vmul.u32 2146121005, %v2158_v34  ;;  %v5163_v61 = vadd.f32 %v4746_v40, %v78_v32 }
  0xce   :  { %v3655_v48 = vmul.f32 1.1111112, %v1587_v30  ;;  %v2906_v49 = vshrl.u32 %v2756_v15, 16  ;;  %v2757_v26 = vmul.u32 2221713035, %v2607_v41  ;;  %v4314_v52 = vpop.eup %4313  ;;  %v2159_v33 = vxor.u32 %v2009_v50, %v1859_v36 }
  0xcf   :  { %v1438_v14 = vmul.f32 0.5, %v1288_v42  ;;  %4315 = vtanh.f32 %v990_v0  ;;  %v2458_v7 = vshrl.u32 %v2308_v44, 15  ;;  %v691_v28 = vmul.f32 0.044715, %v541_v47 }
  0xd0   :  { %v3805_v9 = vsel %vm5153_vm13, %v3655_v48, 0.0  ;;  %v3056_v62 = vxor.u32 %v2906_v49, %v2756_v15  ;;  %v1289_v8 = vadd.f32 1.0, %v4314_v52  ;;  %v2907_v55 = vshrl.u32 %v2757_v26, 16 }
  0xd1   :  { %3955 = vst [vmem:[#allocation9 + $0xe8] sm:$0xff] %v3805_v9  ;;  %v1588_v45 = vmul.f32 %v1438_v14, %v5112_v35  ;;  %v2608_v11 = vxor.u32 %v2458_v7, %v2308_v44  ;;  %v841_v31 = vadd.f32 %v691_v28, %v5145_v58  ;;  %v1860_v6 = vadd.s32 %v4749_v43, %v5126_v10 }
  0xd2   :  { %v4126_v37 = vxor.u32 2147483648, %v3056_v62  ;;  %v1439_v60 = vmul.f32 0.5, %v1289_v8  ;;  %v3057_v46 = vxor.u32 %v2907_v55, %v2757_v26  ;;  %v2309_v17 = vmul.u32 2146121005, %v2159_v33 }
  0xd3   :  { %v3656_v29 = vmul.f32 1.1111112, %v1588_v45  ;;  %v2758_v2 = vmul.u32 2221713035, %v2608_v11  ;;  %v991_v4 = vmul.f32 0.7978846, %v841_v31  ;;  %v392_v24 = vmul.f32 %v5163_v61, %v5163_v61 }
  0xd4   :  { %vm3268_vm14 = vcmp.ge.s32.totalorder %v4126_v37, 2576980378  ;;  %v1589_v35 = vmul.f32 %v1439_v60, %v5116_v53  ;;  %v4127_v23 = vxor.u32 2147483648, %v3057_v46  ;;  %v5171_v59 = vadd.f32 %v4757_v51, %v79_v63 }
  0xd5   :  { %v4316_v16 = vpop.eup %4315  ;;  %v3806_v57 = vsel %vm3268_vm14, %v3656_v29, 0.0  ;;  %v2908_v22 = vshrl.u32 %v2758_v2, 16  ;;  %4317 = vtanh.f32 %v991_v4  ;;  %v2459_v56 = vshrl.u32 %v2309_v17, 15  ;;  %v81_v29 = vld [vmem:[#allocation4 + $0x128] sm:$0xff] }
  0xd6   :  { %3956 = vst [vmem:[#allocation9 + $0xf0] sm:$0xff] %v3806_v57  ;;  %vm3271_vm15 = vcmp.ge.s32.totalorder %v4127_v23, 2576980378  ;;  %v3657_v38 = vmul.f32 1.1111112, %v1589_v35  ;;  %v1290_v34 = vadd.f32 1.0, %v4316_v16  ;;  %v542_v53 = vmul.f32 %v392_v24, %v5163_v61 }
  0xd7   :  { %v3058_v36 = vxor.u32 %v2908_v22, %v2758_v2  ;;  %v2010_v30 = vshrl.u32 %v1860_v6, 16  ;;  %v393_v42 = vmul.f32 %v5171_v59, %v5171_v59  ;;  %v1861_v0 = vadd.s32 %v4762_v54, %v5126_v10 }
  0xd8   :  { %v3807_v15 = vsel %vm3271_vm15, %v3657_v38, 0.0  ;;  %v1440_v41 = vmul.f32 0.5, %v1290_v34  ;;  %v2609_v47 = vxor.u32 %v2459_v56, %v2309_v17  ;;  %v692_v48 = vmul.f32 0.044715, %v542_v53  ;;  %v82_v34 = vld [vmem:[#allocation4 + $0x130] sm:$0xff] }
  0xd9   :  { %3957 = vst [vmem:[#allocation9 + $0xf8] sm:$0xff] %v3807_v15  ;;  %v4128_v44 = vxor.u32 2147483648, %v3058_v36  ;;  %v2160_v49 = vxor.u32 %v2010_v30, %v1860_v6  ;;  %v543_v50 = vmul.f32 %v393_v42, %v5171_v59  ;;  %v2011_v52 = vshrl.u32 %v1861_v0, 16  ;;  %v83_v30 = vld [vmem:[#allocation4 + $0x138] sm:$0xff] }
  0xda   :  { %v1590_v26 = vmul.f32 %v1440_v41, %v5136_v20  ;;  %v5181_v14 = vadd.f32 %v4692_v19, %v80_v39  ;;  %v2759_v32 = vmul.u32 2221713035, %v2609_v47  ;;  %v842_v10 = vadd.f32 %v692_v48, %v5163_v61 }
  0xdb   :  { %v4318_v7 = vpop.eup %4317  ;;  %vm5183_vm0 = vcmp.ge.s32.totalorder %v4128_v44, 2576980378  ;;  %v2310_v9 = vmul.u32 2146121005, %v2160_v49  ;;  %v693_v55 = vmul.f32 0.044715, %v543_v50  ;;  %v2161_v45 = vxor.u32 %v2011_v52, %v1861_v0 }
  0xdc   :  { %v3658_v62 = vmul.f32 1.1111112, %v1590_v26  ;;  %v1291_v8 = vadd.f32 1.0, %v4318_v7  ;;  %v2909_v20 = vshrl.u32 %v2759_v32, 16  ;;  %v992_v11 = vmul.f32 0.7978846, %v842_v10 }
  0xdd   :  { %v2460_v31 = vshrl.u32 %v2310_v9, 15  ;;  %v394_v33 = vmul.f32 %v5181_v14, %v5181_v14  ;;  %v843_v46 = vadd.f32 %v693_v55, %v5171_v59  ;;  %v2311_v63 = vmul.u32 2146121005, %v2161_v45 }
  0xde   :  { %v3808_v37 = vsel %vm5183_vm0, %v3658_v62, 0.0  ;;  %v1441_v60 = vmul.f32 0.5, %v1291_v8  ;;  %v3059_v2 = vxor.u32 %v2909_v20, %v2759_v32  ;;  %4319 = vtanh.f32 %v992_v11 }
  0xdf   :  { %3958 = vst [vmem:[#allocation9 + $0x100] sm:$0xff] %v3808_v37  ;;  %v2610_v4 = vxor.u32 %v2460_v31, %v2310_v9  ;;  %v544_v6 = vmul.f32 %v394_v33, %v5181_v14  ;;  %v993_v23 = vmul.f32 0.7978846, %v843_v46  ;;  %v2461_v17 = vshrl.u32 %v2311_v63, 15 }
  0xe0   :  { %v1591_v35 = vmul.f32 %v1441_v60, %v5145_v58  ;;  %v1715_v16 = vadd.s32 48, %v4663_v1  ;;  %v4129_v57 = vxor.u32 2147483648, %v3059_v2  ;;  %v5197_v38 = vadd.f32 %v4697_v21, %v81_v29 }
  0xe1   :  { %v2760_v22 = vmul.u32 2221713035, %v2610_v4  ;;  %v694_v24 = vmul.f32 0.044715, %v544_v6  ;;  %4321 = vtanh.f32 %v993_v23  ;;  %v2611_v56 = vxor.u32 %v2461_v17, %v2311_v63 }
  0xe2   :  { %v3659_v36 = vmul.f32 1.1111112, %v1591_v35  ;;  %v1775_v53 = vmul.u32 2654435761, %v1715_v16  ;;  %vm3277_vm1 = vcmp.ge.s32.totalorder %v4129_v57, 2576980378  ;;  %v395_v15 = vmul.f32 %v5197_v38, %v5197_v38 }
  0xe3   :  { %v2910_v39 = vshrl.u32 %v2760_v22, 16  ;;  %v844_v58 = vadd.f32 %v694_v24, %v5181_v14  ;;  %v2761_v42 = vmul.u32 2221713035, %v2611_v56  ;;  %v5206_v44 = vadd.f32 %v4702_v25, %v82_v34 }
  0xe4   :  { %v3809_v41 = vsel %vm3277_vm1, %v3659_v36, 0.0  ;;  %v5203_v0 = vadd.s32 %v4668_v3, %v1775_v53  ;;  %v4320_v47 = vpop.eup %4319  ;;  %v545_v26 = vmul.f32 %v395_v15, %v5197_v38  ;;  %v5210_v50 = vadd.f32 %v4707_v27, %v83_v30 }
  0xe5   :  { %3959 = vst [vmem:[#allocation9 + $0x108] sm:$0xff] %v3809_v41  ;;  %v3060_v48 = vxor.u32 %v2910_v39, %v2760_v22  ;;  %v994_v49 = vmul.f32 0.7978846, %v844_v58  ;;  %v1292_v52 = vadd.f32 1.0, %v4320_v47  ;;  %v2911_v7 = vshrl.u32 %v2761_v42, 16 }
  0xe6   :  { %v1862_v28 = vadd.s32 %v4671_v5, %v5203_v0  ;;  %v1863_v32 = vadd.s32 %v4680_v12, %v5203_v0  ;;  %v695_v9 = vmul.f32 0.044715, %v545_v26  ;;  %v396_v62 = vmul.f32 %v5206_v44, %v5206_v44  ;;  %v84_v26 = vld [vmem:[#allocation4 + $0x140] sm:$0xff] }
  0xe7   :  { %v4130_v10 = vxor.u32 2147483648, %v3060_v48  ;;  %4323 = vtanh.f32 %v994_v49  ;;  %v4322_v8 = vpop.eup %4321  ;;  %v1442_v55 = vmul.f32 0.5, %v1292_v52  ;;  %v3061_v45 = vxor.u32 %v2911_v7, %v2761_v42 }
  0xe8   :  { %v2012_v20 = vshrl.u32 %v1862_v28, 16  ;;  %v2013_v11 = vshrl.u32 %v1863_v32, 16  ;;  %v1293_v33 = vadd.f32 1.0, %v4322_v8  ;;  %v845_v37 = vadd.f32 %v695_v9, %v5197_v38 }
  0xe9   :  { %vm5218_vm2 = vcmp.ge.s32.totalorder %v4130_v10, 2576980378  ;;  %v546_v60 = vmul.f32 %v396_v62, %v5206_v44  ;;  %v1592_v46 = vmul.f32 %v1442_v55, %v5163_v61  ;;  %v4131_v63 = vxor.u32 2147483648, %v3061_v45 }
  0xea   :  { %v2162_v29 = vxor.u32 %v2012_v20, %v1862_v28  ;;  %v2163_v2 = vxor.u32 %v2013_v11, %v1863_v32  ;;  %v1443_v4 = vmul.f32 0.5, %v1293_v33  ;;  %v995_v6 = vmul.f32 0.7978846, %v845_v37 }
  0xeb   :  { %v696_v35 = vmul.f32 0.044715, %v546_v60  ;;  %v1864_v23 = vadd.s32 %v4682_v13, %v5203_v0  ;;  %v3660_v17 = vmul.f32 1.1111112, %v1592_v46  ;;  %vm5227_vm3 = vcmp.ge.s32.totalorder %v4131_v63, 2576980378 }
  0xec   :  { %v2312_v57 = vmul.u32 2146121005, %v2162_v29  ;;  %v397_v22 = vmul.f32 %v5210_v50, %v5210_v50  ;;  %v1593_v61 = vmul.f32 %v1443_v4, %v5171_v59  ;;  %4325 = vtanh.f32 %v995_v6 }
  0xed   :  { %v4324_v24 = vpop.eup %4323  ;;  %v2313_v34 = vmul.u32 2146121005, %v2163_v2  ;;  %v846_v36 = vadd.f32 %v696_v35, %v5206_v44  ;;  %v3810_v56 = vsel %vm5218_vm2, %v3660_v17, 0.0  ;;  %v2014_v39 = vshrl.u32 %v1864_v23, 16 }
  0xee   :  { %v1294_v53 = vadd.f32 1.0, %v4324_v24  ;;  %v2462_v30 = vshrl.u32 %v2312_v57, 15  ;;  %3960 = vst [vmem:[#allocation9 + $0x110] sm:$0xff] %v3810_v56  ;;  %v3661_v58 = vmul.f32 1.1111112, %v1593_v61  ;;  %v547_v42 = vmul.f32 %v397_v22, %v5210_v50 }
  0xef   :  { %v2463_v15 = vshrl.u32 %v2313_v34, 15  ;;  %v996_v41 = vmul.f32 0.7978846, %v846_v36  ;;  %v2164_v49 = vxor.u32 %v2014_v39, %v1864_v23  ;;  %v1865_v59 = vadd.s32 %v4689_v18, %v5203_v0  ;;  %v85_v39 = vld [vmem:[#allocation4 + $0x148] sm:$0xff] }
  0xf0   :  { %v1444_v47 = vmul.f32 0.5, %v1294_v53  ;;  %v2612_v48 = vxor.u32 %v2462_v30, %v2312_v57  ;;  %v3811_v52 = vsel %vm5227_vm3, %v3661_v58, 0.0  ;;  %v697_v28 = vmul.f32 0.044715, %v547_v42 }
  0xf1   :  { %v2613_v7 = vxor.u32 %v2463_v15, %v2313_v34  ;;  %4327 = vtanh.f32 %v996_v41  ;;  %3961 = vst [vmem:[#allocation9 + $0x118] sm:$0xff] %v3811_v52  ;;  %v2314_v9 = vmul.u32 2146121005, %v2164_v49  ;;  %v2015_v62 = vshrl.u32 %v1865_v59, 16 }
  0xf2   :  { %v1594_v32 = vmul.f32 %v1444_v47, %v5181_v14  ;;  %v2762_v10 = vmul.u32 2221713035, %v2612_v48  ;;  %v4326_v8 = vpop.eup %4325  ;;  %v847_v45 = vadd.f32 %v697_v28, %v5210_v50  ;;  %v5245_v20 = vadd.f32 %v4746_v40, %v84_v26 }
  0xf3   :  { %v2763_v55 = vmul.u32 2221713035, %v2613_v7  ;;  %v1866_v11 = vadd.s32 %v4749_v43, %v5203_v0  ;;  %v1295_v37 = vadd.f32 1.0, %v4326_v8  ;;  %v2464_v60 = vshrl.u32 %v2314_v9, 15 }
  0xf4   :  { %v2912_v31 = vshrl.u32 %v2762_v10, 16  ;;  %v3662_v33 = vmul.f32 1.1111112, %v1594_v32  ;;  %v997_v63 = vmul.f32 0.7978846, %v847_v45  ;;  %v2165_v14 = vxor.u32 %v2015_v62, %v1865_v59 }
  0xf5   :  { %v2913_v46 = vshrl.u32 %v2763_v55, 16  ;;  %v398_v29 = vmul.f32 %v5245_v20, %v5245_v20  ;;  %v1445_v4 = vmul.f32 0.5, %v1295_v37  ;;  %v2614_v6 = vxor.u32 %v2464_v60, %v2314_v9  ;;  %v86_v9 = vld [vmem:[#allocation4 + $0x150] sm:$0xff] }
  0xf6   :  { %v3062_v2 = vxor.u32 %v2912_v31, %v2762_v10  ;;  %v2016_v35 = vshrl.u32 %v1866_v11, 16  ;;  %4329 = vtanh.f32 %v997_v63  ;;  %v2315_v16 = vmul.u32 2146121005, %v2165_v14 }
  0xf7   :  { %v4328_v23 = vpop.eup %4327  ;;  %v3063_v17 = vxor.u32 %v2913_v46, %v2763_v55  ;;  %v548_v57 = vmul.f32 %v398_v29, %v5245_v20  ;;  %v1595_v24 = vmul.f32 %v1445_v4, %v5197_v38  ;;  %v2764_v34 = vmul.u32 2221713035, %v2614_v6  ;;  %v87_v46 = vld [vmem:[#allocation4 + $0x158] sm:$0xff] }
  0xf8   :  { %v4132_v22 = vxor.u32 2147483648, %v3062_v2  ;;  %v1296_v61 = vadd.f32 1.0, %v4328_v23  ;;  %v2465_v56 = vshrl.u32 %v2315_v16, 15  ;;  %v2166_v30 = vxor.u32 %v2016_v35, %v1866_v11 }
  0xf9   :  { %v4133_v36 = vxor.u32 2147483648, %v3063_v17  ;;  %v698_v53 = vmul.f32 0.044715, %v548_v57  ;;  %v3663_v58 = vmul.f32 1.1111112, %v1595_v24  ;;  %v2914_v41 = vshrl.u32 %v2764_v34, 16 }
  0xfa   :  { %vm3286_vm4 = vcmp.ge.s32.totalorder %v4132_v22, 2576980378  ;;  %v1446_v15 = vmul.f32 0.5, %v1296_v61  ;;  %v2615_v47 = vxor.u32 %v2465_v56, %v2315_v16  ;;  %v2316_v26 = vmul.u32 2146121005, %v2166_v30  ;;  %v88_v30 = vld [vmem:[#allocation4 + $0x160] sm:$0xff] }
  0xfb   :  { %v3812_v42 = vsel %vm3286_vm4, %v3662_v33, 0.0  ;;  %vm3289_vm5 = vcmp.ge.s32.totalorder %v4133_v36, 2576980378  ;;  %v848_v48 = vadd.f32 %v698_v53, %v5245_v20  ;;  %v3064_v59 = vxor.u32 %v2914_v41, %v2764_v34 }
  0xfc   :  { %3962 = vst [vmem:[#allocation9 + $0x120] sm:$0xff] %v3812_v42  ;;  %v3813_v49 = vsel %vm3289_vm5, %v3663_v58, 0.0  ;;  %v1596_v38 = vmul.f32 %v1446_v15, %v5206_v44  ;;  %v4330_v52 = vpop.eup %4329  ;;  %v2765_v7 = vmul.u32 2221713035, %v2615_v47  ;;  %v5256_v32 = vadd.f32 %v4757_v51, %v85_v39 }
  0xfd   :  { %3963 = vst [vmem:[#allocation9 + $0x128] sm:$0xff] %v3813_v49  ;;  %v998_v28 = vmul.f32 0.7978846, %v848_v48  ;;  %v1867_v10 = vadd.s32 %v4762_v54, %v5203_v0  ;;  %v4134_v62 = vxor.u32 2147483648, %v3064_v59  ;;  %v1297_v55 = vadd.f32 1.0, %v4330_v52 }
  0xfe   :  { %v3664_v8 = vmul.f32 1.1111112, %v1596_v38  ;;  %v2466_v45 = vshrl.u32 %v2316_v26, 15  ;;  %v2915_v11 = vshrl.u32 %v2765_v7, 16  ;;  %v399_v44 = vmul.f32 %v5256_v32, %v5256_v32 }
  0xff   :  { %4331 = vtanh.f32 %v998_v28  ;;  %v2017_v31 = vshrl.u32 %v1867_v10, 16  ;;  %vm3292_vm6 = vcmp.ge.s32.totalorder %v4134_v62, 2576980378  ;;  %v1447_v33 = vmul.f32 0.5, %v1297_v55 }
 0x100   :  { %v2616_v37 = vxor.u32 %v2466_v45, %v2316_v26  ;;  %v5263_v60 = vadd.f32 %v4692_v19, %v86_v9  ;;  %v3814_v63 = vsel %vm3292_vm6, %v3664_v8, 0.0  ;;  %v3065_v0 = vxor.u32 %v2915_v11, %v2765_v7 }
 0x101   :  { %v549_v14 = vmul.f32 %v399_v44, %v5256_v32  ;;  %v2167_v29 = vxor.u32 %v2017_v31, %v1867_v10  ;;  %3964 = vst [vmem:[#allocation9 + $0x130] sm:$0xff] %v3814_v63  ;;  %v1597_v2 = vmul.f32 %v1447_v33, %v5210_v50  ;;  %v1716_v35 = vadd.s32 56, %v4663_v1  ;;  %v89_v33 = vld [vmem:[#allocation4 + $0x168] sm:$0xff] }
 0x102   :  { %v2766_v4 = vmul.u32 2221713035, %v2616_v37  ;;  %v400_v6 = vmul.f32 %v5263_v60, %v5263_v60  ;;  %v4135_v23 = vxor.u32 2147483648, %v3065_v0  ;;  %v5271_v57 = vadd.f32 %v4697_v21, %v87_v46 }
 0x103   :  { %v699_v17 = vmul.f32 0.044715, %v549_v14  ;;  %v2317_v16 = vmul.u32 2146121005, %v2167_v29  ;;  %v3665_v22 = vmul.f32 1.1111112, %v1597_v2  ;;  %v5283_v52 = vadd.f32 %v4702_v25, %v88_v30 }
 0x104   :  { %v2916_v24 = vshrl.u32 %v2766_v4, 16  ;;  %v550_v61 = vmul.f32 %v400_v6, %v5263_v60  ;;  %v1776_v34 = vmul.u32 2654435761, %v1716_v35  ;;  %vm3295_vm7 = vcmp.ge.s32.totalorder %v4135_v23, 2576980378 }
 0x105   :  { %v4332_v36 = vpop.eup %4331  ;;  %v849_v50 = vadd.f32 %v699_v17, %v5256_v32  ;;  %v2467_v56 = vshrl.u32 %v2317_v16, 15  ;;  %v401_v53 = vmul.f32 %v5271_v57, %v5271_v57  ;;  %v3815_v39 = vsel %vm3295_vm7, %v3665_v22, 0.0 }
 0x106   :  { %v1298_v58 = vadd.f32 1.0, %v4332_v36  ;;  %v3066_v15 = vxor.u32 %v2916_v24, %v2766_v4  ;;  %v700_v41 = vmul.f32 0.044715, %v550_v61  ;;  %3965 = vst [vmem:[#allocation9 + $0x138] sm:$0xff] %v3815_v39  ;;  %v5278_v48 = vadd.s32 %v4668_v3, %v1776_v34 }
 0x107   :  { %v999_v42 = vmul.f32 0.7978846, %v849_v50  ;;  %v2617_v47 = vxor.u32 %v2467_v56, %v2317_v16  ;;  %v551_v49 = vmul.f32 %v401_v53, %v5271_v57  ;;  %v402_v31 = vmul.f32 %v5283_v52, %v5283_v52 }
 0x108   :  { %v1448_v38 = vmul.f32 0.5, %v1298_v58  ;;  %v4136_v59 = vxor.u32 2147483648, %v3066_v15  ;;  %v850_v26 = vadd.f32 %v700_v41, %v5263_v60  ;;  %v1868_v28 = vadd.s32 %v4671_v5, %v5278_v48 }
 0x109   :  { %4333 = vtanh.f32 %v999_v42  ;;  %v2767_v7 = vmul.u32 2221713035, %v2617_v47  ;;  %v701_v10 = vmul.f32 0.044715, %v551_v49  ;;  %v1869_v55 = vadd.s32 %v4680_v12, %v5278_v48 }
 0x10a   :  { %v1598_v9 = vmul.f32 %v1448_v38, %v5245_v20  ;;  %vm5288_vm8 = vcmp.ge.s32.totalorder %v4136_v59, 2576980378  ;;  %v1000_v8 = vmul.f32 0.7978846, %v850_v26  ;;  %v2018_v11 = vshrl.u32 %v1868_v28, 16 }
 0x10b   :  { %v2917_v45 = vshrl.u32 %v2767_v7, 16  ;;  %v851_v44 = vadd.f32 %v701_v10, %v5271_v57  ;;  %v2019_v46 = vshrl.u32 %v1869_v55, 16  ;;  %v1870_v20 = vadd.s32 %v4682_v13, %v5278_v48 }
 0x10c   :  { %v3666_v37 = vmul.f32 1.1111112, %v1598_v9  ;;  %4335 = vtanh.f32 %v1000_v8  ;;  %v2168_v0 = vxor.u32 %v2018_v11, %v1868_v28  ;;  %v552_v29 = vmul.f32 %v402_v31, %v5283_v52 }
 0x10d   :  { %v3067_v63 = vxor.u32 %v2917_v45, %v2767_v7  ;;  %v1001_v14 = vmul.f32 0.7978846, %v851_v44  ;;  %v2169_v4 = vxor.u32 %v2019_v46, %v1869_v55  ;;  %v2020_v6 = vshrl.u32 %v1870_v20, 16 }
 0x10e   :  { %v3816_v2 = vsel %vm5288_vm8, %v3666_v37, 0.0  ;;  %v5303_v35 = vadd.f32 %v4707_v27, %v89_v33  ;;  %v2318_v16 = vmul.u32 2146121005, %v2168_v0  ;;  %v702_v22 = vmul.f32 0.044715, %v552_v29 }
 0x10f   :  { %v4334_v23 = vpop.eup %4333  ;;  %3966 = vst [vmem:[#allocation9 + $0x140] sm:$0xff] %v3816_v2  ;;  %v4137_v17 = vxor.u32 2147483648, %v3067_v63  ;;  %4337 = vtanh.f32 %v1001_v14  ;;  %v2319_v61 = vmul.u32 2146121005, %v2169_v4  ;;  %v2170_v34 = vxor.u32 %v2020_v6, %v1870_v20  ;;  %v90_v63 = vld [vmem:[#allocation4 + $0x170] sm:$0xff] }
 0x110   :  { %v1299_v24 = vadd.f32 1.0, %v4334_v23  ;;  %v403_v36 = vmul.f32 %v5303_v35, %v5303_v35  ;;  %v2468_v56 = vshrl.u32 %v2318_v16, 15  ;;  %v852_v53 = vadd.f32 %v702_v22, %v5283_v52 }
 0x111   :  { %vm5307_vm9 = vcmp.ge.s32.totalorder %v4137_v17, 2576980378  ;;  %v1871_v30 = vadd.s32 %v4689_v18, %v5278_v48  ;;  %v2469_v15 = vshrl.u32 %v2319_v61, 15  ;;  %v2320_v41 = vmul.u32 2146121005, %v2170_v34 }
 0x112   :  { %v4336_v39 = vpop.eup %4335  ;;  %v1449_v58 = vmul.f32 0.5, %v1299_v24  ;;  %v553_v42 = vmul.f32 %v403_v36, %v5303_v35  ;;  %v2618_v49 = vxor.u32 %v2468_v56, %v2318_v16  ;;  %v1002_v38 = vmul.f32 0.7978846, %v852_v53 }
 0x113   :  { %v1300_v47 = vadd.f32 1.0, %v4336_v39  ;;  %v2021_v59 = vshrl.u32 %v1871_v30, 16  ;;  %v2619_v7 = vxor.u32 %v2469_v15, %v2319_v61  ;;  %v2470_v28 = vshrl.u32 %v2320_v41, 15  ;;  %v91_v15 = vld [vmem:[#allocation4 + $0x178] sm:$0xff] }
 0x114   :  { %v1599_v26 = vmul.f32 %v1449_v58, %v5256_v32  ;;  %v703_v10 = vmul.f32 0.044715, %v553_v42  ;;  %v2768_v8 = vmul.u32 2221713035, %v2618_v49  ;;  %4339 = vtanh.f32 %v1002_v38  ;;  %v92_v49 = vld [vmem:[#allocation4 + $0x180] sm:$0xff] }
 0x115   :  { %v4338_v9 = vpop.eup %4337  ;;  %v1450_v62 = vmul.f32 0.5, %v1300_v47  ;;  %v2171_v55 = vxor.u32 %v2021_v59, %v1871_v30  ;;  %v2769_v44 = vmul.u32 2221713035, %v2619_v7  ;;  %v2620_v31 = vxor.u32 %v2470_v28, %v2320_v41 }
 0x116   :  { %v3667_v45 = vmul.f32 1.1111112, %v1599_v26  ;;  %v1301_v11 = vadd.f32 1.0, %v4338_v9  ;;  %v2918_v37 = vshrl.u32 %v2768_v8, 16  ;;  %v853_v46 = vadd.f32 %v703_v10, %v5303_v35 }
 0x117   :  { %v1600_v33 = vmul.f32 %v1450_v62, %v5263_v60  ;;  %v2321_v20 = vmul.u32 2146121005, %v2171_v55  ;;  %v2919_v14 = vshrl.u32 %v2769_v44, 16  ;;  %v2770_v29 = vmul.u32 2221713035, %v2620_v31 }
 0x118   :  { %v3817_v32 = vsel %vm5307_vm9, %v3667_v45, 0.0  ;;  %v1451_v0 = vmul.f32 0.5, %v1301_v11  ;;  %v3068_v2 = vxor.u32 %v2918_v37, %v2768_v8  ;;  %v1003_v6 = vmul.f32 0.7978846, %v853_v46 }
 0x119   :  { %3967 = vst [vmem:[#allocation9 + $0x148] sm:$0xff] %v3817_v32  ;;  %v3668_v4 = vmul.f32 1.1111112, %v1600_v33  ;;  %v2471_v23 = vshrl.u32 %v2321_v20, 15  ;;  %v3069_v16 = vxor.u32 %v2919_v14, %v2769_v44  ;;  %v2920_v60 = vshrl.u32 %v2770_v29, 16 }
 0x11a   :  { %v1601_v17 = vmul.f32 %v1451_v0, %v5271_v57  ;;  %v5322_v22 = vadd.f32 %v4746_v40, %v90_v63  ;;  %v4340_v24 = vpop.eup %4339  ;;  %v4138_v61 = vxor.u32 2147483648, %v3068_v2  ;;  %4341 = vtanh.f32 %v1003_v6  ;;  %v93_v2 = vld [vmem:[#allocation4 + $0x188] sm:$0xff] }
 0x11b   :  { %v2621_v34 = vxor.u32 %v2471_v23, %v2321_v20  ;;  %v1872_v36 = vadd.s32 %v4749_v43, %v5278_v48  ;;  %v4139_v50 = vxor.u32 2147483648, %v3069_v16  ;;  %v1302_v53 = vadd.f32 1.0, %v4340_v24 }
 0x11c   :  { %v3669_v56 = vmul.f32 1.1111112, %v1601_v17  ;;  %v3070_v30 = vxor.u32 %v2920_v60, %v2770_v29  ;;  %vm3304_vm10 = vcmp.ge.s32.totalorder %v4138_v61, 2576980378  ;;  %v404_v57 = vmul.f32 %v5322_v22, %v5322_v22 }
 0x11d   :  { %v2771_v39 = vmul.u32 2221713035, %v2621_v34  ;;  %v2022_v58 = vshrl.u32 %v1872_v36, 16  ;;  %v3818_v41 = vsel %vm3304_vm10, %v3668_v4, 0.0  ;;  %vm3307_vm11 = vcmp.ge.s32.totalorder %v4139_v50, 2576980378 }
 0x11e   :  { %v1452_v42 = vmul.f32 0.5, %v1302_v53  ;;  %v4140_v47 = vxor.u32 2147483648, %v3070_v30  ;;  %3968 = vst [vmem:[#allocation9 + $0x150] sm:$0xff] %v3818_v41  ;;  %v3819_v38 = vsel %vm3307_vm11, %v3669_v56, 0.0  ;;  %v554_v26 = vmul.f32 %v404_v57, %v5322_v22  ;;  %v94_v34 = vld [vmem:[#allocation4 + $0x190] sm:$0xff] }
 0x11f   :  { %v2921_v59 = vshrl.u32 %v2771_v39, 16  ;;  %v2172_v7 = vxor.u32 %v2022_v58, %v1872_v36  ;;  %3969 = vst [vmem:[#allocation9 + $0x158] sm:$0xff] %v3819_v38  ;;  %v5335_v9 = vadd.f32 %v4757_v51, %v91_v15  ;;  %v1873_v62 = vadd.s32 %v4762_v54, %v5278_v48 }
 0x120   :  { %v1602_v28 = vmul.f32 %v1452_v42, %v5283_v52  ;;  %vm5330_vm12 = vcmp.ge.s32.totalorder %v4140_v47, 2576980378  ;;  %v4342_v8 = vpop.eup %4341  ;;  %v704_v45 = vmul.f32 0.044715, %v554_v26  ;;  %v5340_v44 = vadd.f32 %v4692_v19, %v92_v49 }
 0x121   :  { %v3071_v55 = vxor.u32 %v2921_v59, %v2771_v39  ;;  %v2322_v11 = vmul.u32 2146121005, %v2172_v7  ;;  %v1303_v33 = vadd.f32 1.0, %v4342_v8  ;;  %v405_v52 = vmul.f32 %v5335_v9, %v5335_v9 }
 0x122   :  { %v3670_v31 = vmul.f32 1.1111112, %v1602_v28  ;;  %v2023_v37 = vshrl.u32 %v1873_v62, 16  ;;  %v854_v20 = vadd.f32 %v704_v45, %v5322_v22  ;;  %v406_v48 = vmul.f32 %v5340_v44, %v5340_v44 }
 0x123   :  { %v4141_v46 = vxor.u32 2147483648, %v3071_v55  ;;  %v2472_v63 = vshrl.u32 %v2322_v11, 15  ;;  %v1453_v0 = vmul.f32 0.5, %v1303_v33  ;;  %v555_v14 = vmul.f32 %v405_v52, %v5335_v9 }
 0x124   :  { %v3820_v32 = vsel %vm5330_vm12, %v3670_v31, 0.0  ;;  %v2173_v29 = vxor.u32 %v2023_v37, %v1873_v62  ;;  %v1004_v6 = vmul.f32 0.7978846, %v854_v20  ;;  %v556_v17 = vmul.f32 %v406_v48, %v5340_v44  ;;  %v95_v20 = vld [vmem:[#allocation4 + $0x198] sm:$0xff] }
 0x125   :  { %3970 = vst [vmem:[#allocation9 + $0x160] sm:$0xff] %v3820_v32  ;;  %vm5350_vm13 = vcmp.ge.s32.totalorder %v4141_v46, 2576980378  ;;  %v2622_v23 = vxor.u32 %v2472_v63, %v2322_v11  ;;  %v1603_v16 = vmul.f32 %v1453_v0, %v5303_v35  ;;  %v705_v60 = vmul.f32 0.044715, %v555_v14 }
 0x126   :  { %v2323_v24 = vmul.u32 2146121005, %v2173_v29  ;;  %v1717_v61 = vadd.s32 64, %v4663_v1  ;;  %4343 = vtanh.f32 %v1004_v6  ;;  %v706_v50 = vmul.f32 0.044715, %v556_v17 }
 0x127   :  { %v2772_v36 = vmul.u32 2221713035, %v2622_v23  ;;  %v5358_v56 = vadd.f32 %v4697_v21, %v93_v2  ;;  %v3671_v53 = vmul.f32 1.1111112, %v1603_v16  ;;  %v855_v30 = vadd.f32 %v705_v60, %v5335_v9 }
 0x128   :  { %v2473_v39 = vshrl.u32 %v2323_v24, 15  ;;  %v1777_v57 = vmul.u32 2654435761, %v1717_v61  ;;  %v856_v15 = vadd.f32 %v706_v50, %v5340_v44  ;;  %v5365_v41 = vadd.f32 %v4702_v25, %v94_v34 }
 0x129   :  { %v2922_v58 = vshrl.u32 %v2772_v36, 16  ;;  %v407_v35 = vmul.f32 %v5358_v56, %v5358_v56  ;;  %v3821_v42 = vsel %vm5350_vm13, %v3671_v53, 0.0  ;;  %v1005_v47 = vmul.f32 0.7978846, %v855_v30 }
 0x12a   :  { %v2623_v49 = vxor.u32 %v2473_v39, %v2323_v24  ;;  %v5370_v38 = vadd.s32 %v4668_v3, %v1777_v57  ;;  %3971 = vst [vmem:[#allocation9 + $0x168] sm:$0xff] %v3821_v42  ;;  %v1006_v26 = vmul.f32 0.7978846, %v856_v15  ;;  %v408_v28 = vmul.f32 %v5365_v41, %v5365_v41 }
 0x12b   :  { %v3072_v59 = vxor.u32 %v2922_v58, %v2772_v36  ;;  %v557_v7 = vmul.f32 %v407_v35, %v5358_v56  ;;  %4345 = vtanh.f32 %v1005_v47  ;;  %v5389_v16 = vadd.f32 %v4707_v27, %v95_v20 }
 0x12c   :  { %v2773_v10 = vmul.u32 2221713035, %v2623_v49  ;;  %v1874_v62 = vadd.s32 %v4671_v5, %v5370_v38  ;;  %v1875_v8 = vadd.s32 %v4680_v12, %v5370_v38  ;;  %v4344_v55 = vpop.eup %4343  ;;  %4347 = vtanh.f32 %v1006_v26 }
 0x12d   :  { %v4142_v45 = vxor.u32 2147483648, %v3072_v59  ;;  %v707_v11 = vmul.f32 0.044715, %v557_v7  ;;  %v558_v31 = vmul.f32 %v408_v28, %v5365_v41  ;;  %v1304_v33 = vadd.f32 1.0, %v4344_v55 }
 0x12e   :  { %v2923_v52 = vshrl.u32 %v2773_v10, 16  ;;  %v2024_v37 = vshrl.u32 %v1874_v62, 16  ;;  %v2025_v46 = vshrl.u32 %v1875_v8, 16  ;;  %v1876_v0 = vadd.s32 %v4682_v13, %v5370_v38 }
 0x12f   :  { %vm5380_vm14 = vcmp.ge.s32.totalorder %v4142_v45, 2576980378  ;;  %v857_v48 = vadd.f32 %v707_v11, %v5358_v56  ;;  %v708_v32 = vmul.f32 0.044715, %v558_v31  ;;  %v1454_v14 = vmul.f32 0.5, %v1304_v33 }
 0x130   :  { %v3073_v29 = vxor.u32 %v2923_v52, %v2773_v10  ;;  %v2174_v2 = vxor.u32 %v2024_v37, %v1874_v62  ;;  %v2175_v4 = vxor.u32 %v2025_v46, %v1875_v8  ;;  %v2026_v17 = vshrl.u32 %v1876_v0, 16 }
 0x131   :  { %v1007_v6 = vmul.f32 0.7978846, %v857_v48  ;;  %v858_v23 = vadd.f32 %v708_v32, %v5365_v41  ;;  %v4346_v60 = vpop.eup %4345  ;;  %v1604_v24 = vmul.f32 %v1454_v14, %v5322_v22  ;;  %v96_v22 = vld [vmem:[#allocation4 + $0x1a0] sm:$0xff]  ;;  %v409_v28 = vmul.f32 %v5389_v16, %v5389_v16 }
 0x132   :  { %v4143_v61 = vxor.u32 2147483648, %v3073_v29  ;;  %v2324_v34 = vmul.u32 2146121005, %v2174_v2  ;;  %v2325_v36 = vmul.u32 2146121005, %v2175_v4  ;;  %v4348_v50 = vpop.eup %4347  ;;  %v1305_v53 = vadd.f32 1.0, %v4346_v60 }
 0x133   :  { %4349 = vtanh.f32 %v1007_v6  ;;  %v1008_v30 = vmul.f32 0.7978846, %v858_v23  ;;  %v2176_v39 = vxor.u32 %v2026_v17, %v1876_v0  ;;  %v3672_v57 = vmul.f32 1.1111112, %v1604_v24 }
 0x134   :  { %vm5392_vm15 = vcmp.ge.s32.totalorder %v4143_v61, 2576980378  ;;  %v1306_v15 = vadd.f32 1.0, %v4348_v50  ;;  %v2474_v35 = vshrl.u32 %v2324_v34, 15  ;;  %v1455_v42 = vmul.f32 0.5, %v1305_v53 }
 0x135   :  { %v2475_v47 = vshrl.u32 %v2325_v36, 15  ;;  %4351 = vtanh.f32 %v1008_v30  ;;  %v2326_v49 = vmul.u32 2146121005, %v2176_v39  ;;  %v3822_v59 = vsel %vm5380_vm14, %v3672_v57, 0.0 }
 0x136   :  { %v1456_v26 = vmul.f32 0.5, %v1306_v15  ;;  %v2624_v7 = vxor.u32 %v2474_v35, %v2324_v34  ;;  %3972 = vst [vmem:[#allocation9 + $0x170] sm:$0xff] %v3822_v59  ;;  %v1605_v10 = vmul.f32 %v1455_v42, %v5335_v9  ;;  %v1877_v55 = vadd.s32 %v4689_v18, %v5370_v38 }
 0x137   :  { %v2625_v62 = vxor.u32 %v2475_v47, %v2325_v36  ;;  %v2476_v8 = vshrl.u32 %v2326_v49, 15  ;;  %v559_v31 = vmul.f32 %v409_v28, %v5389_v16  ;;  %v5406_v33 = vadd.f32 %v4746_v40, %v96_v22 }
 0x138   :  { %v1606_v45 = vmul.f32 %v1456_v26, %v5340_v44  ;;  %v2774_v11 = vmul.u32 2221713035, %v2624_v7  ;;  %v3673_v37 = vmul.f32 1.1111112, %v1605_v10  ;;  %v2027_v63 = vshrl.u32 %v1877_v55, 16  ;;  %v98_v7 = vld [vmem:[#allocation4 + $0x1b0] sm:$0xff] }
 0x139   :  { %v4350_v52 = vpop.eup %4349  ;;  %v2775_v46 = vmul.u32 2221713035, %v2625_v62  ;;  %v2626_v20 = vxor.u32 %v2476_v8, %v2326_v49  ;;  %v709_v0 = vmul.f32 0.044715, %v559_v31  ;;  %v410_v36 = vmul.f32 %v5406_v33, %v5406_v33  ;;  %v97_v49 = vld [vmem:[#allocation4 + $0x1a8] sm:$0xff] }
 0x13a   :  { %v2924_v48 = vshrl.u32 %v2774_v11, 16  ;;  %v3674_v9 = vmul.f32 1.1111112, %v1606_v45  ;;  %v1307_v32 = vadd.f32 1.0, %v4350_v52  ;;  %v3823_v29 = vsel %vm5392_vm15, %v3673_v37, 0.0  ;;  %v99_v45 = vld [vmem:[#allocation4 + $0x1b8] sm:$0xff] }
 0x13b   :  { %v4352_v14 = vpop.eup %4351  ;;  %v2925_v44 = vshrl.u32 %v2775_v46, 16  ;;  %v2776_v2 = vmul.u32 2221713035, %v2626_v20  ;;  %v2177_v4 = vxor.u32 %v2027_v63, %v1877_v55  ;;  %3973 = vst [vmem:[#allocation9 + $0x178] sm:$0xff] %v3823_v29  ;;  %v859_v60 = vadd.f32 %v709_v0, %v5389_v16 }
 0x13c   :  { %v3074_v6 = vxor.u32 %v2924_v48, %v2774_v11  ;;  %v1457_v23 = vmul.f32 0.5, %v1307_v32  ;;  %v1308_v17 = vadd.f32 1.0, %v4352_v14  ;;  %v560_v35 = vmul.f32 %v410_v36, %v5406_v33 }
 0x13d   :  { %v3075_v24 = vxor.u32 %v2925_v44, %v2775_v46  ;;  %v2926_v61 = vshrl.u32 %v2776_v2, 16  ;;  %v2327_v34 = vmul.u32 2146121005, %v2177_v4  ;;  %v1009_v39 = vmul.f32 0.7978846, %v859_v60 }
 0x13e   :  { %v4144_v50 = vxor.u32 2147483648, %v3074_v6  ;;  %v1607_v53 = vmul.f32 %v1457_v23, %v5358_v56  ;;  %v1458_v30 = vmul.f32 0.5, %v1308_v17  ;;  %v710_v10 = vmul.f32 0.044715, %v560_v35  ;;  %v100_v35 = vld [vmem:[#allocation4 + $0x1c0] sm:$0xff] }
 0x13f   :  { %v4145_v57 = vxor.u32 2147483648, %v3075_v24  ;;  %v3076_v58 = vxor.u32 %v2926_v61, %v2776_v2  ;;  %v2477_v15 = vshrl.u32 %v2327_v34, 15  ;;  %4353 = vtanh.f32 %v1009_v39 }
 0x140   :  { %vm3322_vm0 = vcmp.ge.s32.totalorder %v4144_v50, 2576980378  ;;  %v3675_v42 = vmul.f32 1.1111112, %v1607_v53  ;;  %v1608_v47 = vmul.f32 %v1458_v30, %v5365_v41  ;;  %v1878_v62 = vadd.s32 %v4749_v43, %v5370_v38 }
 0x141   :  { %v3824_v22 = vsel %vm3322_vm0, %v3674_v9, 0.0  ;;  %vm3325_vm1 = vcmp.ge.s32.totalorder %v4145_v57, 2576980378  ;;  %v4146_v59 = vxor.u32 2147483648, %v3076_v58  ;;  %v2627_v26 = vxor.u32 %v2477_v15, %v2327_v34 }
 0x142   :  { %3974 = vst [vmem:[#allocation9 + $0x180] sm:$0xff] %v3824_v22  ;;  %v3825_v56 = vsel %vm3325_vm1, %v3675_v42, 0.0  ;;  %v3676_v28 = vmul.f32 1.1111112, %v1608_v47  ;;  %v5419_v55 = vadd.f32 %v4757_v51, %v97_v49  ;;  %v1879_v41 = vadd.s32 %v4762_v54, %v5370_v38 }
 0x143   :  { %3975 = vst [vmem:[#allocation9 + $0x188] sm:$0xff] %v3825_v56  ;;  %vm3328_vm2 = vcmp.ge.s32.totalorder %v4146_v59, 2576980378  ;;  %v2777_v8 = vmul.u32 2221713035, %v2627_v26  ;;  %v860_v31 = vadd.f32 %v710_v10, %v5406_v33  ;;  %v2028_v52 = vshrl.u32 %v1878_v62, 16 }
 0x144   :  { %v3826_v11 = vsel %vm3328_vm2, %v3676_v28, 0.0  ;;  %v5425_v37 = vadd.f32 %v4692_v19, %v98_v7  ;;  %v411_v20 = vmul.f32 %v5419_v55, %v5419_v55  ;;  %v2029_v63 = vshrl.u32 %v1879_v41, 16 }
 0x145   :  { %3976 = vst [vmem:[#allocation9 + $0x190] sm:$0xff] %v3826_v11  ;;  %v2927_v46 = vshrl.u32 %v2777_v8, 16  ;;  %v1718_v48 = vadd.s32 72, %v4663_v1  ;;  %v4354_v9 = vpop.eup %4353  ;;  %v1010_v32 = vmul.f32 0.7978846, %v860_v31  ;;  %v2178_v0 = vxor.u32 %v2028_v52, %v1878_v62 }
 0x146   :  { %v412_v38 = vmul.f32 %v5425_v37, %v5425_v37  ;;  %v5433_v14 = vadd.f32 %v4697_v21, %v99_v45  ;;  %v1309_v29 = vadd.f32 1.0, %v4354_v9  ;;  %v561_v2 = vmul.f32 %v411_v20, %v5419_v55 }
 0x147   :  { %v3077_v44 = vxor.u32 %v2927_v46, %v2777_v8  ;;  %v2179_v4 = vxor.u32 %v2029_v63, %v1879_v41  ;;  %4355 = vtanh.f32 %v1010_v32  ;;  %v2328_v6 = vmul.u32 2146121005, %v2178_v0 }
 0x148   :  { %v562_v23 = vmul.f32 %v412_v38, %v5425_v37  ;;  %v1778_v17 = vmul.u32 2654435761, %v1718_v48  ;;  %v1459_v60 = vmul.f32 0.5, %v1309_v29  ;;  %v711_v61 = vmul.f32 0.044715, %v561_v2 }
 0x149   :  { %v4147_v24 = vxor.u32 2147483648, %v3077_v44  ;;  %v2329_v34 = vmul.u32 2146121005, %v2179_v4  ;;  %v2478_v36 = vshrl.u32 %v2328_v6, 15  ;;  %v413_v30 = vmul.f32 %v5433_v14, %v5433_v14  ;;  %v101_v44 = vld [vmem:[#allocation4 + $0x1c8] sm:$0xff] }
 0x14a   :  { %v712_v50 = vmul.f32 0.044715, %v562_v23  ;;  %v5438_v53 = vadd.s32 %v4668_v3, %v1778_v17  ;;  %v1609_v39 = vmul.f32 %v1459_v60, %v5389_v16  ;;  %v861_v58 = vadd.f32 %v711_v61, %v5419_v55 }
 0x14b   :  { %vm5443_vm3 = vcmp.ge.s32.totalorder %v4147_v24, 2576980378  ;;  %v2479_v15 = vshrl.u32 %v2329_v34, 15  ;;  %v2628_v42 = vxor.u32 %v2478_v36, %v2328_v6  ;;  %v563_v22 = vmul.f32 %v413_v30, %v5433_v14 }
 0x14c   :  { %v862_v47 = vadd.f32 %v712_v50, %v5425_v37  ;;  %v1880_v49 = vadd.s32 %v4671_v5, %v5438_v53  ;;  %v3677_v59 = vmul.f32 1.1111112, %v1609_v39  ;;  %v1011_v26 = vmul.f32 0.7978846, %v861_v58 }
 0x14d   :  { %v2629_v7 = vxor.u32 %v2479_v15, %v2329_v34  ;;  %v1881_v16 = vadd.s32 %v4680_v12, %v5438_v53  ;;  %v4356_v56 = vpop.eup %4355  ;;  %v2778_v28 = vmul.u32 2221713035, %v2628_v42  ;;  %v5455_v8 = vadd.f32 %v4702_v25, %v100_v35 }
 0x14e   :  { %v1012_v10 = vmul.f32 0.7978846, %v862_v47  ;;  %v2030_v62 = vshrl.u32 %v1880_v49, 16  ;;  %v3827_v41 = vsel %vm5443_vm3, %v3677_v59, 0.0  ;;  %v1310_v45 = vadd.f32 1.0, %v4356_v56 }
 0x14f   :  { %4357 = vtanh.f32 %v1011_v26  ;;  %v2779_v11 = vmul.u32 2221713035, %v2629_v7  ;;  %3977 = vst [vmem:[#allocation9 + $0x198] sm:$0xff] %v3827_v41  ;;  %v2928_v31 = vshrl.u32 %v2778_v28, 16  ;;  %v713_v46 = vmul.f32 0.044715, %v563_v22 }
 0x150   :  { %4359 = vtanh.f32 %v1012_v10  ;;  %v2180_v52 = vxor.u32 %v2030_v62, %v1880_v49  ;;  %v1460_v20 = vmul.f32 0.5, %v1310_v45  ;;  %v2031_v48 = vshrl.u32 %v1881_v16, 16 }
 0x151   :  { %v2929_v63 = vshrl.u32 %v2779_v11, 16  ;;  %v414_v9 = vmul.f32 %v5455_v8, %v5455_v8  ;;  %v3078_v32 = vxor.u32 %v2928_v31, %v2778_v28  ;;  %v863_v38 = vadd.f32 %v713_v46, %v5433_v14 }
 0x152   :  { %v2330_v0 = vmul.u32 2146121005, %v2180_v52  ;;  %v1882_v29 = vadd.s32 %v4682_v13, %v5438_v53  ;;  %v1610_v2 = vmul.f32 %v1460_v20, %v5406_v33  ;;  %v2181_v6 = vxor.u32 %v2031_v48, %v1881_v16 }
 0x153   :  { %v3079_v4 = vxor.u32 %v2929_v63, %v2779_v11  ;;  %v564_v23 = vmul.f32 %v414_v9, %v5455_v8  ;;  %v4148_v17 = vxor.u32 2147483648, %v3078_v32  ;;  %v1013_v24 = vmul.f32 0.7978846, %v863_v38 }
 0x154   :  { %v2480_v60 = vshrl.u32 %v2330_v0, 15  ;;  %v2032_v61 = vshrl.u32 %v1882_v29, 16  ;;  %v3678_v36 = vmul.f32 1.1111112, %v1610_v2  ;;  %v2331_v30 = vmul.u32 2146121005, %v2181_v6 }
 0x155   :  { %v4358_v34 = vpop.eup %4357  ;;  %v4149_v50 = vxor.u32 2147483648, %v3079_v4  ;;  %v5467_v39 = vadd.f32 %v4707_v27, %v101_v44  ;;  %vm3334_vm4 = vcmp.ge.s32.totalorder %v4148_v17, 2576980378  ;;  %4361 = vtanh.f32 %v1013_v24 }
 0x156   :  { %v4360_v57 = vpop.eup %4359  ;;  %v1311_v58 = vadd.f32 1.0, %v4358_v34  ;;  %v2630_v15 = vxor.u32 %v2480_v60, %v2330_v0  ;;  %v3828_v33 = vsel %vm3334_vm4, %v3678_v36, 0.0  ;;  %v2481_v47 = vshrl.u32 %v2331_v30, 15  ;;  %v102_v0 = vld [vmem:[#allocation4 + $0x1d0] sm:$0xff]  ;;  %v103_v36 = vld [vmem:[#allocation4 + $0x1d8] sm:$0xff] }
 0x157   :  { %vm5469_vm5 = vcmp.ge.s32.totalorder %v4149_v50, 2576980378  ;;  %v1312_v42 = vadd.f32 1.0, %v4360_v57  ;;  %3978 = vst [vmem:[#allocation9 + $0x1a0] sm:$0xff] %v3828_v33  ;;  %v714_v59 = vmul.f32 0.044715, %v564_v23  ;;  %v2182_v26 = vxor.u32 %v2032_v61, %v1882_v29 }
 0x158   :  { %v1461_v49 = vmul.f32 0.5, %v1311_v58  ;;  %v2780_v22 = vmul.u32 2221713035, %v2630_v15  ;;  %v2631_v16 = vxor.u32 %v2481_v47, %v2331_v30  ;;  %v415_v56 = vmul.f32 %v5467_v39, %v5467_v39 }
 0x159   :  { %v1462_v7 = vmul.f32 0.5, %v1312_v42  ;;  %v1883_v28 = vadd.s32 %v4689_v18, %v5438_v53  ;;  %v864_v41 = vadd.f32 %v714_v59, %v5455_v8  ;;  %v2332_v45 = vmul.u32 2146121005, %v2182_v26 }
 0x15a   :  { %v1611_v10 = vmul.f32 %v1461_v49, %v5419_v55  ;;  %v2930_v62 = vshrl.u32 %v2780_v22, 16  ;;  %v2781_v31 = vmul.u32 2221713035, %v2631_v16  ;;  %v565_v52 = vmul.f32 %v415_v56, %v5467_v39  ;;  %v104_v16 = vld [vmem:[#allocation4 + $0x1e0] sm:$0xff] }
 0x15b   :  { %v1612_v11 = vmul.f32 %v1462_v7, %v5425_v37  ;;  %v2033_v46 = vshrl.u32 %v1883_v28, 16  ;;  %v4362_v20 = vpop.eup %4361  ;;  %v1014_v9 = vmul.f32 0.7978846, %v864_v41  ;;  %v2482_v32 = vshrl.u32 %v2332_v45, 15 }
 0x15c   :  { %v3679_v63 = vmul.f32 1.1111112, %v1611_v10  ;;  %v3080_v48 = vxor.u32 %v2930_v62, %v2780_v22  ;;  %v1313_v29 = vadd.f32 1.0, %v4362_v20  ;;  %v2931_v44 = vshrl.u32 %v2781_v31, 16 }
 0x15d   :  { %v3680_v38 = vmul.f32 1.1111112, %v1612_v11  ;;  %v715_v55 = vmul.f32 0.044715, %v565_v52  ;;  %4363 = vtanh.f32 %v1014_v9  ;;  %v2632_v37 = vxor.u32 %v2482_v32, %v2332_v45 }
 0x15e   :  { %v3829_v2 = vsel %vm5469_vm5, %v3679_v63, 0.0  ;;  %v4150_v4 = vxor.u32 2147483648, %v3080_v48  ;;  %v1463_v6 = vmul.f32 0.5, %v1313_v29  ;;  %v3081_v23 = vxor.u32 %v2931_v44, %v2781_v31 }
 0x15f   :  { %3979 = vst [vmem:[#allocation9 + $0x1a8] sm:$0xff] %v3829_v2  ;;  %v865_v17 = vadd.f32 %v715_v55, %v5467_v39  ;;  %v2183_v60 = vxor.u32 %v2033_v46, %v1883_v28  ;;  %v2782_v24 = vmul.u32 2221713035, %v2632_v37  ;;  %v5485_v61 = vadd.f32 %v4746_v40, %v102_v0 }
 0x160   :  { %vm3340_vm6 = vcmp.ge.s32.totalorder %v4150_v4, 2576980378  ;;  %v1884_v34 = vadd.s32 %v4749_v43, %v5438_v53  ;;  %v1613_v30 = vmul.f32 %v1463_v6, %v5433_v14  ;;  %v4151_v57 = vxor.u32 2147483648, %v3081_v23 }
 0x161   :  { %v3830_v50 = vsel %vm3340_vm6, %v3680_v38, 0.0  ;;  %v1015_v58 = vmul.f32 0.7978846, %v865_v17  ;;  %v2932_v15 = vshrl.u32 %v2782_v24, 16  ;;  %v2333_v33 = vmul.u32 2146121005, %v2183_v60 }
 0x162   :  { %3980 = vst [vmem:[#allocation9 + $0x1b0] sm:$0xff] %v3830_v50  ;;  %v416_v35 = vmul.f32 %v5485_v61, %v5485_v61  ;;  %v2034_v42 = vshrl.u32 %v1884_v34, 16  ;;  %vm3343_vm7 = vcmp.ge.s32.totalorder %v4151_v57, 2576980378  ;;  %v3681_v47 = vmul.f32 1.1111112, %v1613_v30 }
 0x163   :  { %4365 = vtanh.f32 %v1015_v58  ;;  %v5493_v49 = vadd.f32 %v4757_v51, %v103_v36  ;;  %v4364_v22 = vpop.eup %4363  ;;  %v3082_v59 = vxor.u32 %v2932_v15, %v2782_v24  ;;  %v2483_v26 = vshrl.u32 %v2333_v33, 15 }
 0x164   :  { %v566_v14 = vmul.f32 %v416_v35, %v5485_v61  ;;  %v2184_v7 = vxor.u32 %v2034_v42, %v1884_v34  ;;  %v3831_v56 = vsel %vm3343_vm7, %v3681_v47, 0.0  ;;  %v1314_v28 = vadd.f32 1.0, %v4364_v22  ;;  %v106_v22 = vld [vmem:[#allocation4 + $0x1f0] sm:$0xff] }
 0x165   :  { %v417_v10 = vmul.f32 %v5493_v49, %v5493_v49  ;;  %v1885_v62 = vadd.s32 %v4762_v54, %v5438_v53  ;;  %3981 = vst [vmem:[#allocation9 + $0x1b8] sm:$0xff] %v3831_v56  ;;  %v4152_v41 = vxor.u32 2147483648, %v3082_v59  ;;  %v2633_v45 = vxor.u32 %v2483_v26, %v2333_v33 }
 0x166   :  { %v716_v11 = vmul.f32 0.044715, %v566_v14  ;;  %v2334_v31 = vmul.u32 2146121005, %v2184_v7  ;;  %v1464_v52 = vmul.f32 0.5, %v1314_v28  ;;  %v5502_v63 = vadd.f32 %v4692_v19, %v104_v16  ;;  %v107_v7 = vld [vmem:[#allocation4 + $0x1f8] sm:$0xff] }
 0x167   :  { %v567_v46 = vmul.f32 %v417_v10, %v5493_v49  ;;  %v2035_v20 = vshrl.u32 %v1885_v62, 16  ;;  %vm5504_vm8 = vcmp.ge.s32.totalorder %v4152_v41, 2576980378  ;;  %v2783_v9 = vmul.u32 2221713035, %v2633_v45 }
 0x168   :  { %v866_v32 = vadd.f32 %v716_v11, %v5485_v61  ;;  %v2484_v53 = vshrl.u32 %v2334_v31, 15  ;;  %v1614_v38 = vmul.f32 %v1464_v52, %v5455_v8  ;;  %v418_v55 = vmul.f32 %v5502_v63, %v5502_v63  ;;  %v105_v8 = vld [vmem:[#allocation4 + $0x1e8] sm:$0xff] }
 0x169   :  { %v4366_v0 = vpop.eup %4365  ;;  %v717_v29 = vmul.f32 0.044715, %v567_v46  ;;  %v2185_v44 = vxor.u32 %v2035_v20, %v1885_v62  ;;  %v2933_v4 = vshrl.u32 %v2783_v9, 16  ;;  %v1719_v47 = vadd.s32 80, %v4663_v1 }
 0x16a   :  { %v1315_v2 = vadd.f32 1.0, %v4366_v0  ;;  %v1016_v37 = vmul.f32 0.7978846, %v866_v32  ;;  %v2634_v6 = vxor.u32 %v2484_v53, %v2334_v31  ;;  %v3682_v23 = vmul.f32 1.1111112, %v1614_v38 }
 0x16b   :  { %v867_v17 = vadd.f32 %v717_v29, %v5493_v49  ;;  %v2335_v60 = vmul.u32 2146121005, %v2185_v44  ;;  %v568_v24 = vmul.f32 %v418_v55, %v5502_v63  ;;  %v3083_v36 = vxor.u32 %v2933_v4, %v2783_v9 }
 0x16c   :  { %v1465_v34 = vmul.f32 0.5, %v1315_v2  ;;  %4367 = vtanh.f32 %v1016_v37  ;;  %v2784_v50 = vmul.u32 2221713035, %v2634_v6  ;;  %v3832_v30 = vsel %vm5504_vm8, %v3682_v23, 0.0 }
 0x16d   :  { %v1017_v57 = vmul.f32 0.7978846, %v867_v17  ;;  %v2485_v58 = vshrl.u32 %v2335_v60, 15  ;;  %v718_v15 = vmul.f32 0.044715, %v568_v24  ;;  %3982 = vst [vmem:[#allocation9 + $0x1c0] sm:$0xff] %v3832_v30  ;;  %v5520_v14 = vadd.f32 %v4697_v21, %v105_v8 }
 0x16e   :  { %v1615_v33 = vmul.f32 %v1465_v34, %v5467_v39  ;;  %v4153_v35 = vxor.u32 2147483648, %v3083_v36  ;;  %v2934_v42 = vshrl.u32 %v2784_v50, 16  ;;  %v1779_v28 = vmul.u32 2654435761, %v1719_v47 }
 0x16f   :  { %4369 = vtanh.f32 %v1017_v57  ;;  %v2635_v59 = vxor.u32 %v2485_v58, %v2335_v60  ;;  %v868_v26 = vadd.f32 %v718_v15, %v5502_v63  ;;  %v419_v39 = vmul.f32 %v5520_v14, %v5520_v14 }
 0x170   :  { %vm3349_vm9 = vcmp.ge.s32.totalorder %v4153_v35, 2576980378  ;;  %v3683_v16 = vmul.f32 1.1111112, %v1615_v33  ;;  %v3084_v56 = vxor.u32 %v2934_v42, %v2784_v50  ;;  %v5525_v41 = vadd.f32 %v4702_v25, %v106_v22 }
 0x171   :  { %v2785_v10 = vmul.u32 2221713035, %v2635_v59  ;;  %v1018_v62 = vmul.f32 0.7978846, %v868_v26  ;;  %v5528_v52 = vadd.s32 %v4668_v3, %v1779_v28  ;;  %v5531_v46 = vadd.f32 %v4707_v27, %v107_v7 }
 0x172   :  { %v4368_v45 = vpop.eup %4367  ;;  %v3833_v11 = vsel %vm3349_vm9, %v3683_v16, 0.0  ;;  %v4154_v31 = vxor.u32 2147483648, %v3084_v56  ;;  %v569_v9 = vmul.f32 %v419_v39, %v5520_v14  ;;  %v420_v38 = vmul.f32 %v5525_v41, %v5525_v41 }
 0x173   :  { %3983 = vst [vmem:[#allocation9 + $0x1c8] sm:$0xff] %v3833_v11  ;;  %v1316_v20 = vadd.f32 1.0, %v4368_v45  ;;  %v2935_v48 = vshrl.u32 %v2785_v10, 16  ;;  %4371 = vtanh.f32 %v1018_v62  ;;  %v1886_v53 = vadd.s32 %v4671_v5, %v5528_v52 }
 0x174   :  { %vm5534_vm10 = vcmp.ge.s32.totalorder %v4154_v31, 2576980378  ;;  %v1887_v0 = vadd.s32 %v4680_v12, %v5528_v52  ;;  %v719_v2 = vmul.f32 0.044715, %v569_v9  ;;  %v1888_v4 = vadd.s32 %v4682_v13, %v5528_v52  ;;  %v108_v31 = vld [vmem:[#allocation4 + $0x200] sm:$0xff] }
 0x175   :  { %v4370_v29 = vpop.eup %4369  ;;  %v1466_v44 = vmul.f32 0.5, %v1316_v20  ;;  %v3085_v55 = vxor.u32 %v2935_v48, %v2785_v10  ;;  %v2036_v6 = vshrl.u32 %v1886_v53, 16  ;;  %v570_v17 = vmul.f32 %v420_v38, %v5525_v41 }
 0x176   :  { %v1317_v37 = vadd.f32 1.0, %v4370_v29  ;;  %v2037_v23 = vshrl.u32 %v1887_v0, 16  ;;  %v869_v34 = vadd.f32 %v719_v2, %v5520_v14  ;;  %v2038_v36 = vshrl.u32 %v1888_v4, 16 }
 0x177   :  { %v1616_v60 = vmul.f32 %v1466_v44, %v5485_v61  ;;  %v4155_v24 = vxor.u32 2147483648, %v3085_v55  ;;  %v2186_v8 = vxor.u32 %v2036_v6, %v1886_v53  ;;  %v720_v57 = vmul.f32 0.044715, %v570_v17 }
 0x178   :  { %v1467_v50 = vmul.f32 0.5, %v1317_v37  ;;  %v2187_v30 = vxor.u32 %v2037_v23, %v1887_v0  ;;  %v1019_v35 = vmul.f32 0.7978846, %v869_v34  ;;  %v2188_v42 = vxor.u32 %v2038_v36, %v1888_v4 }
 0x179   :  { %v4372_v58 = vpop.eup %4371  ;;  %v3684_v15 = vmul.f32 1.1111112, %v1616_v60  ;;  %vm5549_vm11 = vcmp.ge.s32.totalorder %v4155_v24, 2576980378  ;;  %v2336_v61 = vmul.u32 2146121005, %v2186_v8  ;;  %v870_v7 = vadd.f32 %v720_v57, %v5525_v41 }
 0x17a   :  { %v1617_v47 = vmul.f32 %v1467_v50, %v5493_v49  ;;  %v1318_v22 = vadd.f32 1.0, %v4372_v58  ;;  %v2337_v59 = vmul.u32 2146121005, %v2187_v30  ;;  %4373 = vtanh.f32 %v1019_v35 }
 0x17b   :  { %v3834_v26 = vsel %vm5534_vm10, %v3684_v15, 0.0  ;;  %v2338_v16 = vmul.u32 2146121005, %v2188_v42  ;;  %v2486_v10 = vshrl.u32 %v2336_v61, 15  ;;  %v1020_v39 = vmul.f32 0.7978846, %v870_v7 }
 0x17c   :  { %3984 = vst [vmem:[#allocation9 + $0x1d0] sm:$0xff] %v3834_v26  ;;  %v3685_v56 = vmul.f32 1.1111112, %v1617_v47  ;;  %v1468_v28 = vmul.f32 0.5, %v1318_v22  ;;  %v2487_v62 = vshrl.u32 %v2337_v59, 15  ;;  %v421_v49 = vmul.f32 %v5531_v46, %v5531_v46 }
 0x17d   :  { %v2488_v45 = vshrl.u32 %v2338_v16, 15  ;;  %v1889_v11 = vadd.s32 %v4689_v18, %v5528_v52  ;;  %v2636_v9 = vxor.u32 %v2486_v10, %v2336_v61  ;;  %4375 = vtanh.f32 %v1020_v39  ;;  %v110_v39 = vld [vmem:[#allocation4 + $0x210] sm:$0xff] }
 0x17e   :  { %v3835_v20 = vsel %vm5549_vm11, %v3685_v56, 0.0  ;;  %v1618_v48 = vmul.f32 %v1468_v28, %v5502_v63  ;;  %v2637_v32 = vxor.u32 %v2487_v62, %v2337_v59  ;;  %v571_v0 = vmul.f32 %v421_v49, %v5531_v46  ;;  %v109_v59 = vld [vmem:[#allocation4 + $0x208] sm:$0xff] }
 0x17f   :  { %3985 = vst [vmem:[#allocation9 + $0x1d8] sm:$0xff] %v3835_v20  ;;  %v2638_v53 = vxor.u32 %v2488_v45, %v2338_v16  ;;  %v2039_v38 = vshrl.u32 %v1889_v11, 16  ;;  %v2786_v29 = vmul.u32 2221713035, %v2636_v9  ;;  %v5566_v2 = vadd.f32 %v4746_v40, %v108_v31 }
 0x180   :  { %v3686_v44 = vmul.f32 1.1111112, %v1618_v48  ;;  %v2787_v55 = vmul.u32 2221713035, %v2637_v32  ;;  %v4374_v4 = vpop.eup %4373  ;;  %v721_v6 = vmul.f32 0.044715, %v571_v0  ;;  %v1890_v63 = vadd.s32 %v4749_v43, %v5528_v52 }
 0x181   :  { %v2788_v37 = vmul.u32 2221713035, %v2638_v53  ;;  %v2189_v23 = vxor.u32 %v2039_v38, %v1889_v11  ;;  %v2936_v17 = vshrl.u32 %v2786_v29, 16  ;;  %v1319_v60 = vadd.f32 1.0, %v4374_v4 }
 0x182   :  { %v2937_v24 = vshrl.u32 %v2787_v55, 16  ;;  %v422_v34 = vmul.f32 %v5566_v2, %v5566_v2  ;;  %v871_v50 = vadd.f32 %v721_v6, %v5531_v46  ;;  %v2040_v30 = vshrl.u32 %v1890_v63, 16 }
 0x183   :  { %v2938_v36 = vshrl.u32 %v2788_v37, 16  ;;  %v2339_v8 = vmul.u32 2146121005, %v2189_v23  ;;  %v3086_v57 = vxor.u32 %v2936_v17, %v2786_v29  ;;  %v1469_v58 = vmul.f32 0.5, %v1319_v60  ;;  %v4376_v35 = vpop.eup %4375 }
 0x184   :  { %v3087_v15 = vxor.u32 %v2937_v24, %v2787_v55  ;;  %v572_v33 = vmul.f32 %v422_v34, %v5566_v2  ;;  %v1021_v47 = vmul.f32 0.7978846, %v871_v50  ;;  %v2190_v61 = vxor.u32 %v2040_v30, %v1890_v63 }
 0x185   :  { %v3088_v42 = vxor.u32 %v2938_v36, %v2788_v37  ;;  %v2489_v22 = vshrl.u32 %v2339_v8, 15  ;;  %v4156_v26 = vxor.u32 2147483648, %v3086_v57  ;;  %v1619_v7 = vmul.f32 %v1469_v58, %v5520_v14  ;;  %v111_v36 = vld [vmem:[#allocation4 + $0x218] sm:$0xff]  ;;  %v112_v58 = vld [vmem:[#allocation4 + $0x220] sm:$0xff] }
 0x186   :  { %v4157_v16 = vxor.u32 2147483648, %v3087_v15  ;;  %v1320_v56 = vadd.f32 1.0, %v4376_v35  ;;  %4377 = vtanh.f32 %v1021_v47  ;;  %v722_v62 = vmul.f32 0.044715, %v572_v33 }
 0x187   :  { %v4158_v28 = vxor.u32 2147483648, %v3088_v42  ;;  %v2639_v10 = vxor.u32 %v2489_v22, %v2339_v8  ;;  %vm3358_vm12 = vcmp.ge.s32.totalorder %v4156_v26, 2576980378  ;;  %v3687_v45 = vmul.f32 1.1111112, %v1619_v7 }
 0x188   :  { %vm3361_vm13 = vcmp.ge.s32.totalorder %v4157_v16, 2576980378  ;;  %v5576_v49 = vadd.f32 %v4757_v51, %v109_v59  ;;  %v3836_v11 = vsel %vm3358_vm12, %v3686_v44, 0.0  ;;  %v1470_v31 = vmul.f32 0.5, %v1320_v56 }
 0x189   :  { %vm5578_vm14 = vcmp.ge.s32.totalorder %v4158_v28, 2576980378  ;;  %v2789_v14 = vmul.u32 2221713035, %v2639_v10  ;;  %3986 = vst [vmem:[#allocation9 + $0x1e0] sm:$0xff] %v3836_v11  ;;  %v3837_v48 = vsel %vm3361_vm13, %v3687_v45, 0.0  ;;  %v872_v9 = vadd.f32 %v722_v62, %v5566_v2 }
 0x18a   :  { %v2340_v32 = vmul.u32 2146121005, %v2190_v61  ;;  %v423_v53 = vmul.f32 %v5576_v49, %v5576_v49  ;;  %3987 = vst [vmem:[#allocation9 + $0x1e8] sm:$0xff] %v3837_v48  ;;  %v1620_v0 = vmul.f32 %v1470_v31, %v5525_v41  ;;  %v1891_v29 = vadd.s32 %v4762_v54, %v5528_v52 }
 0x18b   :  { %v2939_v38 = vshrl.u32 %v2789_v14, 16  ;;  %v5589_v44 = vadd.f32 %v4692_v19, %v110_v39  ;;  %v1022_v55 = vmul.f32 0.7978846, %v872_v9  ;;  %v1720_v6 = vadd.s32 88, %v4663_v1 }
 0x18c   :  { %v2490_v4 = vshrl.u32 %v2340_v32, 15  ;;  %v573_v37 = vmul.f32 %v423_v53, %v5576_v49  ;;  %v4378_v23 = vpop.eup %4377  ;;  %v3688_v63 = vmul.f32 1.1111112, %v1620_v0  ;;  %v2041_v60 = vshrl.u32 %v1891_v29, 16 }
 0x18d   :  { %v3089_v17 = vxor.u32 %v2939_v38, %v2789_v14  ;;  %v424_v41 = vmul.f32 %v5589_v44, %v5589_v44  ;;  %v1321_v24 = vadd.f32 1.0, %v4378_v23  ;;  %4379 = vtanh.f32 %v1022_v55 }
 0x18e   :  { %v2640_v34 = vxor.u32 %v2490_v4, %v2340_v32  ;;  %v723_v52 = vmul.f32 0.044715, %v573_v37  ;;  %v3838_v50 = vsel %vm5578_vm14, %v3688_v63, 0.0  ;;  %v2191_v30 = vxor.u32 %v2041_v60, %v1891_v29  ;;  %v113_v29 = vld [vmem:[#allocation4 + $0x228] sm:$0xff] }
 0x18f   :  { %v4159_v8 = vxor.u32 2147483648, %v3089_v17  ;;  %v574_v57 = vmul.f32 %v424_v41, %v5589_v44  ;;  %3988 = vst [vmem:[#allocation9 + $0x1f0] sm:$0xff] %v3838_v50  ;;  %v1471_v15 = vmul.f32 0.5, %v1321_v24  ;;  %v1780_v42 = vmul.u32 2654435761, %v1720_v6 }
 0x190   :  { %v2790_v33 = vmul.u32 2221713035, %v2640_v34  ;;  %v873_v35 = vadd.f32 %v723_v52, %v5576_v49  ;;  %v2341_v22 = vmul.u32 2146121005, %v2191_v30  ;;  %v5604_v59 = vadd.f32 %v4697_v21, %v111_v36 }
 0x191   :  { %vm5599_vm15 = vcmp.ge.s32.totalorder %v4159_v8, 2576980378  ;;  %v724_v61 = vmul.f32 0.044715, %v574_v57  ;;  %v1621_v26 = vmul.f32 %v1471_v15, %v5531_v46  ;;  %v5608_v56 = vadd.s32 %v4668_v3, %v1780_v42 }
 0x192   :  { %v2940_v7 = vshrl.u32 %v2790_v33, 16  ;;  %v1023_v16 = vmul.f32 0.7978846, %v873_v35  ;;  %v2491_v28 = vshrl.u32 %v2341_v22, 15  ;;  %v425_v62 = vmul.f32 %v5604_v59, %v5604_v59 }
 0x193   :  { %v874_v10 = vadd.f32 %v724_v61, %v5589_v44  ;;  %v5614_v39 = vadd.f32 %v4702_v25, %v112_v58  ;;  %v4380_v45 = vpop.eup %4379  ;;  %v3689_v11 = vmul.f32 1.1111112, %v1621_v26  ;;  %v1892_v46 = vadd.s32 %v4671_v5, %v5608_v56 }
 0x194   :  { %v3090_v31 = vxor.u32 %v2940_v7, %v2790_v33  ;;  %4381 = vtanh.f32 %v1023_v16  ;;  %v1322_v20 = vadd.f32 1.0, %v4380_v45  ;;  %v2641_v14 = vxor.u32 %v2491_v28, %v2341_v22 }
 0x195   :  { %v1024_v48 = vmul.f32 0.7978846, %v874_v10  ;;  %v575_v9 = vmul.f32 %v425_v62, %v5604_v59  ;;  %v3839_v32 = vsel %vm5599_vm15, %v3689_v11, 0.0  ;;  %v2042_v0 = vshrl.u32 %v1892_v46, 16 }
 0x196   :  { %v4160_v53 = vxor.u32 2147483648, %v3090_v31  ;;  %v1893_v38 = vadd.s32 %v4680_v12, %v5608_v56  ;;  %3989 = vst [vmem:[#allocation9 + $0x1f8] sm:$0xff] %v3839_v32  ;;  %v1472_v55 = vmul.f32 0.5, %v1322_v20  ;;  %v2791_v4 = vmul.u32 2221713035, %v2641_v14 }
 0x197   :  { %4383 = vtanh.f32 %v1024_v48  ;;  %v725_v37 = vmul.f32 0.044715, %v575_v9  ;;  %v2192_v23 = vxor.u32 %v2042_v0, %v1892_v46  ;;  %v426_v17 = vmul.f32 %v5614_v39, %v5614_v39 }
 0x198   :  { %vm5623_vm0 = vcmp.ge.s32.totalorder %v4160_v53, 2576980378  ;;  %v2043_v63 = vshrl.u32 %v1893_v38, 16  ;;  %v1622_v60 = vmul.f32 %v1472_v55, %v5566_v2  ;;  %v2941_v41 = vshrl.u32 %v2791_v4, 16 }
 0x199   :  { %v875_v24 = vadd.f32 %v725_v37, %v5604_v59  ;;  %v1894_v34 = vadd.s32 %v4682_v13, %v5608_v56  ;;  %v2342_v36 = vmul.u32 2146121005, %v2192_v23  ;;  %v576_v8 = vmul.f32 %v426_v17, %v5614_v39 }
 0x19a   :  { %v4382_v52 = vpop.eup %4381  ;;  %v2193_v50 = vxor.u32 %v2043_v63, %v1893_v38  ;;  %v5635_v30 = vadd.f32 %v4707_v27, %v113_v29  ;;  %v3690_v57 = vmul.f32 1.1111112, %v1622_v60  ;;  %v3091_v15 = vxor.u32 %v2941_v41, %v2791_v4  ;;  %v114_v4 = vld [vmem:[#allocation4 + $0x230] sm:$0xff] }
 0x19b   :  { %v1323_v58 = vadd.f32 1.0, %v4382_v52  ;;  %v1025_v33 = vmul.f32 0.7978846, %v875_v24  ;;  %v2492_v35 = vshrl.u32 %v2342_v36, 15  ;;  %v726_v42 = vmul.f32 0.044715, %v576_v8 }
 0x19c   :  { %v2343_v2 = vmul.u32 2146121005, %v2193_v50  ;;  %v2044_v47 = vshrl.u32 %v1894_v34, 16  ;;  %v3840_v61 = vsel %vm5623_vm0, %v3690_v57, 0.0  ;;  %v4161_v7 = vxor.u32 2147483648, %v3091_v15 }
 0x19d   :  { %v4384_v22 = vpop.eup %4383  ;;  %v1473_v26 = vmul.f32 0.5, %v1323_v58  ;;  %4385 = vtanh.f32 %v1025_v33  ;;  %3990 = vst [vmem:[#allocation9 + $0x200] sm:$0xff] %v3840_v61  ;;  %v2642_v28 = vxor.u32 %v2492_v35, %v2342_v36  ;;  %v876_v62 = vadd.f32 %v726_v42, %v5614_v39 }
 0x19e   :  { %v1324_v16 = vadd.f32 1.0, %v4384_v22  ;;  %v2493_v10 = vshrl.u32 %v2343_v2, 15  ;;  %vm5641_vm1 = vcmp.ge.s32.totalorder %v4161_v7, 2576980378  ;;  %v2194_v31 = vxor.u32 %v2044_v47, %v1894_v34  ;;  %v115_v7 = vld [vmem:[#allocation4 + $0x238] sm:$0xff] }
 0x19f   :  { %v1623_v45 = vmul.f32 %v1473_v26, %v5576_v49  ;;  %v427_v46 = vmul.f32 %v5635_v30, %v5635_v30  ;;  %v2792_v14 = vmul.u32 2221713035, %v2642_v28  ;;  %v1026_v9 = vmul.f32 0.7978846, %v876_v62 }
 0x1a0   :  { %v1474_v20 = vmul.f32 0.5, %v1324_v16  ;;  %v2643_v48 = vxor.u32 %v2493_v10, %v2343_v2  ;;  %v2344_v53 = vmul.u32 2146121005, %v2194_v31  ;;  %v1895_v38 = vadd.s32 %v4689_v18, %v5608_v56 }
 0x1a1   :  { %v3691_v32 = vmul.f32 1.1111112, %v1623_v45  ;;  %v577_v0 = vmul.f32 %v427_v46, %v5635_v30  ;;  %v2942_v29 = vshrl.u32 %v2792_v14, 16  ;;  %4387 = vtanh.f32 %v1026_v9 }
 0x1a2   :  { %v1624_v49 = vmul.f32 %v1474_v20, %v5589_v44  ;;  %v2793_v55 = vmul.u32 2221713035, %v2643_v48  ;;  %v2494_v23 = vshrl.u32 %v2344_v53, 15  ;;  %v2045_v17 = vshrl.u32 %v1895_v38, 16 }
 0x1a3   :  { %v4386_v37 = vpop.eup %4385  ;;  %v3841_v6 = vsel %vm5641_vm1, %v3691_v32, 0.0  ;;  %v727_v63 = vmul.f32 0.044715, %v577_v0  ;;  %v3092_v60 = vxor.u32 %v2942_v29, %v2792_v14  ;;  %v5655_v50 = vadd.f32 %v4746_v40, %v114_v4 }
 0x1a4   :  { %3991 = vst [vmem:[#allocation9 + $0x208] sm:$0xff] %v3841_v6  ;;  %v3692_v41 = vmul.f32 1.1111112, %v1624_v49  ;;  %v1325_v24 = vadd.f32 1.0, %v4386_v37  ;;  %v2943_v34 = vshrl.u32 %v2793_v55, 16  ;;  %v2644_v52 = vxor.u32 %v2494_v23, %v2344_v53 }
 0x1a5   :  { %v877_v36 = vadd.f32 %v727_v63, %v5635_v30  ;;  %v2195_v44 = vxor.u32 %v2045_v17, %v1895_v38  ;;  %v4162_v8 = vxor.u32 2147483648, %v3092_v60  ;;  %v1896_v15 = vadd.s32 %v4749_v43, %v5608_v56 }
 0x1a6   :  { %v1475_v57 = vmul.f32 0.5, %v1325_v24  ;;  %v3093_v58 = vxor.u32 %v2943_v34, %v2793_v55  ;;  %v2794_v33 = vmul.u32 2221713035, %v2644_v52  ;;  %v428_v42 = vmul.f32 %v5655_v50, %v5655_v50 }
 0x1a7   :  { %v1027_v35 = vmul.f32 0.7978846, %v877_v36  ;;  %v2345_v2 = vmul.u32 2146121005, %v2195_v44  ;;  %v4388_v47 = vpop.eup %4387  ;;  %vm3376_vm2 = vcmp.ge.s32.totalorder %v4162_v8, 2576980378  ;;  %v5664_v14 = vadd.f32 %v4757_v51, %v115_v7 }
 0x1a8   :  { %v1625_v22 = vmul.f32 %v1475_v57, %v5604_v59  ;;  %v4163_v61 = vxor.u32 2147483648, %v3093_v58  ;;  %v2046_v26 = vshrl.u32 %v1896_v15, 16  ;;  %v3842_v16 = vsel %vm3376_vm2, %v3692_v41, 0.0  ;;  %v116_v59 = vld [vmem:[#allocation4 + $0x240] sm:$0xff]  ;;  %v117_v8 = vld [vmem:[#allocation4 + $0x248] sm:$0xff] }
 0x1a9   :  { %v1326_v28 = vadd.f32 1.0, %v4388_v47  ;;  %v2944_v10 = vshrl.u32 %v2794_v33, 16  ;;  %4389 = vtanh.f32 %v1027_v35  ;;  %3992 = vst [vmem:[#allocation9 + $0x210] sm:$0xff] %v3842_v16  ;;  %v2495_v45 = vshrl.u32 %v2345_v2, 15 }
 0x1aa   :  { %vm3379_vm3 = vcmp.ge.s32.totalorder %v4163_v61, 2576980378  ;;  %v3693_v62 = vmul.f32 1.1111112, %v1625_v22  ;;  %v578_v11 = vmul.f32 %v428_v42, %v5655_v50  ;;  %v2196_v20 = vxor.u32 %v2046_v26, %v1896_v15 }
 0x1ab   :  { %v1476_v31 = vmul.f32 0.5, %v1326_v28  ;;  %v3094_v46 = vxor.u32 %v2944_v10, %v2794_v33  ;;  %v2645_v9 = vxor.u32 %v2495_v45, %v2345_v2  ;;  %v1897_v53 = vadd.s32 %v4762_v54, %v5608_v56  ;;  %v118_v33 = vld [vmem:[#allocation4 + $0x250] sm:$0xff] }
 0x1ac   :  { %v3843_v48 = vsel %vm3379_vm3, %v3693_v62, 0.0  ;;  %v728_v32 = vmul.f32 0.044715, %v578_v11  ;;  %v2346_v49 = vmul.u32 2146121005, %v2196_v20  ;;  %v429_v29 = vmul.f32 %v5664_v14, %v5664_v14 }
 0x1ad   :  { %3993 = vst [vmem:[#allocation9 + $0x218] sm:$0xff] %v3843_v48  ;;  %v1626_v0 = vmul.f32 %v1476_v31, %v5614_v39  ;;  %v4164_v38 = vxor.u32 2147483648, %v3094_v46  ;;  %v2795_v55 = vmul.u32 2221713035, %v2645_v9  ;;  %v2047_v37 = vshrl.u32 %v1897_v53, 16 }
 0x1ae   :  { %v878_v4 = vadd.f32 %v728_v32, %v5655_v50  ;;  %v5673_v6 = vadd.f32 %v4692_v19, %v116_v59  ;;  %v2496_v17 = vshrl.u32 %v2346_v49, 15  ;;  %v579_v56 = vmul.f32 %v429_v29, %v5664_v14 }
 0x1af   :  { %v4390_v23 = vpop.eup %4389  ;;  %vm3382_vm4 = vcmp.ge.s32.totalorder %v4164_v38, 2576980378  ;;  %v3694_v63 = vmul.f32 1.1111112, %v1626_v0  ;;  %v2945_v39 = vshrl.u32 %v2795_v55, 16  ;;  %v2197_v24 = vxor.u32 %v2047_v37, %v1897_v53 }
 0x1b0   :  { %v1327_v60 = vadd.f32 1.0, %v4390_v23  ;;  %v1028_v41 = vmul.f32 0.7978846, %v878_v4  ;;  %v2646_v52 = vxor.u32 %v2496_v17, %v2346_v49  ;;  %v729_v36 = vmul.f32 0.044715, %v579_v56 }
 0x1b1   :  { %v3844_v34 = vsel %vm3382_vm4, %v3694_v63, 0.0  ;;  %v430_v44 = vmul.f32 %v5673_v6, %v5673_v6  ;;  %v3095_v58 = vxor.u32 %v2945_v39, %v2795_v55  ;;  %v2347_v15 = vmul.u32 2146121005, %v2197_v24  ;;  %v119_v63 = vld [vmem:[#allocation4 + $0x258] sm:$0xff] }
 0x1b2   :  { %3994 = vst [vmem:[#allocation9 + $0x220] sm:$0xff] %v3844_v34  ;;  %v1477_v57 = vmul.f32 0.5, %v1327_v60  ;;  %4391 = vtanh.f32 %v1028_v41  ;;  %v2796_v35 = vmul.u32 2221713035, %v2646_v52  ;;  %v879_v2 = vadd.f32 %v729_v36, %v5664_v14 }
 0x1b3   :  { %v580_v42 = vmul.f32 %v430_v44, %v5673_v6  ;;  %v1721_v47 = vadd.s32 96, %v4663_v1  ;;  %v4165_v61 = vxor.u32 2147483648, %v3095_v58  ;;  %v2497_v26 = vshrl.u32 %v2347_v15, 15 }
 0x1b4   :  { %v1627_v22 = vmul.f32 %v1477_v57, %v5635_v30  ;;  %v5683_v7 = vadd.f32 %v4697_v21, %v117_v8  ;;  %v2946_v16 = vshrl.u32 %v2796_v35, 16  ;;  %v1029_v28 = vmul.f32 0.7978846, %v879_v2 }
 0x1b5   :  { %v730_v10 = vmul.f32 0.044715, %v580_v42  ;;  %v5686_v62 = vadd.f32 %v4702_v25, %v118_v33  ;;  %vm3385_vm5 = vcmp.ge.s32.totalorder %v4165_v61, 2576980378  ;;  %v2647_v11 = vxor.u32 %v2497_v26, %v2347_v15 }
 0x1b6   :  { %v3695_v45 = vmul.f32 1.1111112, %v1627_v22  ;;  %v1781_v31 = vmul.u32 2654435761, %v1721_v47  ;;  %v3096_v46 = vxor.u32 %v2946_v16, %v2796_v35  ;;  %4393 = vtanh.f32 %v1029_v28 }
 0x1b7   :  { %v880_v20 = vadd.f32 %v730_v10, %v5673_v6  ;;  %v431_v30 = vmul.f32 %v5683_v7, %v5683_v7  ;;  %v2797_v9 = vmul.u32 2221713035, %v2647_v11  ;;  %v432_v53 = vmul.f32 %v5686_v62, %v5686_v62 }
 0x1b8   :  { %v4392_v59 = vpop.eup %4391  ;;  %v3845_v48 = vsel %vm3385_vm5, %v3695_v45, 0.0  ;;  %v5692_v32 = vadd.s32 %v4668_v3, %v1781_v31  ;;  %v4166_v38 = vxor.u32 2147483648, %v3096_v46  ;;  %v5711_v57 = vadd.f32 %v4707_v27, %v119_v63 }
 0x1b9   :  { %3995 = vst [vmem:[#allocation9 + $0x228] sm:$0xff] %v3845_v48  ;;  %v1328_v0 = vadd.f32 1.0, %v4392_v59  ;;  %v1030_v49 = vmul.f32 0.7978846, %v880_v20  ;;  %v581_v29 = vmul.f32 %v431_v30, %v5683_v7  ;;  %v2947_v55 = vshrl.u32 %v2797_v9, 16  ;;  %v120_v59 = vld [vmem:[#allocation4 + $0x260] sm:$0xff] }
 0x1ba   :  { %v1898_v4 = vadd.s32 %v4671_v5, %v5692_v32  ;;  %v1899_v37 = vadd.s32 %v4680_v12, %v5692_v32  ;;  %v582_v23 = vmul.f32 %v432_v53, %v5686_v62  ;;  %vm5702_vm6 = vcmp.ge.s32.totalorder %v4166_v38, 2576980378 }
 0x1bb   :  { %v1478_v17 = vmul.f32 0.5, %v1328_v0  ;;  %4395 = vtanh.f32 %v1030_v49  ;;  %v731_v60 = vmul.f32 0.044715, %v581_v29  ;;  %v3097_v39 = vxor.u32 %v2947_v55, %v2797_v9 }
 0x1bc   :  { %v2048_v41 = vshrl.u32 %v1898_v4, 16  ;;  %v2049_v24 = vshrl.u32 %v1899_v37, 16  ;;  %v732_v34 = vmul.f32 0.044715, %v582_v23  ;;  %v4394_v52 = vpop.eup %4393  ;;  %v1900_v8 = vadd.s32 %v4682_v13, %v5692_v32 }
 0x1bd   :  { %v1628_v36 = vmul.f32 %v1478_v17, %v5655_v50  ;;  %v881_v44 = vadd.f32 %v731_v60, %v5683_v7  ;;  %v1329_v58 = vadd.f32 1.0, %v4394_v52  ;;  %v4167_v15 = vxor.u32 2147483648, %v3097_v39 }
 0x1be   :  { %v2198_v33 = vxor.u32 %v2048_v41, %v1898_v4  ;;  %v2199_v35 = vxor.u32 %v2049_v24, %v1899_v37  ;;  %v882_v47 = vadd.f32 %v732_v34, %v5686_v62  ;;  %v2050_v22 = vshrl.u32 %v1900_v8, 16 }
 0x1bf   :  { %v3696_v2 = vmul.f32 1.1111112, %v1628_v36  ;;  %v1031_v42 = vmul.f32 0.7978846, %v881_v44  ;;  %v1479_v61 = vmul.f32 0.5, %v1329_v58  ;;  %v433_v16 = vmul.f32 %v5711_v57, %v5711_v57 }
 0x1c0   :  { %vm5714_vm7 = vcmp.ge.s32.totalorder %v4167_v15, 2576980378  ;;  %v2348_v26 = vmul.u32 2146121005, %v2198_v33  ;;  %v2349_v45 = vmul.u32 2146121005, %v2199_v35  ;;  %v2200_v30 = vxor.u32 %v2050_v22, %v1900_v8 }
 0x1c1   :  { %v4396_v28 = vpop.eup %4395  ;;  %v3846_v10 = vsel %vm5702_vm6, %v3696_v2, 0.0  ;;  %4397 = vtanh.f32 %v1031_v42  ;;  %v1032_v11 = vmul.f32 0.7978846, %v882_v47  ;;  %v1629_v31 = vmul.f32 %v1479_v61, %v5664_v14 }
 0x1c2   :  { %3996 = vst [vmem:[#allocation9 + $0x230] sm:$0xff] %v3846_v10  ;;  %v1330_v46 = vadd.f32 1.0, %v4396_v28  ;;  %v2498_v20 = vshrl.u32 %v2348_v26, 15  ;;  %v2499_v48 = vshrl.u32 %v2349_v45, 15  ;;  %v583_v9 = vmul.f32 %v433_v16, %v5711_v57 }
 0x1c3   :  { %4399 = vtanh.f32 %v1032_v11  ;;  %v1901_v53 = vadd.s32 %v4689_v18, %v5692_v32  ;;  %v3697_v0 = vmul.f32 1.1111112, %v1629_v31  ;;  %v2350_v29 = vmul.u32 2146121005, %v2200_v30  ;;  %v121_v30 = vld [vmem:[#allocation4 + $0x268] sm:$0xff] }
 0x1c4   :  { %v1480_v38 = vmul.f32 0.5, %v1330_v46  ;;  %v2648_v49 = vxor.u32 %v2498_v20, %v2348_v26  ;;  %v2649_v55 = vxor.u32 %v2499_v48, %v2349_v45  ;;  %v733_v4 = vmul.f32 0.044715, %v583_v9 }
 0x1c5   :  { %v2051_v37 = vshrl.u32 %v1901_v53, 16  ;;  %v5727_v14 = vadd.f32 %v4746_v40, %v120_v59  ;;  %v3847_v23 = vsel %vm5714_vm7, %v3697_v0, 0.0  ;;  %v2500_v56 = vshrl.u32 %v2350_v29, 15 }
 0x1c6   :  { %v1630_v63 = vmul.f32 %v1480_v38, %v5673_v6  ;;  %v2798_v17 = vmul.u32 2221713035, %v2648_v49  ;;  %3997 = vst [vmem:[#allocation9 + $0x238] sm:$0xff] %v3847_v23  ;;  %v2799_v39 = vmul.u32 2221713035, %v2649_v55  ;;  %v883_v41 = vadd.f32 %v733_v4, %v5711_v57 }
 0x1c7   :  { %v4398_v60 = vpop.eup %4397  ;;  %v2201_v24 = vxor.u32 %v2051_v37, %v1901_v53  ;;  %v434_v34 = vmul.f32 %v5727_v14, %v5727_v14  ;;  %v2650_v8 = vxor.u32 %v2500_v56, %v2350_v29  ;;  %v1902_v20 = vadd.s32 %v4749_v43, %v5692_v32  ;;  %v122_v53 = vld [vmem:[#allocation4 + $0x270] sm:$0xff] }
 0x1c8   :  { %v2948_v52 = vshrl.u32 %v2798_v17, 16  ;;  %v3698_v36 = vmul.f32 1.1111112, %v1630_v63  ;;  %v1331_v44 = vadd.f32 1.0, %v4398_v60  ;;  %v2949_v15 = vshrl.u32 %v2799_v39, 16 }
 0x1c9   :  { %v4400_v58 = vpop.eup %4399  ;;  %v1033_v33 = vmul.f32 0.7978846, %v883_v41  ;;  %v2351_v35 = vmul.u32 2146121005, %v2201_v24  ;;  %v584_v6 = vmul.f32 %v434_v34, %v5727_v14  ;;  %v2800_v22 = vmul.u32 2221713035, %v2650_v8 }
 0x1ca   :  { %v3098_v2 = vxor.u32 %v2948_v52, %v2798_v17  ;;  %v1481_v42 = vmul.f32 0.5, %v1331_v44  ;;  %v1332_v47 = vadd.f32 1.0, %v4400_v58  ;;  %v3099_v61 = vxor.u32 %v2949_v15, %v2799_v39  ;;  %v123_v41 = vld [vmem:[#allocation4 + $0x278] sm:$0xff] }
 0x1cb   :  { %4401 = vtanh.f32 %v1033_v33  ;;  %v2501_v50 = vshrl.u32 %v2351_v35, 15  ;;  %v734_v26 = vmul.f32 0.044715, %v584_v6  ;;  %v2950_v45 = vshrl.u32 %v2800_v22, 16 }
 0x1cc   :  { %v4168_v16 = vxor.u32 2147483648, %v3098_v2  ;;  %v1631_v28 = vmul.f32 %v1481_v42, %v5683_v7  ;;  %v1482_v10 = vmul.f32 0.5, %v1332_v47  ;;  %v4169_v11 = vxor.u32 2147483648, %v3099_v61 }
 0x1cd   :  { %v2651_v31 = vxor.u32 %v2501_v50, %v2351_v35  ;;  %v884_v46 = vadd.f32 %v734_v26, %v5727_v14  ;;  %v3100_v9 = vxor.u32 %v2950_v45, %v2800_v22  ;;  %v2052_v7 = vshrl.u32 %v1902_v20, 16  ;;  %v124_v22 = vld [vmem:[#allocation4 + $0x280] sm:$0xff] }
 0x1ce   :  { %vm3394_vm8 = vcmp.ge.s32.totalorder %v4168_v16, 2576980378  ;;  %v3699_v59 = vmul.f32 1.1111112, %v1631_v28  ;;  %v1632_v48 = vmul.f32 %v1482_v10, %v5686_v62  ;;  %vm3397_vm9 = vcmp.ge.s32.totalorder %v4169_v11, 2576980378 }
 0x1cf   :  { %v3848_v0 = vsel %vm3394_vm8, %v3698_v36, 0.0  ;;  %v2801_v38 = vmul.u32 2221713035, %v2651_v31  ;;  %v4170_v29 = vxor.u32 2147483648, %v3100_v9  ;;  %v5742_v4 = vadd.f32 %v4757_v51, %v121_v30 }
 0x1d0   :  { %3998 = vst [vmem:[#allocation9 + $0x240] sm:$0xff] %v3848_v0  ;;  %v3849_v49 = vsel %vm3397_vm9, %v3699_v59, 0.0  ;;  %v3700_v55 = vmul.f32 1.1111112, %v1632_v48  ;;  %v1034_v63 = vmul.f32 0.7978846, %v884_v46  ;;  %v2202_v17 = vxor.u32 %v2052_v7, %v1902_v20 }
 0x1d1   :  { %v4402_v37 = vpop.eup %4401  ;;  %3999 = vst [vmem:[#allocation9 + $0x248] sm:$0xff] %v3849_v49  ;;  %v2951_v23 = vshrl.u32 %v2801_v38, 16  ;;  %v1903_v62 = vadd.s32 %v4762_v54, %v5692_v32  ;;  %vm3400_vm10 = vcmp.ge.s32.totalorder %v4170_v29, 2576980378  ;;  %v435_v60 = vmul.f32 %v5742_v4, %v5742_v4 }
 0x1d2   :  { %v1333_v56 = vadd.f32 1.0, %v4402_v37  ;;  %v5749_v39 = vadd.f32 %v4692_v19, %v122_v53  ;;  %v3850_v24 = vsel %vm3400_vm10, %v3700_v55, 0.0  ;;  %4403 = vtanh.f32 %v1034_v63 }
 0x1d3   :  { %v3101_v34 = vxor.u32 %v2951_v23, %v2801_v38  ;;  %v2352_v52 = vmul.u32 2146121005, %v2202_v17  ;;  %4000 = vst [vmem:[#allocation9 + $0x250] sm:$0xff] %v3850_v24  ;;  %v585_v44 = vmul.f32 %v435_v60, %v5742_v4  ;;  %v2053_v8 = vshrl.u32 %v1903_v62, 16 }
 0x1d4   :  { %v1483_v36 = vmul.f32 0.5, %v1333_v56  ;;  %v436_v32 = vmul.f32 %v5749_v39, %v5749_v39  ;;  %v1722_v33 = vadd.s32 104, %v4663_v1  ;;  %v5756_v35 = vadd.f32 %v4697_v21, %v123_v41 }
 0x1d5   :  { %v4171_v58 = vxor.u32 2147483648, %v3101_v34  ;;  %v2502_v15 = vshrl.u32 %v2352_v52, 15  ;;  %v735_v2 = vmul.f32 0.044715, %v585_v44  ;;  %v2203_v42 = vxor.u32 %v2053_v8, %v1903_v62 }
 0x1d6   :  { %v1633_v6 = vmul.f32 %v1483_v36, %v5711_v57  ;;  %v586_v47 = vmul.f32 %v436_v32, %v5749_v39  ;;  %v1782_v26 = vmul.u32 2654435761, %v1722_v33  ;;  %v437_v16 = vmul.f32 %v5756_v35, %v5756_v35 }
 0x1d7   :  { %vm5760_vm11 = vcmp.ge.s32.totalorder %v4171_v58, 2576980378  ;;  %v2652_v50 = vxor.u32 %v2502_v15, %v2352_v52  ;;  %v885_v10 = vadd.f32 %v735_v2, %v5742_v4  ;;  %v2353_v45 = vmul.u32 2146121005, %v2203_v42  ;;  %v125_v15 = vld [vmem:[#allocation4 + $0x288] sm:$0xff] }
 0x1d8   :  { %v3701_v28 = vmul.f32 1.1111112, %v1633_v6  ;;  %v736_v11 = vmul.f32 0.044715, %v586_v47  ;;  %v4404_v57 = vpop.eup %4403  ;;  %v5768_v46 = vadd.s32 %v4668_v3, %v1782_v26  ;;  %v587_v20 = vmul.f32 %v437_v16, %v5756_v35 }
 0x1d9   :  { %v2802_v31 = vmul.u32 2221713035, %v2652_v50  ;;  %v5772_v30 = vadd.f32 %v4702_v25, %v124_v22  ;;  %v1334_v48 = vadd.f32 1.0, %v4404_v57  ;;  %v1035_v9 = vmul.f32 0.7978846, %v885_v10 }
 0x1da   :  { %v3851_v59 = vsel %vm5760_vm11, %v3701_v28, 0.0  ;;  %v2503_v53 = vshrl.u32 %v2353_v45, 15  ;;  %v886_v38 = vadd.f32 %v736_v11, %v5749_v39  ;;  %v1904_v7 = vadd.s32 %v4671_v5, %v5768_v46 }
 0x1db   :  { %4001 = vst [vmem:[#allocation9 + $0x258] sm:$0xff] %v3851_v59  ;;  %v2952_v0 = vshrl.u32 %v2802_v31, 16  ;;  %v737_v49 = vmul.f32 0.044715, %v587_v20  ;;  %v1484_v29 = vmul.f32 0.5, %v1334_v48  ;;  %4405 = vtanh.f32 %v1035_v9 }
 0x1dc   :  { %v2653_v55 = vxor.u32 %v2503_v53, %v2353_v45  ;;  %v1905_v37 = vadd.s32 %v4680_v12, %v5768_v46  ;;  %v1036_v63 = vmul.f32 0.7978846, %v886_v38  ;;  %v2054_v17 = vshrl.u32 %v1904_v7, 16 }
 0x1dd   :  { %v3102_v23 = vxor.u32 %v2952_v0, %v2802_v31  ;;  %v887_v62 = vadd.f32 %v737_v49, %v5756_v35  ;;  %v1634_v56 = vmul.f32 %v1484_v29, %v5727_v14  ;;  %v438_v24 = vmul.f32 %v5772_v30, %v5772_v30 }
 0x1de   :  { %v2803_v60 = vmul.u32 2221713035, %v2653_v55  ;;  %v2055_v41 = vshrl.u32 %v1905_v37, 16  ;;  %4407 = vtanh.f32 %v1036_v63  ;;  %v2204_v52 = vxor.u32 %v2054_v17, %v1904_v7 }
 0x1df   :  { %v4172_v34 = vxor.u32 2147483648, %v3102_v23  ;;  %v1037_v36 = vmul.f32 0.7978846, %v887_v62  ;;  %v3702_v44 = vmul.f32 1.1111112, %v1634_v56  ;;  %v588_v58 = vmul.f32 %v438_v24, %v5772_v30 }
 0x1e0   :  { %v2953_v8 = vshrl.u32 %v2803_v60, 16  ;;  %v2205_v32 = vxor.u32 %v2055_v41, %v1905_v37  ;;  %v2354_v33 = vmul.u32 2146121005, %v2204_v52  ;;  %v1906_v14 = vadd.s32 %v4682_v13, %v5768_v46 }
 0x1e1   :  { %vm3406_vm12 = vcmp.ge.s32.totalorder %v4172_v34, 2576980378  ;;  %4409 = vtanh.f32 %v1037_v36  ;;  %v4406_v6 = vpop.eup %4405  ;;  %v738_v22 = vmul.f32 0.044715, %v588_v58  ;;  %v5789_v16 = vadd.f32 %v4707_v27, %v125_v15 }
 0x1e2   :  { %v3852_v2 = vsel %vm3406_vm12, %v3702_v44, 0.0  ;;  %v3103_v42 = vxor.u32 %v2953_v8, %v2803_v60  ;;  %v2355_v47 = vmul.u32 2146121005, %v2205_v32  ;;  %v1335_v61 = vadd.f32 1.0, %v4406_v6  ;;  %v126_v44 = vld [vmem:[#allocation4 + $0x290] sm:$0xff] }
 0x1e3   :  { %4002 = vst [vmem:[#allocation9 + $0x260] sm:$0xff] %v3852_v2  ;;  %v2504_v50 = vshrl.u32 %v2354_v33, 15  ;;  %v2056_v26 = vshrl.u32 %v1906_v14, 16  ;;  %v888_v45 = vadd.f32 %v738_v22, %v5772_v30  ;;  %v1907_v11 = vadd.s32 %v4689_v18, %v5768_v46 }
 0x1e4   :  { %v4173_v28 = vxor.u32 2147483648, %v3103_v42  ;;  %v2505_v10 = vshrl.u32 %v2355_v47, 15  ;;  %v4408_v57 = vpop.eup %4407  ;;  %v1485_v31 = vmul.f32 0.5, %v1335_v61  ;;  %v439_v48 = vmul.f32 %v5789_v16, %v5789_v16 }
 0x1e5   :  { %v2654_v20 = vxor.u32 %v2504_v50, %v2354_v33  ;;  %v2206_v59 = vxor.u32 %v2056_v26, %v1906_v14  ;;  %v1336_v53 = vadd.f32 1.0, %v4408_v57  ;;  %v1038_v38 = vmul.f32 0.7978846, %v888_v45 }
 0x1e6   :  { %vm5796_vm13 = vcmp.ge.s32.totalorder %v4173_v28, 2576980378  ;;  %v2655_v0 = vxor.u32 %v2505_v10, %v2355_v47  ;;  %v1635_v49 = vmul.f32 %v1485_v31, %v5742_v4  ;;  %v589_v37 = vmul.f32 %v439_v48, %v5789_v16 }
 0x1e7   :  { %v4410_v7 = vpop.eup %4409  ;;  %v2804_v29 = vmul.u32 2221713035, %v2654_v20  ;;  %v2356_v55 = vmul.u32 2146121005, %v2206_v59  ;;  %v1486_v23 = vmul.f32 0.5, %v1336_v53  ;;  %4411 = vtanh.f32 %v1038_v38  ;;  %v128_v20 = vld [vmem:[#allocation4 + $0x2a0] sm:$0xff] }
 0x1e8   :  { %v1337_v63 = vadd.f32 1.0, %v4410_v7  ;;  %v2805_v17 = vmul.u32 2221713035, %v2655_v0  ;;  %v3703_v62 = vmul.f32 1.1111112, %v1635_v49  ;;  %v2057_v36 = vshrl.u32 %v1907_v11, 16 }
 0x1e9   :  { %v2954_v56 = vshrl.u32 %v2804_v29, 16  ;;  %v2506_v60 = vshrl.u32 %v2356_v55, 15  ;;  %v739_v41 = vmul.f32 0.044715, %v589_v37  ;;  %v1636_v24 = vmul.f32 %v1486_v23, %v5749_v39 }
 0x1ea   :  { %v1487_v34 = vmul.f32 0.5, %v1337_v63  ;;  %v2955_v52 = vshrl.u32 %v2805_v17, 16  ;;  %v3853_v4 = vsel %vm5796_vm13, %v3703_v62, 0.0  ;;  %v2207_v6 = vxor.u32 %v2057_v36, %v1907_v11 }
 0x1eb   :  { %v3104_v8 = vxor.u32 %v2954_v56, %v2804_v29  ;;  %v2656_v32 = vxor.u32 %v2506_v60, %v2356_v55  ;;  %v889_v58 = vadd.f32 %v739_v41, %v5789_v16  ;;  %4003 = vst [vmem:[#allocation9 + $0x268] sm:$0xff] %v3853_v4  ;;  %v3704_v15 = vmul.f32 1.1111112, %v1636_v24 }
 0x1ec   :  { %v1637_v33 = vmul.f32 %v1487_v34, %v5756_v35  ;;  %v3105_v14 = vxor.u32 %v2955_v52, %v2805_v17  ;;  %v5808_v47 = vadd.f32 %v4746_v40, %v126_v44  ;;  %v2357_v26 = vmul.u32 2146121005, %v2207_v6  ;;  %v127_v35 = vld [vmem:[#allocation4 + $0x298] sm:$0xff] }
 0x1ed   :  { %v4174_v2 = vxor.u32 2147483648, %v3104_v8  ;;  %v2806_v42 = vmul.u32 2221713035, %v2656_v32  ;;  %v1039_v39 = vmul.f32 0.7978846, %v889_v58  ;;  %v4412_v22 = vpop.eup %4411  ;;  %v1908_v28 = vadd.s32 %v4749_v43, %v5768_v46 }
 0x1ee   :  { %v4175_v61 = vxor.u32 2147483648, %v3105_v14  ;;  %v3705_v50 = vmul.f32 1.1111112, %v1637_v33  ;;  %v1338_v10 = vadd.f32 1.0, %v4412_v22  ;;  %v2507_v11 = vshrl.u32 %v2357_v26, 15  ;;  %v129_v22 = vld [vmem:[#allocation4 + $0x2a8] sm:$0xff] }
 0x1ef   :  { %vm3412_vm14 = vcmp.ge.s32.totalorder %v4174_v2, 2576980378  ;;  %v2956_v45 = vshrl.u32 %v2806_v42, 16  ;;  %4413 = vtanh.f32 %v1039_v39  ;;  %v440_v31 = vmul.f32 %v5808_v47, %v5808_v47 }
 0x1f0   :  { %v3854_v57 = vsel %vm3412_vm14, %v3704_v15, 0.0  ;;  %vm3415_vm15 = vcmp.ge.s32.totalorder %v4175_v61, 2576980378  ;;  %v1488_v48 = vmul.f32 0.5, %v1338_v10  ;;  %v2058_v53 = vshrl.u32 %v1908_v28, 16 }
 0x1f1   :  { %4004 = vst [vmem:[#allocation9 + $0x270] sm:$0xff] %v3854_v57  ;;  %v3855_v59 = vsel %vm3415_vm15, %v3705_v50, 0.0  ;;  %v3106_v9 = vxor.u32 %v2956_v45, %v2806_v42  ;;  %v2657_v0 = vxor.u32 %v2507_v11, %v2357_v26  ;;  %v590_v38 = vmul.f32 %v440_v31, %v5808_v47  ;;  %v130_v57 = vld [vmem:[#allocation4 + $0x2b0] sm:$0xff] }
 0x1f2   :  { %4005 = vst [vmem:[#allocation9 + $0x278] sm:$0xff] %v3855_v59  ;;  %v5816_v7 = vadd.f32 %v4757_v51, %v127_v35  ;;  %v1909_v49 = vadd.s32 %v4762_v54, %v5768_v46  ;;  %v1638_v29 = vmul.f32 %v1488_v48, %v5772_v30  ;;  %v2208_v37 = vxor.u32 %v2058_v53, %v1908_v28 }
 0x1f3   :  { %v4176_v55 = vxor.u32 2147483648, %v3106_v9  ;;  %v5822_v23 = vadd.f32 %v4692_v19, %v128_v20  ;;  %v2807_v63 = vmul.u32 2221713035, %v2657_v0  ;;  %v740_v17 = vmul.f32 0.044715, %v590_v38 }
 0x1f4   :  { %v441_v62 = vmul.f32 %v5816_v7, %v5816_v7  ;;  %v2059_v56 = vshrl.u32 %v1909_v49, 16  ;;  %v3706_v41 = vmul.f32 1.1111112, %v1638_v29  ;;  %v2358_v24 = vmul.u32 2146121005, %v2208_v37 }
 0x1f5   :  { %v4414_v60 = vpop.eup %4413  ;;  %vm3418_vm0 = vcmp.ge.s32.totalorder %v4176_v55, 2576980378  ;;  %v442_v46 = vmul.f32 %v5822_v23, %v5822_v23  ;;  %v2957_v30 = vshrl.u32 %v2807_v63, 16  ;;  %v890_v52 = vadd.f32 %v740_v17, %v5808_v47 }
 0x1f6   :  { %v1339_v34 = vadd.f32 1.0, %v4414_v60  ;;  %v591_v36 = vmul.f32 %v441_v62, %v5816_v7  ;;  %v3856_v44 = vsel %vm3418_vm0, %v3706_v41, 0.0  ;;  %v2508_v4 = vshrl.u32 %v2358_v24, 15 }
 0x1f7   :  { %v2209_v8 = vxor.u32 %v2059_v56, %v1909_v49  ;;  %v592_v32 = vmul.f32 %v442_v46, %v5822_v23  ;;  %4006 = vst [vmem:[#allocation9 + $0x280] sm:$0xff] %v3856_v44  ;;  %v3107_v15 = vxor.u32 %v2957_v30, %v2807_v63  ;;  %v1040_v33 = vmul.f32 0.7978846, %v890_v52 }
 0x1f8   :  { %v1489_v58 = vmul.f32 0.5, %v1339_v34  ;;  %v741_v14 = vmul.f32 0.044715, %v591_v36  ;;  %v2658_v6 = vxor.u32 %v2508_v4, %v2358_v24  ;;  %v1723_v39 = vadd.s32 112, %v4663_v1 }
 0x1f9   :  { %v2359_v2 = vmul.u32 2146121005, %v2209_v8  ;;  %v742_v42 = vmul.f32 0.044715, %v592_v32  ;;  %v4177_v50 = vxor.u32 2147483648, %v3107_v15  ;;  %4415 = vtanh.f32 %v1040_v33 }
 0x1fa   :  { %v1639_v61 = vmul.f32 %v1489_v58, %v5789_v16  ;;  %v891_v26 = vadd.f32 %v741_v14, %v5816_v7  ;;  %v2808_v28 = vmul.u32 2221713035, %v2658_v6  ;;  %v1783_v35 = vmul.u32 2654435761, %v1723_v39 }
 0x1fb   :  { %v2509_v10 = vshrl.u32 %v2359_v2, 15  ;;  %v892_v45 = vadd.f32 %v742_v42, %v5822_v23  ;;  %vm3421_vm1 = vcmp.ge.s32.totalorder %v4177_v50, 2576980378  ;;  %v5836_v20 = vadd.f32 %v4697_v21, %v129_v22 }
 0x1fc   :  { %v3707_v11 = vmul.f32 1.1111112, %v1639_v61  ;;  %v1041_v31 = vmul.f32 0.7978846, %v891_v26  ;;  %v2958_v59 = vshrl.u32 %v2808_v28, 16  ;;  %v5839_v16 = vadd.s32 %v4668_v3, %v1783_v35 }
 0x1fd   :  { %v2659_v48 = vxor.u32 %v2509_v10, %v2359_v2  ;;  %v1042_v9 = vmul.f32 0.7978846, %v892_v45  ;;  %v443_v0 = vmul.f32 %v5836_v20, %v5836_v20  ;;  %v5844_v38 = vadd.f32 %v4702_v25, %v130_v57  ;;  %v131_v45 = vld [vmem:[#allocation4 + $0x2b8] sm:$0xff] }
 0x1fe   :  { %v3857_v53 = vsel %vm3421_vm1, %v3707_v11, 0.0  ;;  %4417 = vtanh.f32 %v1041_v31  ;;  %v3108_v49 = vxor.u32 %v2958_v59, %v2808_v28  ;;  %v1910_v55 = vadd.s32 %v4671_v5, %v5839_v16 }
 0x1ff   :  { %4007 = vst [vmem:[#allocation9 + $0x288] sm:$0xff] %v3857_v53  ;;  %v2809_v29 = vmul.u32 2221713035, %v2659_v48  ;;  %4419 = vtanh.f32 %v1042_v9  ;;  %v4416_v37 = vpop.eup %4415  ;;  %v593_v63 = vmul.f32 %v443_v0, %v5836_v20  ;;  %v1911_v17 = vadd.s32 %v4680_v12, %v5839_v16 }
 0x200   :  { %v444_v62 = vmul.f32 %v5844_v38, %v5844_v38  ;;  %v1912_v56 = vadd.s32 %v4682_v13, %v5839_v16  ;;  %v1340_v60 = vadd.f32 1.0, %v4416_v37  ;;  %v4178_v41 = vxor.u32 2147483648, %v3108_v49 }
 0x201   :  { %v2959_v24 = vshrl.u32 %v2809_v29, 16  ;;  %v2060_v46 = vshrl.u32 %v1910_v55, 16  ;;  %v743_v34 = vmul.f32 0.044715, %v593_v63  ;;  %v2061_v30 = vshrl.u32 %v1911_v17, 16 }
 0x202   :  { %v594_v52 = vmul.f32 %v444_v62, %v5844_v38  ;;  %v2062_v36 = vshrl.u32 %v1912_v56, 16  ;;  %v1490_v44 = vmul.f32 0.5, %v1340_v60  ;;  %vm5856_vm2 = vcmp.ge.s32.totalorder %v4178_v41, 2576980378 }
 0x203   :  { %v3109_v8 = vxor.u32 %v2959_v24, %v2809_v29  ;;  %v2210_v32 = vxor.u32 %v2060_v46, %v1910_v55  ;;  %v893_v15 = vadd.f32 %v743_v34, %v5836_v20  ;;  %v2211_v33 = vxor.u32 %v2061_v30, %v1911_v17  ;;  %v132_v29 = vld [vmem:[#allocation4 + $0x2c0] sm:$0xff] }
 0x204   :  { %v4418_v58 = vpop.eup %4417  ;;  %v744_v14 = vmul.f32 0.044715, %v594_v52  ;;  %v2212_v6 = vxor.u32 %v2062_v36, %v1912_v56  ;;  %v1640_v42 = vmul.f32 %v1490_v44, %v5808_v47  ;;  %v5872_v63 = vadd.f32 %v4707_v27, %v131_v45 }
 0x205   :  { %v4420_v2 = vpop.eup %4419  ;;  %v1341_v39 = vadd.f32 1.0, %v4418_v58  ;;  %v4179_v22 = vxor.u32 2147483648, %v3109_v8  ;;  %v2360_v61 = vmul.u32 2146121005, %v2210_v32  ;;  %v1043_v26 = vmul.f32 0.7978846, %v893_v15 }
 0x206   :  { %v1342_v50 = vadd.f32 1.0, %v4420_v2  ;;  %v2361_v28 = vmul.u32 2146121005, %v2211_v33  ;;  %v894_v10 = vadd.f32 %v744_v14, %v5844_v38  ;;  %v3708_v35 = vmul.f32 1.1111112, %v1640_v42 }
 0x207   :  { %v1491_v57 = vmul.f32 0.5, %v1341_v39  ;;  %vm5863_vm3 = vcmp.ge.s32.totalorder %v4179_v22, 2576980378  ;;  %v2510_v31 = vshrl.u32 %v2360_v61, 15  ;;  %4421 = vtanh.f32 %v1043_v26 }
 0x208   :  { %v1492_v59 = vmul.f32 0.5, %v1342_v50  ;;  %v2511_v48 = vshrl.u32 %v2361_v28, 15  ;;  %v1044_v47 = vmul.f32 0.7978846, %v894_v10  ;;  %v3858_v9 = vsel %vm5856_vm2, %v3708_v35, 0.0 }
 0x209   :  { %v1641_v53 = vmul.f32 %v1491_v57, %v5816_v7  ;;  %v2660_v0 = vxor.u32 %v2510_v31, %v2360_v61  ;;  %v2362_v49 = vmul.u32 2146121005, %v2212_v6  ;;  %4008 = vst [vmem:[#allocation9 + $0x290] sm:$0xff] %v3858_v9  ;;  %v1913_v60 = vadd.s32 %v4689_v18, %v5839_v16 }
 0x20a   :  { %v1642_v55 = vmul.f32 %v1492_v59, %v5822_v23  ;;  %v2661_v37 = vxor.u32 %v2511_v48, %v2361_v28  ;;  %4423 = vtanh.f32 %v1044_v47  ;;  %v445_v7 = vmul.f32 %v5872_v63, %v5872_v63  ;;  %v133_v48 = vld [vmem:[#allocation4 + $0x2c8] sm:$0xff] }
 0x20b   :  { %v3709_v17 = vmul.f32 1.1111112, %v1641_v53  ;;  %v2810_v62 = vmul.u32 2221713035, %v2660_v0  ;;  %v2512_v56 = vshrl.u32 %v2362_v49, 15  ;;  %v5879_v46 = vadd.f32 %v4746_v40, %v132_v29 }
 0x20c   :  { %v3710_v41 = vmul.f32 1.1111112, %v1642_v55  ;;  %v2811_v24 = vmul.u32 2221713035, %v2661_v37  ;;  %v2063_v52 = vshrl.u32 %v1913_v60, 16  ;;  %v595_v4 = vmul.f32 %v445_v7, %v5872_v63 }
 0x20d   :  { %v3859_v23 = vsel %vm5863_vm3, %v3709_v17, 0.0  ;;  %v2960_v34 = vshrl.u32 %v2810_v62, 16  ;;  %v2662_v30 = vxor.u32 %v2512_v56, %v2362_v49  ;;  %v4422_v36 = vpop.eup %4421  ;;  %v446_v8 = vmul.f32 %v5879_v46, %v5879_v46  ;;  %v134_v17 = vld [vmem:[#allocation4 + $0x2d0] sm:$0xff] }
 0x20e   :  { %4009 = vst [vmem:[#allocation9 + $0x298] sm:$0xff] %v3859_v23  ;;  %v2961_v44 = vshrl.u32 %v2811_v24, 16  ;;  %v1914_v32 = vadd.s32 %v4749_v43, %v5839_v16  ;;  %v1343_v15 = vadd.f32 1.0, %v4422_v36  ;;  %v2213_v14 = vxor.u32 %v2063_v52, %v1913_v60 }
 0x20f   :  { %v3110_v58 = vxor.u32 %v2960_v34, %v2810_v62  ;;  %v2812_v33 = vmul.u32 2221713035, %v2662_v30  ;;  %v745_v42 = vmul.f32 0.044715, %v595_v4  ;;  %v596_v39 = vmul.f32 %v446_v8, %v5879_v46  ;;  %v135_v30 = vld [vmem:[#allocation4 + $0x2d8] sm:$0xff]  ;;  %v136_v8 = vld [vmem:[#allocation4 + $0x2e0] sm:$0xff] }
 0x210   :  { %v4424_v6 = vpop.eup %4423  ;;  %v3111_v2 = vxor.u32 %v2961_v44, %v2811_v24  ;;  %v2064_v22 = vshrl.u32 %v1914_v32, 16  ;;  %v1493_v50 = vmul.f32 0.5, %v1343_v15  ;;  %v2363_v35 = vmul.u32 2146121005, %v2213_v14 }
 0x211   :  { %v4180_v61 = vxor.u32 2147483648, %v3110_v58  ;;  %v1344_v26 = vadd.f32 1.0, %v4424_v6  ;;  %v2962_v28 = vshrl.u32 %v2812_v33, 16  ;;  %v895_v45 = vadd.f32 %v745_v42, %v5872_v63 }
 0x212   :  { %v4181_v10 = vxor.u32 2147483648, %v3111_v2  ;;  %v746_v57 = vmul.f32 0.044715, %v596_v39  ;;  %v1643_v11 = vmul.f32 %v1493_v50, %v5836_v20  ;;  %v2513_v0 = vshrl.u32 %v2363_v35, 15 }
 0x213   :  { %vm3430_vm4 = vcmp.ge.s32.totalorder %v4180_v61, 2576980378  ;;  %v1494_v31 = vmul.f32 0.5, %v1344_v26  ;;  %v3112_v59 = vxor.u32 %v2962_v28, %v2812_v33  ;;  %v1045_v53 = vmul.f32 0.7978846, %v895_v45 }
 0x214   :  { %v3860_v47 = vsel %vm3430_vm4, %v3710_v41, 0.0  ;;  %vm5891_vm5 = vcmp.ge.s32.totalorder %v4181_v10, 2576980378  ;;  %v3711_v49 = vmul.f32 1.1111112, %v1643_v11  ;;  %v896_v37 = vadd.f32 %v746_v57, %v5879_v46 }
 0x215   :  { %4010 = vst [vmem:[#allocation9 + $0x2a0] sm:$0xff] %v3860_v47  ;;  %v1644_v29 = vmul.f32 %v1494_v31, %v5844_v38  ;;  %v4182_v55 = vxor.u32 2147483648, %v3112_v59  ;;  %4425 = vtanh.f32 %v1045_v53  ;;  %v2663_v20 = vxor.u32 %v2513_v0, %v2363_v35 }
 0x216   :  { %v2214_v62 = vxor.u32 %v2064_v22, %v1914_v32  ;;  %v5898_v56 = vadd.f32 %v4757_v51, %v133_v48  ;;  %v3861_v60 = vsel %vm5891_vm5, %v3711_v49, 0.0  ;;  %v1915_v24 = vadd.s32 %v4762_v54, %v5839_v16 }
 0x217   :  { %vm3436_vm6 = vcmp.ge.s32.totalorder %v4182_v55, 2576980378  ;;  %v3712_v41 = vmul.f32 1.1111112, %v1644_v29  ;;  %4011 = vst [vmem:[#allocation9 + $0x2a8] sm:$0xff] %v3861_v60  ;;  %v5907_v34 = vadd.f32 %v4692_v19, %v134_v17  ;;  %v1724_v4 = vadd.s32 120, %v4663_v1 }
 0x218   :  { %v2813_v38 = vmul.u32 2221713035, %v2663_v20  ;;  %v1046_v7 = vmul.f32 0.7978846, %v896_v37  ;;  %v447_v23 = vmul.f32 %v5898_v56, %v5898_v56  ;;  %v2364_v36 = vmul.u32 2146121005, %v2214_v62 }
 0x219   :  { %v3862_v52 = vsel %vm3436_vm6, %v3712_v41, 0.0  ;;  %v2065_v44 = vshrl.u32 %v1915_v24, 16  ;;  %v448_v58 = vmul.f32 %v5907_v34, %v5907_v34  ;;  %v1784_v14 = vmul.u32 2654435761, %v1724_v4 }
 0x21a   :  { %4012 = vst [vmem:[#allocation9 + $0x2b0] sm:$0xff] %v3862_v52  ;;  %v2963_v32 = vshrl.u32 %v2813_v38, 16  ;;  %4427 = vtanh.f32 %v1046_v7  ;;  %v597_v16 = vmul.f32 %v447_v23, %v5898_v56  ;;  %v2514_v15 = vshrl.u32 %v2364_v36, 15 }
 0x21b   :  { %v2215_v33 = vxor.u32 %v2065_v44, %v1915_v24  ;;  %v5914_v6 = vadd.f32 %v4697_v21, %v135_v30  ;;  %v4426_v2 = vpop.eup %4425  ;;  %v598_v22 = vmul.f32 %v448_v58, %v5907_v34  ;;  %v5918_v61 = vadd.f32 %v4702_v25, %v136_v8 }
 0x21c   :  { %v3113_v42 = vxor.u32 %v2963_v32, %v2813_v38  ;;  %v747_v39 = vmul.f32 0.044715, %v597_v16  ;;  %v1345_v50 = vadd.f32 1.0, %v4426_v2  ;;  %v2664_v26 = vxor.u32 %v2514_v15, %v2364_v36 }
 0x21d   :  { %v2365_v28 = vmul.u32 2146121005, %v2215_v33  ;;  %v5921_v10 = vadd.s32 %v4668_v3, %v1784_v14  ;;  %v748_v57 = vmul.f32 0.044715, %v598_v22  ;;  %v449_v11 = vmul.f32 %v5914_v6, %v5914_v6 }
 0x21e   :  { %v4183_v45 = vxor.u32 2147483648, %v3113_v42  ;;  %v897_v35 = vadd.f32 %v747_v39, %v5898_v56  ;;  %v1495_v31 = vmul.f32 0.5, %v1345_v50  ;;  %v2814_v59 = vmul.u32 2221713035, %v2664_v26  ;;  %v137_v42 = vld [vmem:[#allocation4 + $0x2e8] sm:$0xff] }
 0x21f   :  { %v2515_v48 = vshrl.u32 %v2365_v28, 15  ;;  %v1916_v47 = vadd.s32 %v4671_v5, %v5921_v10  ;;  %v898_v49 = vadd.f32 %v748_v57, %v5907_v34  ;;  %v599_v29 = vmul.f32 %v449_v11, %v5914_v6 }
 0x220   :  { %v4428_v9 = vpop.eup %4427  ;;  %vm5928_vm7 = vcmp.ge.s32.totalorder %v4183_v45, 2576980378  ;;  %v1047_v0 = vmul.f32 0.7978846, %v897_v35  ;;  %v1645_v55 = vmul.f32 %v1495_v31, %v5872_v63  ;;  %v2964_v17 = vshrl.u32 %v2814_v59, 16 }
 0x221   :  { %v1346_v37 = vadd.f32 1.0, %v4428_v9  ;;  %v2665_v20 = vxor.u32 %v2515_v48, %v2365_v28  ;;  %v1048_v62 = vmul.f32 0.7978846, %v898_v49  ;;  %v2066_v60 = vshrl.u32 %v1916_v47, 16 }
 0x222   :  { %4429 = vtanh.f32 %v1047_v0  ;;  %v749_v41 = vmul.f32 0.044715, %v599_v29  ;;  %v3713_v24 = vmul.f32 1.1111112, %v1645_v55  ;;  %v3114_v7 = vxor.u32 %v2964_v17, %v2814_v59 }
 0x223   :  { %v1496_v38 = vmul.f32 0.5, %v1346_v37  ;;  %v2815_v23 = vmul.u32 2221713035, %v2665_v20  ;;  %4431 = vtanh.f32 %v1048_v62  ;;  %v2216_v30 = vxor.u32 %v2066_v60, %v1916_v47 }
 0x224   :  { %v899_v52 = vadd.f32 %v749_v41, %v5914_v6  ;;  %v1917_v36 = vadd.s32 %v4680_v12, %v5921_v10  ;;  %v3863_v63 = vsel %vm5928_vm7, %v3713_v24, 0.0  ;;  %v4184_v4 = vxor.u32 2147483648, %v3114_v7 }
 0x225   :  { %v1646_v44 = vmul.f32 %v1496_v38, %v5879_v46  ;;  %v2965_v8 = vshrl.u32 %v2815_v23, 16  ;;  %4013 = vst [vmem:[#allocation9 + $0x2b8] sm:$0xff] %v3863_v63  ;;  %v2366_v32 = vmul.u32 2146121005, %v2216_v30  ;;  %v450_v15 = vmul.f32 %v5918_v61, %v5918_v61 }
 0x226   :  { %v1049_v16 = vmul.f32 0.7978846, %v899_v52  ;;  %v2067_v58 = vshrl.u32 %v1917_v36, 16  ;;  %vm3442_vm8 = vcmp.ge.s32.totalorder %v4184_v4, 2576980378  ;;  %v1918_v2 = vadd.s32 %v4682_v13, %v5921_v10 }
 0x227   :  { %v3714_v33 = vmul.f32 1.1111112, %v1646_v44  ;;  %v3115_v14 = vxor.u32 %v2965_v8, %v2815_v23  ;;  %v2516_v22 = vshrl.u32 %v2366_v32, 15  ;;  %v600_v50 = vmul.f32 %v450_v15, %v5918_v61  ;;  %v138_v8 = vld [vmem:[#allocation4 + $0x2f0] sm:$0xff] }
 0x228   :  { %v4430_v39 = vpop.eup %4429  ;;  %4433 = vtanh.f32 %v1049_v16  ;;  %v2217_v46 = vxor.u32 %v2067_v58, %v1917_v36  ;;  %v2068_v35 = vshrl.u32 %v1918_v2, 16  ;;  %v5947_v48 = vadd.f32 %v4707_v27, %v137_v42 }
 0x229   :  { %v3864_v26 = vsel %vm3442_vm8, %v3714_v33, 0.0  ;;  %v1347_v28 = vadd.f32 1.0, %v4430_v39  ;;  %v4185_v45 = vxor.u32 2147483648, %v3115_v14  ;;  %v4432_v57 = vpop.eup %4431  ;;  %v2666_v11 = vxor.u32 %v2516_v22, %v2366_v32 }
 0x22a   :  { %4014 = vst [vmem:[#allocation9 + $0x2c0] sm:$0xff] %v3864_v26  ;;  %v2367_v31 = vmul.u32 2146121005, %v2217_v46  ;;  %v750_v59 = vmul.f32 0.044715, %v600_v50  ;;  %v1348_v53 = vadd.f32 1.0, %v4432_v57  ;;  %v2218_v0 = vxor.u32 %v2068_v35, %v1918_v2 }
 0x22b   :  { %v1497_v47 = vmul.f32 0.5, %v1347_v28  ;;  %vm5949_vm9 = vcmp.ge.s32.totalorder %v4185_v45, 2576980378  ;;  %v2816_v49 = vmul.u32 2221713035, %v2666_v11  ;;  %v451_v37 = vmul.f32 %v5947_v48, %v5947_v48  ;;  %v139_v45 = vld [vmem:[#allocation4 + $0x2f8] sm:$0xff] }
 0x22c   :  { %v2517_v29 = vshrl.u32 %v2367_v31, 15  ;;  %v900_v55 = vadd.f32 %v750_v59, %v5918_v61  ;;  %v1498_v20 = vmul.f32 0.5, %v1348_v53  ;;  %v2368_v62 = vmul.u32 2146121005, %v2218_v0 }
 0x22d   :  { %v1647_v17 = vmul.f32 %v1497_v47, %v5898_v56  ;;  %v1919_v60 = vadd.s32 %v4689_v18, %v5921_v10  ;;  %v2966_v24 = vshrl.u32 %v2816_v49, 16  ;;  %v601_v23 = vmul.f32 %v451_v37, %v5947_v48 }
 0x22e   :  { %v4434_v41 = vpop.eup %4433  ;;  %v2667_v38 = vxor.u32 %v2517_v29, %v2367_v31  ;;  %v1050_v7 = vmul.f32 0.7978846, %v900_v55  ;;  %v1648_v52 = vmul.f32 %v1498_v20, %v5907_v34  ;;  %v2518_v63 = vshrl.u32 %v2368_v62, 15  ;;  %v140_v20 = vld [vmem:[#allocation4 + $0x300] sm:$0xff] }
 0x22f   :  { %v3715_v30 = vmul.f32 1.1111112, %v1647_v17  ;;  %v1349_v36 = vadd.f32 1.0, %v4434_v41  ;;  %v3116_v44 = vxor.u32 %v2966_v24, %v2816_v49  ;;  %v751_v56 = vmul.f32 0.044715, %v601_v23 }
 0x230   :  { %v2817_v4 = vmul.u32 2221713035, %v2667_v38  ;;  %4435 = vtanh.f32 %v1050_v7  ;;  %v3716_v16 = vmul.f32 1.1111112, %v1648_v52  ;;  %v2668_v15 = vxor.u32 %v2518_v63, %v2368_v62 }
 0x231   :  { %v3865_v32 = vsel %vm5949_vm9, %v3715_v30, 0.0  ;;  %v1499_v58 = vmul.f32 0.5, %v1349_v36  ;;  %v4186_v33 = vxor.u32 2147483648, %v3116_v44  ;;  %v901_v2 = vadd.f32 %v751_v56, %v5947_v48 }
 0x232   :  { %4015 = vst [vmem:[#allocation9 + $0x2c8] sm:$0xff] %v3865_v32  ;;  %v2967_v14 = vshrl.u32 %v2817_v4, 16  ;;  %v2069_v42 = vshrl.u32 %v1919_v60, 16  ;;  %v2818_v39 = vmul.u32 2221713035, %v2668_v15  ;;  %v5966_v22 = vadd.f32 %v4746_v40, %v138_v8 }
 0x233   :  { %v1649_v34 = vmul.f32 %v1499_v58, %v5914_v6  ;;  %v1920_v46 = vadd.s32 %v4749_v43, %v5921_v10  ;;  %vm3448_vm10 = vcmp.ge.s32.totalorder %v4186_v33, 2576980378  ;;  %v1051_v26 = vmul.f32 0.7978846, %v901_v2 }
 0x234   :  { %v3117_v50 = vxor.u32 %v2967_v14, %v2817_v4  ;;  %v2219_v28 = vxor.u32 %v2069_v42, %v1919_v60  ;;  %v3866_v35 = vsel %vm3448_vm10, %v3716_v16, 0.0  ;;  %v2968_v11 = vshrl.u32 %v2818_v39, 16 }
 0x235   :  { %v3717_v57 = vmul.f32 1.1111112, %v1649_v34  ;;  %v452_v31 = vmul.f32 %v5966_v22, %v5966_v22  ;;  %4016 = vst [vmem:[#allocation9 + $0x2d0] sm:$0xff] %v3866_v35  ;;  %4437 = vtanh.f32 %v1051_v26  ;;  %v2070_v9 = vshrl.u32 %v1920_v46, 16  ;;  %v141_v34 = vld [vmem:[#allocation4 + $0x308] sm:$0xff] }
 0x236   :  { %v4436_v59 = vpop.eup %4435  ;;  %v4187_v6 = vxor.u32 2147483648, %v3117_v50  ;;  %v2369_v47 = vmul.u32 2146121005, %v2219_v28  ;;  %v3118_v0 = vxor.u32 %v2968_v11, %v2818_v39  ;;  %v5974_v29 = vadd.f32 %v4757_v51, %v139_v45 }
 0x237   :  { %v1350_v53 = vadd.f32 1.0, %v4436_v59  ;;  %v602_v49 = vmul.f32 %v452_v31, %v5966_v22  ;;  %v2220_v37 = vxor.u32 %v2070_v9, %v1920_v46  ;;  %v1921_v17 = vadd.s32 %v4762_v54, %v5921_v10 }
 0x238   :  { %vm3451_vm11 = vcmp.ge.s32.totalorder %v4187_v6, 2576980378  ;;  %v2519_v55 = vshrl.u32 %v2369_v47, 15  ;;  %v4188_v41 = vxor.u32 2147483648, %v3118_v0  ;;  %v453_v23 = vmul.f32 %v5974_v29, %v5974_v29 }
 0x239   :  { %v3867_v62 = vsel %vm3451_vm11, %v3717_v57, 0.0  ;;  %v1500_v60 = vmul.f32 0.5, %v1350_v53  ;;  %v752_v24 = vmul.f32 0.044715, %v602_v49  ;;  %v2370_v7 = vmul.u32 2146121005, %v2220_v37 }
 0x23a   :  { %4017 = vst [vmem:[#allocation9 + $0x2d8] sm:$0xff] %v3867_v62  ;;  %v2669_v38 = vxor.u32 %v2519_v55, %v2369_v47  ;;  %v2071_v30 = vshrl.u32 %v1921_v17, 16  ;;  %vm5981_vm12 = vcmp.ge.s32.totalorder %v4188_v41, 2576980378  ;;  %v5987_v63 = vadd.f32 %v4692_v19, %v140_v20 }
 0x23b   :  { %v1650_v52 = vmul.f32 %v1500_v60, %v5918_v61  ;;  %v902_v10 = vadd.f32 %v752_v24, %v5966_v22  ;;  %v4438_v44 = vpop.eup %4437  ;;  %v2520_v56 = vshrl.u32 %v2370_v7, 15  ;;  %v603_v8 = vmul.f32 %v453_v23, %v5974_v29 }
 0x23c   :  { %v2819_v4 = vmul.u32 2221713035, %v2669_v38  ;;  %v2221_v32 = vxor.u32 %v2071_v30, %v1921_v17  ;;  %v1351_v58 = vadd.f32 1.0, %v4438_v44  ;;  %v454_v61 = vmul.f32 %v5987_v63, %v5987_v63  ;;  %v142_v17 = vld [vmem:[#allocation4 + $0x310] sm:$0xff] }
 0x23d   :  { %v3718_v16 = vmul.f32 1.1111112, %v1650_v52  ;;  %v1052_v15 = vmul.f32 0.7978846, %v902_v10  ;;  %v2670_v14 = vxor.u32 %v2520_v56, %v2370_v7  ;;  %v753_v2 = vmul.f32 0.044715, %v603_v8 }
 0x23e   :  { %v2969_v33 = vshrl.u32 %v2819_v4, 16  ;;  %v2371_v42 = vmul.u32 2146121005, %v2221_v32  ;;  %v1501_v46 = vmul.f32 0.5, %v1351_v58  ;;  %v604_v50 = vmul.f32 %v454_v61, %v5987_v63 }
 0x23f   :  { %v3868_v39 = vsel %vm5981_vm12, %v3718_v16, 0.0  ;;  %4439 = vtanh.f32 %v1052_v15  ;;  %v2820_v28 = vmul.u32 2221713035, %v2670_v14  ;;  %v903_v45 = vadd.f32 %v753_v2, %v5974_v29 }
 0x240   :  { %4018 = vst [vmem:[#allocation9 + $0x2e0] sm:$0xff] %v3868_v39  ;;  %v3119_v26 = vxor.u32 %v2969_v33, %v2819_v4  ;;  %v2521_v35 = vshrl.u32 %v2371_v42, 15  ;;  %v1651_v57 = vmul.f32 %v1501_v46, %v5947_v48  ;;  %v754_v11 = vmul.f32 0.044715, %v604_v50  ;;  %v143_v4 = vld [vmem:[#allocation4 + $0x318] sm:$0xff] }
 0x241   :  { %v1725_v31 = vadd.s32 128, %v4663_v1  ;;  %v5999_v59 = vadd.f32 %v4697_v21, %v141_v34  ;;  %v2970_v47 = vshrl.u32 %v2820_v28, 16  ;;  %v1053_v9 = vmul.f32 0.7978846, %v903_v45 }
 0x242   :  { %v4189_v6 = vxor.u32 2147483648, %v3119_v26  ;;  %v2671_v53 = vxor.u32 %v2521_v35, %v2371_v42  ;;  %v3719_v0 = vmul.f32 1.1111112, %v1651_v57  ;;  %v904_v49 = vadd.f32 %v754_v11, %v5987_v63 }
 0x243   :  { %v1785_v55 = vmul.u32 2654435761, %v1725_v31  ;;  %v455_v37 = vmul.f32 %v5999_v59, %v5999_v59  ;;  %v3120_v48 = vxor.u32 %v2970_v47, %v2820_v28  ;;  %4441 = vtanh.f32 %v1053_v9 }
 0x244   :  { %vm3457_vm13 = vcmp.ge.s32.totalorder %v4189_v6, 2576980378  ;;  %v2821_v20 = vmul.u32 2221713035, %v2671_v53  ;;  %v1054_v41 = vmul.f32 0.7978846, %v904_v49  ;;  %v6009_v52 = vadd.f32 %v4702_v25, %v142_v17 }
 0x245   :  { %v4440_v62 = vpop.eup %4439  ;;  %v3869_v60 = vsel %vm3457_vm13, %v3719_v0, 0.0  ;;  %v6005_v24 = vadd.s32 %v4668_v3, %v1785_v55  ;;  %v605_v38 = vmul.f32 %v455_v37, %v5999_v59  ;;  %v4190_v23 = vxor.u32 2147483648, %v3120_v48 }
 0x246   :  { %4019 = vst [vmem:[#allocation9 + $0x2e8] sm:$0xff] %v3869_v60  ;;  %v1352_v7 = vadd.f32 1.0, %v4440_v62  ;;  %v2971_v30 = vshrl.u32 %v2821_v20, 16  ;;  %4443 = vtanh.f32 %v1054_v41  ;;  %v456_v16 = vmul.f32 %v6009_v52, %v6009_v52 }
 0x247   :  { %v1922_v36 = vadd.s32 %v4671_v5, %v6005_v24  ;;  %v755_v10 = vmul.f32 0.044715, %v605_v38  ;;  %v1923_v44 = vadd.s32 %v4680_v12, %v6005_v24  ;;  %vm6015_vm14 = vcmp.ge.s32.totalorder %v4190_v23, 2576980378 }
 0x248   :  { %v1502_v56 = vmul.f32 0.5, %v1352_v7  ;;  %v3121_v32 = vxor.u32 %v2971_v30, %v2821_v20  ;;  %v1924_v33 = vadd.s32 %v4682_v13, %v6005_v24  ;;  %v606_v34 = vmul.f32 %v456_v16, %v6009_v52 }
 0x249   :  { %v2072_v58 = vshrl.u32 %v1922_v36, 16  ;;  %v905_v15 = vadd.f32 %v755_v10, %v5999_v59  ;;  %v2073_v61 = vshrl.u32 %v1923_v44, 16  ;;  %v4442_v14 = vpop.eup %4441  ;;  %v6027_v39 = vadd.f32 %v4707_v27, %v143_v4 }
 0x24a   :  { %v1652_v2 = vmul.f32 %v1502_v56, %v5966_v22  ;;  %v4191_v42 = vxor.u32 2147483648, %v3121_v32  ;;  %v1353_v46 = vadd.f32 1.0, %v4442_v14  ;;  %v756_v57 = vmul.f32 0.044715, %v606_v34 }
 0x24b   :  { %v2222_v50 = vxor.u32 %v2072_v58, %v1922_v36  ;;  %v1055_v26 = vmul.f32 0.7978846, %v905_v15  ;;  %v2223_v28 = vxor.u32 %v2073_v61, %v1923_v44  ;;  %v457_v11 = vmul.f32 %v6027_v39, %v6027_v39 }
 0x24c   :  { %v3720_v45 = vmul.f32 1.1111112, %v1652_v2  ;;  %vm6029_vm15 = vcmp.ge.s32.totalorder %v4191_v42, 2576980378  ;;  %v4444_v22 = vpop.eup %4443  ;;  %v1503_v31 = vmul.f32 0.5, %v1353_v46  ;;  %v906_v0 = vadd.f32 %v756_v57, %v6009_v52 }
 0x24d   :  { %v2372_v6 = vmul.u32 2146121005, %v2222_v50  ;;  %4445 = vtanh.f32 %v1055_v26  ;;  %v2373_v47 = vmul.u32 2146121005, %v2223_v28  ;;  %v1354_v53 = vadd.f32 1.0, %v4444_v22 }
 0x24e   :  { %v3870_v9 = vsel %vm6015_vm14, %v3720_v45, 0.0  ;;  %v2074_v49 = vshrl.u32 %v1924_v33, 16  ;;  %v1653_v55 = vmul.f32 %v1503_v31, %v5974_v29  ;;  %v607_v48 = vmul.f32 %v457_v11, %v6027_v39  ;;  %v144_v29 = vld [vmem:[#allocation4 + $0x320] sm:$0xff] }
 0x24f   :  { %4020 = vst [vmem:[#allocation9 + $0x2f0] sm:$0xff] %v3870_v9  ;;  %v2522_v37 = vshrl.u32 %v2372_v6, 15  ;;  %v2523_v17 = vshrl.u32 %v2373_v47, 15  ;;  %v1504_v20 = vmul.f32 0.5, %v1354_v53  ;;  %v1056_v62 = vmul.f32 0.7978846, %v906_v0 }
 0x250   :  { %v2224_v60 = vxor.u32 %v2074_v49, %v1924_v33  ;;  %v1925_v41 = vadd.s32 %v4689_v18, %v6005_v24  ;;  %v3721_v38 = vmul.f32 1.1111112, %v1653_v55  ;;  %v757_v30 = vmul.f32 0.044715, %v607_v48 }
 0x251   :  { %v2672_v7 = vxor.u32 %v2522_v37, %v2372_v6  ;;  %v2673_v23 = vxor.u32 %v2523_v17, %v2373_v47  ;;  %v1654_v36 = vmul.f32 %v1504_v20, %v5987_v63  ;;  %4447 = vtanh.f32 %v1056_v62  ;;  %v145_v47 = vld [vmem:[#allocation4 + $0x328] sm:$0xff] }
 0x252   :  { %v2374_v10 = vmul.u32 2146121005, %v2224_v60  ;;  %v2075_v44 = vshrl.u32 %v1925_v41, 16  ;;  %v3871_v56 = vsel %vm6029_vm15, %v3721_v38, 0.0  ;;  %v907_v16 = vadd.f32 %v757_v30, %v6027_v39 }
 0x253   :  { %v4446_v4 = vpop.eup %4445  ;;  %v2822_v8 = vmul.u32 2221713035, %v2672_v7  ;;  %v2823_v32 = vmul.u32 2221713035, %v2673_v23  ;;  %4021 = vst [vmem:[#allocation9 + $0x2f8] sm:$0xff] %v3871_v56  ;;  %v6047_v42 = vadd.f32 %v4746_v40, %v144_v29  ;;  %v1926_v26 = vadd.s32 %v4749_v43, %v6005_v24 }
 0x254   :  { %v3722_v58 = vmul.f32 1.1111112, %v1654_v36  ;;  %v1355_v15 = vadd.f32 1.0, %v4446_v4  ;;  %v2524_v61 = vshrl.u32 %v2374_v10, 15  ;;  %v2225_v33 = vxor.u32 %v2075_v44, %v1925_v41 }
 0x255   :  { %v2972_v14 = vshrl.u32 %v2822_v8, 16  ;;  %v2973_v2 = vshrl.u32 %v2823_v32, 16  ;;  %v1057_v63 = vmul.f32 0.7978846, %v907_v16  ;;  %v458_v35 = vmul.f32 %v6047_v42, %v6047_v42 }
 0x256   :  { %v1505_v34 = vmul.f32 0.5, %v1355_v15  ;;  %v2674_v46 = vxor.u32 %v2524_v61, %v2374_v10  ;;  %v2375_v50 = vmul.u32 2146121005, %v2225_v33  ;;  %v2076_v6 = vshrl.u32 %v1926_v26, 16  ;;  %v146_v15 = vld [vmem:[#allocation4 + $0x330] sm:$0xff] }
 0x257   :  { %v3122_v28 = vxor.u32 %v2972_v14, %v2822_v8  ;;  %v3123_v45 = vxor.u32 %v2973_v2, %v2823_v32  ;;  %4449 = vtanh.f32 %v1057_v63  ;;  %v4448_v57 = vpop.eup %4447  ;;  %v608_v49 = vmul.f32 %v458_v35, %v6047_v42 }
 0x258   :  { %v1655_v11 = vmul.f32 %v1505_v34, %v5999_v59  ;;  %v2824_v22 = vmul.u32 2221713035, %v2674_v46  ;;  %v2525_v31 = vshrl.u32 %v2375_v50, 15  ;;  %v1356_v0 = vadd.f32 1.0, %v4448_v57 }
 0x259   :  { %v4192_v9 = vxor.u32 2147483648, %v3122_v28  ;;  %v4193_v53 = vxor.u32 2147483648, %v3123_v45  ;;  %v2226_v48 = vxor.u32 %v2076_v6, %v1926_v26  ;;  %v6056_v62 = vadd.f32 %v4757_v51, %v145_v47  ;;  %v147_v28 = vld [vmem:[#allocation4 + $0x338] sm:$0xff] }
 0x25a   :  { %v3723_v55 = vmul.f32 1.1111112, %v1655_v11  ;;  %v2974_v37 = vshrl.u32 %v2824_v22, 16  ;;  %v2675_v17 = vxor.u32 %v2525_v31, %v2375_v50  ;;  %v1506_v20 = vmul.f32 0.5, %v1356_v0  ;;  %v148_v11 = vld [vmem:[#allocation4 + $0x340] sm:$0xff]  ;;  %v149_v0 = vld [vmem:[#allocation4 + $0x348] sm:$0xff] }
 0x25b   :  { %vm3466_vm0 = vcmp.ge.s32.totalorder %v4192_v9, 2576980378  ;;  %vm3469_vm1 = vcmp.ge.s32.totalorder %v4193_v53, 2576980378  ;;  %v758_v30 = vmul.f32 0.044715, %v608_v49  ;;  %v459_v10 = vmul.f32 %v6056_v62, %v6056_v62 }
 0x25c   :  { %v3872_v59 = vsel %vm3466_vm0, %v3722_v58, 0.0  ;;  %v3873_v60 = vsel %vm3469_vm1, %v3723_v55, 0.0  ;;  %v3124_v41 = vxor.u32 %v2974_v37, %v2824_v22  ;;  %v2825_v38 = vmul.u32 2221713035, %v2675_v17 }
 0x25d   :  { %v4450_v7 = vpop.eup %4449  ;;  %4022 = vst [vmem:[#allocation9 + $0x300] sm:$0xff] %v3872_v59  ;;  %v1656_v23 = vmul.f32 %v1506_v20, %v6009_v52  ;;  %v2376_v36 = vmul.u32 2146121005, %v2226_v48  ;;  %v1927_v56 = vadd.s32 %v4762_v54, %v6005_v24  ;;  %v908_v32 = vadd.f32 %v758_v30, %v6047_v42 }
 0x25e   :  { %4023 = vst [vmem:[#allocation9 + $0x308] sm:$0xff] %v3873_v60  ;;  %v4194_v44 = vxor.u32 2147483648, %v3124_v41  ;;  %v1357_v29 = vadd.f32 1.0, %v4450_v7  ;;  %v2975_v4 = vshrl.u32 %v2825_v38, 16  ;;  %v609_v58 = vmul.f32 %v459_v10, %v6056_v62 }
 0x25f   :  { %v3724_v8 = vmul.f32 1.1111112, %v1656_v23  ;;  %v2526_v16 = vshrl.u32 %v2376_v36, 15  ;;  %v2077_v33 = vshrl.u32 %v1927_v56, 16  ;;  %v1058_v2 = vmul.f32 0.7978846, %v908_v32 }
 0x260   :  { %vm3472_vm2 = vcmp.ge.s32.totalorder %v4194_v44, 2576980378  ;;  %v1507_v52 = vmul.f32 0.5, %v1357_v29  ;;  %v3125_v61 = vxor.u32 %v2975_v4, %v2825_v38  ;;  %v759_v34 = vmul.f32 0.044715, %v609_v58 }
 0x261   :  { %v3874_v14 = vsel %vm3472_vm2, %v3724_v8, 0.0  ;;  %v2676_v63 = vxor.u32 %v2526_v16, %v2376_v36  ;;  %v2227_v24 = vxor.u32 %v2077_v33, %v1927_v56  ;;  %v6067_v26 = vadd.f32 %v4692_v19, %v146_v15 }
 0x262   :  { %4024 = vst [vmem:[#allocation9 + $0x310] sm:$0xff] %v3874_v14  ;;  %v1657_v46 = vmul.f32 %v1507_v52, %v6027_v39  ;;  %v4195_v50 = vxor.u32 2147483648, %v3125_v61  ;;  %4451 = vtanh.f32 %v1058_v2  ;;  %v909_v35 = vadd.f32 %v759_v34, %v6056_v62 }
 0x263   :  { %v2826_v45 = vmul.u32 2221713035, %v2676_v63  ;;  %v1726_v57 = vadd.s32 136, %v4663_v1  ;;  %v2377_v31 = vmul.u32 2146121005, %v2227_v24  ;;  %v460_v6 = vmul.f32 %v6067_v26, %v6067_v26 }
 0x264   :  { %vm3475_vm3 = vcmp.ge.s32.totalorder %v4195_v50, 2576980378  ;;  %v3725_v22 = vmul.f32 1.1111112, %v1657_v46  ;;  %v1059_v47 = vmul.f32 0.7978846, %v909_v35  ;;  %v6074_v53 = vadd.f32 %v4697_v21, %v147_v28 }
 0x265   :  { %v2976_v39 = vshrl.u32 %v2826_v45, 16  ;;  %v1786_v9 = vmul.u32 2654435761, %v1726_v57  ;;  %v2527_v55 = vshrl.u32 %v2377_v31, 15  ;;  %v610_v37 = vmul.f32 %v460_v6, %v6067_v26 }
 0x266   :  { %v3875_v49 = vsel %vm3475_vm3, %v3725_v22, 0.0  ;;  %v6078_v17 = vadd.f32 %v4702_v25, %v148_v11  ;;  %4453 = vtanh.f32 %v1059_v47  ;;  %v461_v59 = vmul.f32 %v6074_v53, %v6074_v53 }
 0x267   :  { %4025 = vst [vmem:[#allocation9 + $0x318] sm:$0xff] %v3875_v49  ;;  %v3126_v48 = vxor.u32 %v2976_v39, %v2826_v45  ;;  %v6081_v20 = vadd.s32 %v4668_v3, %v1786_v9  ;;  %v2677_v60 = vxor.u32 %v2527_v55, %v2377_v31  ;;  %v760_v41 = vmul.f32 0.044715, %v610_v37  ;;  %v150_v55 = vld [vmem:[#allocation4 + $0x350] sm:$0xff] }
 0x268   :  { %v462_v38 = vmul.f32 %v6078_v17, %v6078_v17  ;;  %v6088_v7 = vadd.f32 %v4707_v27, %v149_v0  ;;  %v4452_v23 = vpop.eup %4451  ;;  %v611_v10 = vmul.f32 %v461_v59, %v6074_v53 }
 0x269   :  { %v4196_v30 = vxor.u32 2147483648, %v3126_v48  ;;  %v1928_v36 = vadd.s32 %v4671_v5, %v6081_v20  ;;  %v1929_v44 = vadd.s32 %v4680_v12, %v6081_v20  ;;  %v1358_v29 = vadd.f32 1.0, %v4452_v23 }
 0x26a   :  { %v2827_v4 = vmul.u32 2221713035, %v2677_v60  ;;  %v910_v56 = vadd.f32 %v760_v41, %v6067_v26  ;;  %v612_v8 = vmul.f32 %v462_v38, %v6078_v17  ;;  %v761_v58 = vmul.f32 0.044715, %v611_v10 }
 0x26b   :  { %vm6097_vm4 = vcmp.ge.s32.totalorder %v4196_v30, 2576980378  ;;  %v2078_v16 = vshrl.u32 %v1928_v36, 16  ;;  %v2079_v15 = vshrl.u32 %v1929_v44, 16  ;;  %v1508_v52 = vmul.f32 0.5, %v1358_v29 }
 0x26c   :  { %v2977_v61 = vshrl.u32 %v2827_v4, 16  ;;  %v1060_v33 = vmul.f32 0.7978846, %v910_v56  ;;  %v762_v14 = vmul.f32 0.044715, %v612_v8  ;;  %v4454_v2 = vpop.eup %4453  ;;  %v911_v34 = vadd.f32 %v761_v58, %v6074_v53 }
 0x26d   :  { %v2228_v63 = vxor.u32 %v2078_v16, %v1928_v36  ;;  %v2229_v46 = vxor.u32 %v2079_v15, %v1929_v44  ;;  %v1930_v50 = vadd.s32 %v4682_v13, %v6081_v20  ;;  %v1658_v24 = vmul.f32 %v1508_v52, %v6047_v42 }
 0x26e   :  { %v1359_v28 = vadd.f32 1.0, %v4454_v2  ;;  %v3127_v45 = vxor.u32 %v2977_v61, %v2827_v4  ;;  %4455 = vtanh.f32 %v1060_v33  ;;  %v1061_v57 = vmul.f32 0.7978846, %v911_v34 }
 0x26f   :  { %v2378_v35 = vmul.u32 2146121005, %v2228_v63  ;;  %v2379_v11 = vmul.u32 2146121005, %v2229_v46  ;;  %v912_v22 = vadd.f32 %v762_v14, %v6078_v17  ;;  %v3726_v31 = vmul.f32 1.1111112, %v1658_v24 }
 0x270   :  { %v1509_v6 = vmul.f32 0.5, %v1359_v28  ;;  %v4197_v39 = vxor.u32 2147483648, %v3127_v45  ;;  %v2080_v47 = vshrl.u32 %v1930_v50, 16  ;;  %4457 = vtanh.f32 %v1061_v57 }
 0x271   :  { %v2528_v9 = vshrl.u32 %v2378_v35, 15  ;;  %v2529_v0 = vshrl.u32 %v2379_v11, 15  ;;  %v1062_v49 = vmul.f32 0.7978846, %v912_v22  ;;  %v3876_v42 = vsel %vm6097_vm4, %v3726_v31, 0.0 }
 0x272   :  { %v1659_v37 = vmul.f32 %v1509_v6, %v6056_v62  ;;  %vm6109_vm5 = vcmp.ge.s32.totalorder %v4197_v39, 2576980378  ;;  %v2230_v59 = vxor.u32 %v2080_v47, %v1930_v50  ;;  %4026 = vst [vmem:[#allocation9 + $0x320] sm:$0xff] %v3876_v42  ;;  %v463_v38 = vmul.f32 %v6088_v7, %v6088_v7 }
 0x273   :  { %v2678_v60 = vxor.u32 %v2528_v9, %v2378_v35  ;;  %v2679_v41 = vxor.u32 %v2529_v0, %v2379_v11  ;;  %4459 = vtanh.f32 %v1062_v49  ;;  %v1931_v10 = vadd.s32 %v4689_v18, %v6081_v20 }
 0x274   :  { %v4456_v23 = vpop.eup %4455  ;;  %v3727_v30 = vmul.f32 1.1111112, %v1659_v37  ;;  %v2380_v36 = vmul.u32 2146121005, %v2230_v59  ;;  %v6118_v62 = vadd.f32 %v4746_v40, %v150_v55  ;;  %v613_v56 = vmul.f32 %v463_v38, %v6088_v7  ;;  %v151_v37 = vld [vmem:[#allocation4 + $0x358] sm:$0xff] }
 0x275   :  { %v1360_v44 = vadd.f32 1.0, %v4456_v23  ;;  %v2828_v29 = vmul.u32 2221713035, %v2678_v60  ;;  %v2829_v4 = vmul.u32 2221713035, %v2679_v41  ;;  %v2081_v16 = vshrl.u32 %v1931_v10, 16 }
 0x276   :  { %v3877_v8 = vsel %vm6109_vm5, %v3727_v30, 0.0  ;;  %v2530_v32 = vshrl.u32 %v2380_v36, 15  ;;  %v464_v58 = vmul.f32 %v6118_v62, %v6118_v62  ;;  %v4458_v15 = vpop.eup %4457  ;;  %v763_v14 = vmul.f32 0.044715, %v613_v56 }
 0x277   :  { %4027 = vst [vmem:[#allocation9 + $0x328] sm:$0xff] %v3877_v8  ;;  %v1510_v52 = vmul.f32 0.5, %v1360_v44  ;;  %v2978_v61 = vshrl.u32 %v2828_v29, 16  ;;  %v2979_v33 = vshrl.u32 %v2829_v4, 16  ;;  %v1361_v2 = vadd.f32 1.0, %v4458_v15 }
 0x278   :  { %v2680_v63 = vxor.u32 %v2530_v32, %v2380_v36  ;;  %v2231_v34 = vxor.u32 %v2081_v16, %v1931_v10  ;;  %v614_v46 = vmul.f32 %v464_v58, %v6118_v62  ;;  %v913_v35 = vadd.f32 %v763_v14, %v6088_v7  ;;  %v152_v10 = vld [vmem:[#allocation4 + $0x360] sm:$0xff] }
 0x279   :  { %v4460_v50 = vpop.eup %4459  ;;  %v1660_v24 = vmul.f32 %v1510_v52, %v6067_v26  ;;  %v3128_v28 = vxor.u32 %v2978_v61, %v2828_v29  ;;  %v3129_v45 = vxor.u32 %v2979_v33, %v2829_v4  ;;  %v1511_v57 = vmul.f32 0.5, %v1361_v2  ;;  %v153_v61 = vld [vmem:[#allocation4 + $0x368] sm:$0xff] }
 0x27a   :  { %v1362_v11 = vadd.f32 1.0, %v4460_v50  ;;  %v2830_v22 = vmul.u32 2221713035, %v2680_v63  ;;  %v2381_v31 = vmul.u32 2146121005, %v2231_v34  ;;  %v1932_v30 = vadd.s32 %v4749_v43, %v6081_v20 }
 0x27b   :  { %v4198_v6 = vxor.u32 2147483648, %v3128_v28  ;;  %v3728_v39 = vmul.f32 1.1111112, %v1660_v24  ;;  %v4199_v47 = vxor.u32 2147483648, %v3129_v45  ;;  %v1063_v9 = vmul.f32 0.7978846, %v913_v35 }
 0x27c   :  { %v1661_v0 = vmul.f32 %v1511_v57, %v6074_v53  ;;  %v1512_v49 = vmul.f32 0.5, %v1362_v11  ;;  %v2980_v55 = vshrl.u32 %v2830_v22, 16  ;;  %v2531_v42 = vshrl.u32 %v2381_v31, 15 }
 0x27d   :  { %vm3484_vm6 = vcmp.ge.s32.totalorder %v4198_v6, 2576980378  ;;  %vm6129_vm7 = vcmp.ge.s32.totalorder %v4199_v47, 2576980378  ;;  %4461 = vtanh.f32 %v1063_v9  ;;  %v764_v48 = vmul.f32 0.044715, %v614_v46 }
 0x27e   :  { %v3878_v59 = vsel %vm3484_vm6, %v3728_v39, 0.0  ;;  %v3729_v60 = vmul.f32 1.1111112, %v1661_v0  ;;  %v1662_v41 = vmul.f32 %v1512_v49, %v6078_v17  ;;  %v3130_v38 = vxor.u32 %v2980_v55, %v2830_v22 }
 0x27f   :  { %4028 = vst [vmem:[#allocation9 + $0x330] sm:$0xff] %v3878_v59  ;;  %v2681_v23 = vxor.u32 %v2531_v42, %v2381_v31  ;;  %v914_v53 = vadd.f32 %v764_v48, %v6118_v62  ;;  %v6138_v36 = vadd.f32 %v4757_v51, %v151_v37  ;;  %v1933_v17 = vadd.s32 %v4762_v54, %v6081_v20 }
 0x280   :  { %v3879_v44 = vsel %vm6129_vm7, %v3729_v60, 0.0  ;;  %v4200_v29 = vxor.u32 2147483648, %v3130_v38  ;;  %v3730_v4 = vmul.f32 1.1111112, %v1662_v41  ;;  %v2082_v32 = vshrl.u32 %v1932_v30, 16 }
 0x281   :  { %4029 = vst [vmem:[#allocation9 + $0x338] sm:$0xff] %v3879_v44  ;;  %v2831_v56 = vmul.u32 2221713035, %v2681_v23  ;;  %v1064_v8 = vmul.f32 0.7978846, %v914_v53  ;;  %v465_v16 = vmul.f32 %v6138_v36, %v6138_v36  ;;  %v2083_v58 = vshrl.u32 %v1933_v17, 16 }
 0x282   :  { %vm3490_vm8 = vcmp.ge.s32.totalorder %v4200_v29, 2576980378  ;;  %v6147_v15 = vadd.f32 %v4692_v19, %v152_v10  ;;  %v1727_v52 = vadd.s32 144, %v4663_v1  ;;  %v2232_v20 = vxor.u32 %v2082_v32, %v1932_v30  ;;  %v154_v29 = vld [vmem:[#allocation4 + $0x370] sm:$0xff] }
 0x283   :  { %v4462_v33 = vpop.eup %4461  ;;  %v3880_v14 = vsel %vm3490_vm8, %v3730_v4, 0.0  ;;  %v2981_v2 = vshrl.u32 %v2831_v56, 16  ;;  %4463 = vtanh.f32 %v1064_v8  ;;  %v615_v34 = vmul.f32 %v465_v16, %v6138_v36 }
 0x284   :  { %4030 = vst [vmem:[#allocation9 + $0x340] sm:$0xff] %v3880_v14  ;;  %v1363_v63 = vadd.f32 1.0, %v4462_v33  ;;  %v2233_v46 = vxor.u32 %v2083_v58, %v1933_v17  ;;  %v466_v50 = vmul.f32 %v6147_v15, %v6147_v15  ;;  %v2382_v28 = vmul.u32 2146121005, %v2232_v20 }
 0x285   :  { %v3131_v24 = vxor.u32 %v2981_v2, %v2831_v56  ;;  %v1787_v45 = vmul.u32 2654435761, %v1727_v52  ;;  %v6154_v35 = vadd.f32 %v4697_v21, %v153_v61  ;;  %v765_v11 = vmul.f32 0.044715, %v615_v34  ;;  %v155_v34 = vld [vmem:[#allocation4 + $0x378] sm:$0xff] }
 0x286   :  { %v1513_v57 = vmul.f32 0.5, %v1363_v63  ;;  %v2383_v22 = vmul.u32 2146121005, %v2233_v46  ;;  %v616_v31 = vmul.f32 %v466_v50, %v6147_v15  ;;  %v2532_v39 = vshrl.u32 %v2382_v28, 15 }
 0x287   :  { %v4201_v6 = vxor.u32 2147483648, %v3131_v24  ;;  %v6158_v47 = vadd.s32 %v4668_v3, %v1787_v45  ;;  %v467_v9 = vmul.f32 %v6154_v35, %v6154_v35  ;;  %v915_v49 = vadd.f32 %v765_v11, %v6138_v36 }
 0x288   :  { %v1663_v0 = vmul.f32 %v1513_v57, %v6088_v7  ;;  %v2533_v55 = vshrl.u32 %v2383_v22, 15  ;;  %v766_v42 = vmul.f32 0.044715, %v616_v31  ;;  %v2682_v48 = vxor.u32 %v2532_v39, %v2382_v28 }
 0x289   :  { %v4464_v37 = vpop.eup %4463  ;;  %vm6164_vm9 = vcmp.ge.s32.totalorder %v4201_v6, 2576980378  ;;  %v1934_v59 = vadd.s32 %v4671_v5, %v6158_v47  ;;  %v617_v60 = vmul.f32 %v467_v9, %v6154_v35  ;;  %v1065_v23 = vmul.f32 0.7978846, %v915_v49 }
 0x28a   :  { %v3731_v41 = vmul.f32 1.1111112, %v1663_v0  ;;  %v1364_v38 = vadd.f32 1.0, %v4464_v37  ;;  %v2683_v53 = vxor.u32 %v2533_v55, %v2383_v22  ;;  %v2832_v7 = vmul.u32 2221713035, %v2682_v48 }
 0x28b   :  { %v916_v30 = vadd.f32 %v766_v42, %v6147_v15  ;;  %v2084_v10 = vshrl.u32 %v1934_v59, 16  ;;  %v767_v44 = vmul.f32 0.044715, %v617_v60  ;;  %4465 = vtanh.f32 %v1065_v23 }
 0x28c   :  { %v3881_v4 = vsel %vm6164_vm9, %v3731_v41, 0.0  ;;  %v1514_v17 = vmul.f32 0.5, %v1364_v38  ;;  %v2833_v56 = vmul.u32 2221713035, %v2683_v53  ;;  %v2982_v8 = vshrl.u32 %v2832_v7, 16 }
 0x28d   :  { %4031 = vst [vmem:[#allocation9 + $0x348] sm:$0xff] %v3881_v4  ;;  %v1066_v32 = vmul.f32 0.7978846, %v916_v30  ;;  %v2234_v16 = vxor.u32 %v2084_v10, %v1934_v59  ;;  %v917_v58 = vadd.f32 %v767_v44, %v6154_v35  ;;  %v1935_v33 = vadd.s32 %v4680_v12, %v6158_v47 }
 0x28e   :  { %v1664_v52 = vmul.f32 %v1514_v17, %v6118_v62  ;;  %v2983_v61 = vshrl.u32 %v2833_v56, 16  ;;  %v6179_v14 = vadd.f32 %v4702_v25, %v154_v29  ;;  %v3132_v2 = vxor.u32 %v2982_v8, %v2832_v7 }
 0x28f   :  { %4467 = vtanh.f32 %v1066_v32  ;;  %v2384_v20 = vmul.u32 2146121005, %v2234_v16  ;;  %v1067_v63 = vmul.f32 0.7978846, %v917_v58  ;;  %v2085_v24 = vshrl.u32 %v1935_v33, 16 }
 0x290   :  { %v3732_v46 = vmul.f32 1.1111112, %v1664_v52  ;;  %v3133_v50 = vxor.u32 %v2983_v61, %v2833_v56  ;;  %v468_v28 = vmul.f32 %v6179_v14, %v6179_v14  ;;  %v4202_v45 = vxor.u32 2147483648, %v3132_v2 }
 0x291   :  { %v2534_v62 = vshrl.u32 %v2384_v20, 15  ;;  %4469 = vtanh.f32 %v1067_v63  ;;  %v1936_v57 = vadd.s32 %v4682_v13, %v6158_v47  ;;  %v4466_v11 = vpop.eup %4465  ;;  %v2235_v31 = vxor.u32 %v2085_v24, %v1935_v33 }
 0x292   :  { %v4203_v22 = vxor.u32 2147483648, %v3133_v50  ;;  %v618_v6 = vmul.f32 %v468_v28, %v6179_v14  ;;  %v6187_v39 = vadd.f32 %v4707_v27, %v155_v34  ;;  %vm3496_vm10 = vcmp.ge.s32.totalorder %v4202_v45, 2576980378  ;;  %v157_v28 = vld [vmem:[#allocation4 + $0x388] sm:$0xff] }
 0x293   :  { %v1365_v9 = vadd.f32 1.0, %v4466_v11  ;;  %v2684_v0 = vxor.u32 %v2534_v62, %v2384_v20  ;;  %v2086_v49 = vshrl.u32 %v1936_v57, 16  ;;  %v3882_v55 = vsel %vm3496_vm10, %v3732_v46, 0.0  ;;  %v156_v46 = vld [vmem:[#allocation4 + $0x380] sm:$0xff] }
 0x294   :  { %vm6189_vm11 = vcmp.ge.s32.totalorder %v4203_v22, 2576980378  ;;  %v2385_v37 = vmul.u32 2146121005, %v2235_v31  ;;  %v469_v26 = vmul.f32 %v6187_v39, %v6187_v39  ;;  %4032 = vst [vmem:[#allocation9 + $0x350] sm:$0xff] %v3882_v55  ;;  %v1937_v30 = vadd.s32 %v4689_v18, %v6158_v47 }
 0x295   :  { %v4468_v48 = vpop.eup %4467  ;;  %v1515_v59 = vmul.f32 0.5, %v1365_v9  ;;  %v2834_v60 = vmul.u32 2221713035, %v2684_v0  ;;  %v768_v41 = vmul.f32 0.044715, %v618_v6  ;;  %v2236_v38 = vxor.u32 %v2086_v49, %v1936_v57  ;;  %v158_v6 = vld [vmem:[#allocation4 + $0x390] sm:$0xff] }
 0x296   :  { %v1366_v23 = vadd.f32 1.0, %v4468_v48  ;;  %v2535_v53 = vshrl.u32 %v2385_v37, 15  ;;  %v619_v7 = vmul.f32 %v469_v26, %v6187_v39  ;;  %v2087_v22 = vshrl.u32 %v1937_v30, 16 }
 0x297   :  { %v4470_v10 = vpop.eup %4469  ;;  %v1665_v44 = vmul.f32 %v1515_v59, %v6138_v36  ;;  %v2984_v29 = vshrl.u32 %v2834_v60, 16  ;;  %v918_v4 = vadd.f32 %v768_v41, %v6179_v14  ;;  %v2386_v17 = vmul.u32 2146121005, %v2236_v38 }
 0x298   :  { %v1516_v56 = vmul.f32 0.5, %v1366_v23  ;;  %v1367_v8 = vadd.f32 1.0, %v4470_v10  ;;  %v2685_v32 = vxor.u32 %v2535_v53, %v2385_v37  ;;  %v769_v16 = vmul.f32 0.044715, %v619_v7 }
 0x299   :  { %v3733_v58 = vmul.f32 1.1111112, %v1665_v44  ;;  %v3134_v52 = vxor.u32 %v2984_v29, %v2834_v60  ;;  %v1068_v61 = vmul.f32 0.7978846, %v918_v4  ;;  %v2536_v33 = vshrl.u32 %v2386_v17, 15 }
 0x29a   :  { %v1666_v2 = vmul.f32 %v1516_v56, %v6147_v15  ;;  %v1517_v20 = vmul.f32 0.5, %v1367_v8  ;;  %v2835_v63 = vmul.u32 2221713035, %v2685_v32  ;;  %v919_v34 = vadd.f32 %v769_v16, %v6187_v39 }
 0x29b   :  { %v3883_v36 = vsel %vm6189_vm11, %v3733_v58, 0.0  ;;  %v4204_v50 = vxor.u32 2147483648, %v3134_v52  ;;  %4471 = vtanh.f32 %v1068_v61  ;;  %v2686_v24 = vxor.u32 %v2536_v33, %v2386_v17 }
 0x29c   :  { %4033 = vst [vmem:[#allocation9 + $0x358] sm:$0xff] %v3883_v36  ;;  %v3734_v45 = vmul.f32 1.1111112, %v1666_v2  ;;  %v1667_v62 = vmul.f32 %v1517_v20, %v6154_v35  ;;  %v2985_v57 = vshrl.u32 %v2835_v63, 16  ;;  %v1069_v11 = vmul.f32 0.7978846, %v919_v34 }
 0x29d   :  { %vm3502_vm12 = vcmp.ge.s32.totalorder %v4204_v50, 2576980378  ;;  %v2836_v15 = vmul.u32 2221713035, %v2686_v24  ;;  %v6206_v31 = vadd.f32 %v4746_v40, %v156_v46  ;;  %v2237_v42 = vxor.u32 %v2087_v22, %v1937_v30 }
 0x29e   :  { %v3884_v9 = vsel %vm3502_vm12, %v3734_v45, 0.0  ;;  %v3135_v0 = vxor.u32 %v2985_v57, %v2835_v63  ;;  %v3735_v49 = vmul.f32 1.1111112, %v1667_v62  ;;  %4473 = vtanh.f32 %v1069_v11 }
 0x29f   :  { %4034 = vst [vmem:[#allocation9 + $0x360] sm:$0xff] %v3884_v9  ;;  %v2986_v55 = vshrl.u32 %v2836_v15, 16  ;;  %v470_v37 = vmul.f32 %v6206_v31, %v6206_v31  ;;  %v1938_v35 = vadd.s32 %v4749_v43, %v6158_v47  ;;  %v6213_v48 = vadd.f32 %v4757_v51, %v157_v28 }
 0x2a0   :  { %v4205_v26 = vxor.u32 2147483648, %v3135_v0  ;;  %v1939_v59 = vadd.s32 %v4762_v54, %v6158_v47  ;;  %v6218_v60 = vadd.f32 %v4692_v19, %v158_v6  ;;  %v2387_v23 = vmul.u32 2146121005, %v2237_v42  ;;  %v159_v6 = vld [vmem:[#allocation4 + $0x398] sm:$0xff]  ;;  %v160_v42 = vld [vmem:[#allocation4 + $0x3a0] sm:$0xff] }
 0x2a1   :  { %v4472_v41 = vpop.eup %4471  ;;  %v3136_v38 = vxor.u32 %v2986_v55, %v2836_v15  ;;  %v620_v53 = vmul.f32 %v470_v37, %v6206_v31  ;;  %v2088_v7 = vshrl.u32 %v1938_v35, 16  ;;  %v471_v10 = vmul.f32 %v6213_v48, %v6213_v48  ;;  %v161_v37 = vld [vmem:[#allocation4 + $0x3a8] sm:$0xff] }
 0x2a2   :  { %vm3505_vm13 = vcmp.ge.s32.totalorder %v4205_v26, 2576980378  ;;  %v1368_v30 = vadd.f32 1.0, %v4472_v41  ;;  %v2089_v44 = vshrl.u32 %v1939_v59, 16  ;;  %v2537_v17 = vshrl.u32 %v2387_v23, 15 }
 0x2a3   :  { %v3885_v29 = vsel %vm3505_vm13, %v3735_v49, 0.0  ;;  %v4206_v4 = vxor.u32 2147483648, %v3136_v38  ;;  %v770_v56 = vmul.f32 0.044715, %v620_v53  ;;  %v2238_v32 = vxor.u32 %v2088_v7, %v1938_v35 }
 0x2a4   :  { %v4474_v47 = vpop.eup %4473  ;;  %4035 = vst [vmem:[#allocation9 + $0x368] sm:$0xff] %v3885_v29  ;;  %v1518_v8 = vmul.f32 0.5, %v1368_v30  ;;  %v621_v16 = vmul.f32 %v471_v10, %v6213_v48  ;;  %v2239_v58 = vxor.u32 %v2089_v44, %v1939_v59  ;;  %v2687_v33 = vxor.u32 %v2537_v17, %v2387_v23 }
 0x2a5   :  { %vm6224_vm14 = vcmp.ge.s32.totalorder %v4206_v4, 2576980378  ;;  %v1369_v61 = vadd.f32 1.0, %v4474_v47  ;;  %v920_v2 = vadd.f32 %v770_v56, %v6206_v31  ;;  %v2388_v63 = vmul.u32 2146121005, %v2238_v32 }
 0x2a6   :  { %v1668_v20 = vmul.f32 %v1518_v8, %v6179_v14  ;;  %v771_v34 = vmul.f32 0.044715, %v621_v16  ;;  %v2389_v46 = vmul.u32 2146121005, %v2239_v58  ;;  %v2837_v50 = vmul.u32 2221713035, %v2687_v33 }
 0x2a7   :  { %v1519_v36 = vmul.f32 0.5, %v1369_v61  ;;  %v1070_v24 = vmul.f32 0.7978846, %v920_v2  ;;  %v472_v28 = vmul.f32 %v6218_v60, %v6218_v60  ;;  %v2538_v62 = vshrl.u32 %v2388_v63, 15 }
 0x2a8   :  { %v3736_v45 = vmul.f32 1.1111112, %v1668_v20  ;;  %v921_v57 = vadd.f32 %v771_v34, %v6213_v48  ;;  %v2539_v11 = vshrl.u32 %v2389_v46, 15  ;;  %v2987_v22 = vshrl.u32 %v2837_v50, 16 }
 0x2a9   :  { %v1669_v15 = vmul.f32 %v1519_v36, %v6187_v39  ;;  %4475 = vtanh.f32 %v1070_v24  ;;  %v622_v14 = vmul.f32 %v472_v28, %v6218_v60  ;;  %v2688_v0 = vxor.u32 %v2538_v62, %v2388_v63 }
 0x2aa   :  { %v3886_v9 = vsel %vm6224_vm14, %v3736_v45, 0.0  ;;  %v1071_v49 = vmul.f32 0.7978846, %v921_v57  ;;  %v2689_v55 = vxor.u32 %v2539_v11, %v2389_v46  ;;  %v3137_v35 = vxor.u32 %v2987_v22, %v2837_v50 }
 0x2ab   :  { %4036 = vst [vmem:[#allocation9 + $0x370] sm:$0xff] %v3886_v9  ;;  %v3737_v26 = vmul.f32 1.1111112, %v1669_v15  ;;  %v772_v59 = vmul.f32 0.044715, %v622_v14  ;;  %v1728_v41 = vadd.s32 152, %v4663_v1  ;;  %v6239_v23 = vadd.f32 %v4697_v21, %v159_v6 }
 0x2ac   :  { %v2838_v39 = vmul.u32 2221713035, %v2688_v0  ;;  %4477 = vtanh.f32 %v1071_v49  ;;  %v2839_v38 = vmul.u32 2221713035, %v2689_v55  ;;  %v4207_v53 = vxor.u32 2147483648, %v3137_v35 }
 0x2ad   :  { %v922_v7 = vadd.f32 %v772_v59, %v6218_v60  ;;  %v1788_v30 = vmul.u32 2654435761, %v1728_v41  ;;  %v6243_v10 = vadd.f32 %v4702_v25, %v160_v42  ;;  %v473_v4 = vmul.f32 %v6239_v23, %v6239_v23 }
 0x2ae   :  { %v2988_v44 = vshrl.u32 %v2838_v39, 16  ;;  %v2989_v29 = vshrl.u32 %v2839_v38, 16  ;;  %v6248_v17 = vadd.f32 %v4707_v27, %v161_v37  ;;  %vm3511_vm15 = vcmp.ge.s32.totalorder %v4207_v53, 2576980378 }
 0x2af   :  { %v4476_v56 = vpop.eup %4475  ;;  %v1072_v47 = vmul.f32 0.7978846, %v922_v7  ;;  %v6251_v8 = vadd.s32 %v4668_v3, %v1788_v30  ;;  %v474_v32 = vmul.f32 %v6243_v10, %v6243_v10  ;;  %v3887_v16 = vsel %vm3511_vm15, %v3737_v26, 0.0 }
 0x2b0   :  { %v1370_v58 = vadd.f32 1.0, %v4476_v56  ;;  %v3138_v52 = vxor.u32 %v2988_v44, %v2838_v39  ;;  %v3139_v61 = vxor.u32 %v2989_v29, %v2839_v38  ;;  %4037 = vst [vmem:[#allocation9 + $0x378] sm:$0xff] %v3887_v16  ;;  %v623_v2 = vmul.f32 %v473_v4, %v6239_v23  ;;  %v162_v4 = vld [vmem:[#allocation4 + $0x3b0] sm:$0xff] }
 0x2b1   :  { %4479 = vtanh.f32 %v1072_v47  ;;  %v1940_v33 = vadd.s32 %v4671_v5, %v6251_v8  ;;  %v1941_v20 = vadd.s32 %v4680_v12, %v6251_v8  ;;  %v624_v50 = vmul.f32 %v474_v32, %v6243_v10 }
 0x2b2   :  { %v4478_v63 = vpop.eup %4477  ;;  %v1520_v34 = vmul.f32 0.5, %v1370_v58  ;;  %v4208_v46 = vxor.u32 2147483648, %v3138_v52  ;;  %v4209_v36 = vxor.u32 2147483648, %v3139_v61  ;;  %v773_v45 = vmul.f32 0.044715, %v623_v2 }
 0x2b3   :  { %v1371_v24 = vadd.f32 1.0, %v4478_v63  ;;  %v2090_v28 = vshrl.u32 %v1940_v33, 16  ;;  %v2091_v62 = vshrl.u32 %v1941_v20, 16  ;;  %v774_v22 = vmul.f32 0.044715, %v624_v50 }
 0x2b4   :  { %v1670_v57 = vmul.f32 %v1520_v34, %v6206_v31  ;;  %vm6262_vm0 = vcmp.ge.s32.totalorder %v4208_v46, 2576980378  ;;  %vm6266_vm1 = vcmp.ge.s32.totalorder %v4209_v36, 2576980378  ;;  %v923_v9 = vadd.f32 %v773_v45, %v6239_v23 }
 0x2b5   :  { %v1521_v14 = vmul.f32 0.5, %v1371_v24  ;;  %v2240_v6 = vxor.u32 %v2090_v28, %v1940_v33  ;;  %v2241_v0 = vxor.u32 %v2091_v62, %v1941_v20  ;;  %v924_v55 = vadd.f32 %v774_v22, %v6243_v10 }
 0x2b6   :  { %v3738_v49 = vmul.f32 1.1111112, %v1670_v57  ;;  %v1942_v31 = vadd.s32 %v4682_v13, %v6251_v8  ;;  %v475_v42 = vmul.f32 %v6248_v17, %v6248_v17  ;;  %v1073_v59 = vmul.f32 0.7978846, %v923_v9 }
 0x2b7   :  { %v4480_v37 = vpop.eup %4479  ;;  %v1671_v35 = vmul.f32 %v1521_v14, %v6213_v48  ;;  %v2390_v26 = vmul.u32 2146121005, %v2240_v6  ;;  %v2391_v41 = vmul.u32 2146121005, %v2241_v0  ;;  %v1074_v53 = vmul.f32 0.7978846, %v924_v55 }
 0x2b8   :  { %v3888_v39 = vsel %vm6262_vm0, %v3738_v49, 0.0  ;;  %v1372_v38 = vadd.f32 1.0, %v4480_v37  ;;  %v2092_v7 = vshrl.u32 %v1942_v31, 16  ;;  %4481 = vtanh.f32 %v1073_v59 }
 0x2b9   :  { %4038 = vst [vmem:[#allocation9 + $0x380] sm:$0xff] %v3888_v39  ;;  %v3739_v30 = vmul.f32 1.1111112, %v1671_v35  ;;  %v2540_v44 = vshrl.u32 %v2390_v26, 15  ;;  %v2541_v29 = vshrl.u32 %v2391_v41, 15  ;;  %4483 = vtanh.f32 %v1074_v53 }
 0x2ba   :  { %v1522_v56 = vmul.f32 0.5, %v1372_v38  ;;  %v2242_v47 = vxor.u32 %v2092_v7, %v1942_v31  ;;  %v625_v48 = vmul.f32 %v475_v42, %v6248_v17  ;;  %v1943_v52 = vadd.s32 %v4689_v18, %v6251_v8 }
 0x2bb   :  { %v3889_v32 = vsel %vm6266_vm1, %v3739_v30, 0.0  ;;  %v2690_v16 = vxor.u32 %v2540_v44, %v2390_v26  ;;  %v2691_v58 = vxor.u32 %v2541_v29, %v2391_v41  ;;  %v6286_v20 = vadd.f32 %v4746_v40, %v162_v4  ;;  %v163_v29 = vld [vmem:[#allocation4 + $0x3b8] sm:$0xff] }
 0x2bc   :  { %4039 = vst [vmem:[#allocation9 + $0x388] sm:$0xff] %v3889_v32  ;;  %v1672_v61 = vmul.f32 %v1522_v56, %v6218_v60  ;;  %v2392_v33 = vmul.u32 2146121005, %v2242_v47  ;;  %v775_v2 = vmul.f32 0.044715, %v625_v48  ;;  %v2093_v46 = vshrl.u32 %v1943_v52, 16 }
 0x2bd   :  { %v2840_v63 = vmul.u32 2221713035, %v2690_v16  ;;  %v2841_v34 = vmul.u32 2221713035, %v2691_v58  ;;  %v1944_v36 = vadd.s32 %v4749_v43, %v6251_v8  ;;  %v476_v45 = vmul.f32 %v6286_v20, %v6286_v20 }
 0x2be   :  { %v3740_v50 = vmul.f32 1.1111112, %v1672_v61  ;;  %v2542_v24 = vshrl.u32 %v2392_v33, 15  ;;  %v925_v28 = vadd.f32 %v775_v2, %v6248_v17  ;;  %v4482_v62 = vpop.eup %4481  ;;  %v2243_v11 = vxor.u32 %v2093_v46, %v1943_v52  ;;  %v164_v2 = vld [vmem:[#allocation4 + $0x3c0] sm:$0xff] }
 0x2bf   :  { %v2990_v60 = vshrl.u32 %v2840_v63, 16  ;;  %v2991_v57 = vshrl.u32 %v2841_v34, 16  ;;  %v2094_v15 = vshrl.u32 %v1944_v36, 16  ;;  %v4484_v22 = vpop.eup %4483  ;;  %v1373_v14 = vadd.f32 1.0, %v4482_v62 }
 0x2c0   :  { %v2692_v6 = vxor.u32 %v2542_v24, %v2392_v33  ;;  %v1075_v9 = vmul.f32 0.7978846, %v925_v28  ;;  %v626_v0 = vmul.f32 %v476_v45, %v6286_v20  ;;  %v1374_v31 = vadd.f32 1.0, %v4484_v22 }
 0x2c1   :  { %v3140_v49 = vxor.u32 %v2990_v60, %v2840_v63  ;;  %v3141_v55 = vxor.u32 %v2991_v57, %v2841_v34  ;;  %v2393_v42 = vmul.u32 2146121005, %v2243_v11  ;;  %v1523_v37 = vmul.f32 0.5, %v1373_v14  ;;  %v165_v60 = vld [vmem:[#allocation4 + $0x3c8] sm:$0xff] }
 0x2c2   :  { %v2842_v35 = vmul.u32 2221713035, %v2692_v6  ;;  %4485 = vtanh.f32 %v1075_v9  ;;  %v776_v26 = vmul.f32 0.044715, %v626_v0  ;;  %v1524_v39 = vmul.f32 0.5, %v1374_v31 }
 0x2c3   :  { %v4210_v59 = vxor.u32 2147483648, %v3140_v49  ;;  %v4211_v41 = vxor.u32 2147483648, %v3141_v55  ;;  %v2543_v38 = vshrl.u32 %v2393_v42, 15  ;;  %v1673_v53 = vmul.f32 %v1523_v37, %v6239_v23 }
 0x2c4   :  { %v2992_v7 = vshrl.u32 %v2842_v35, 16  ;;  %v926_v30 = vadd.f32 %v776_v26, %v6286_v20  ;;  %v2244_v44 = vxor.u32 %v2094_v15, %v1944_v36  ;;  %v1674_v56 = vmul.f32 %v1524_v39, %v6243_v10 }
 0x2c5   :  { %vm3520_vm2 = vcmp.ge.s32.totalorder %v4210_v59, 2576980378  ;;  %vm6296_vm3 = vcmp.ge.s32.totalorder %v4211_v41, 2576980378  ;;  %v2693_v47 = vxor.u32 %v2543_v38, %v2393_v42  ;;  %v3741_v32 = vmul.f32 1.1111112, %v1673_v53 }
 0x2c6   :  { %v3890_v48 = vsel %vm3520_vm2, %v3740_v50, 0.0  ;;  %v3142_v16 = vxor.u32 %v2992_v7, %v2842_v35  ;;  %v1076_v58 = vmul.f32 0.7978846, %v926_v30  ;;  %v3742_v52 = vmul.f32 1.1111112, %v1674_v56 }
 0x2c7   :  { %4040 = vst [vmem:[#allocation9 + $0x390] sm:$0xff] %v3890_v48  ;;  %v2843_v23 = vmul.u32 2221713035, %v2693_v47  ;;  %v6302_v61 = vadd.f32 %v4757_v51, %v163_v29  ;;  %v1945_v33 = vadd.s32 %v4762_v54, %v6251_v8  ;;  %v3891_v34 = vsel %vm6296_vm3, %v3741_v32, 0.0 }
 0x2c8   :  { %v4486_v63 = vpop.eup %4485  ;;  %v4212_v10 = vxor.u32 2147483648, %v3142_v16  ;;  %4487 = vtanh.f32 %v1076_v58  ;;  %v2394_v46 = vmul.u32 2146121005, %v2244_v44  ;;  %4041 = vst [vmem:[#allocation9 + $0x398] sm:$0xff] %v3891_v34  ;;  %v6311_v62 = vadd.f32 %v4692_v19, %v164_v2 }
 0x2c9   :  { %v1375_v36 = vadd.f32 1.0, %v4486_v63  ;;  %v2993_v50 = vshrl.u32 %v2843_v23, 16  ;;  %v477_v24 = vmul.f32 %v6302_v61, %v6302_v61  ;;  %v2095_v28 = vshrl.u32 %v1945_v33, 16 }
 0x2ca   :  { %vm3526_vm4 = vcmp.ge.s32.totalorder %v4212_v10, 2576980378  ;;  %v2544_v45 = vshrl.u32 %v2394_v46, 15  ;;  %v1729_v8 = vadd.s32 160, %v4663_v1  ;;  %v478_v9 = vmul.f32 %v6311_v62, %v6311_v62 }
 0x2cb   :  { %v3892_v57 = vsel %vm3526_vm4, %v3742_v52, 0.0  ;;  %v1525_v11 = vmul.f32 0.5, %v1375_v36  ;;  %v3143_v15 = vxor.u32 %v2993_v50, %v2843_v23  ;;  %v627_v22 = vmul.f32 %v477_v24, %v6302_v61  ;;  %v166_v52 = vld [vmem:[#allocation4 + $0x3d0] sm:$0xff] }
 0x2cc   :  { %4042 = vst [vmem:[#allocation9 + $0x3a0] sm:$0xff] %v3892_v57  ;;  %v2694_v14 = vxor.u32 %v2544_v45, %v2394_v46  ;;  %v2245_v6 = vxor.u32 %v2095_v28, %v1945_v33  ;;  %v1789_v0 = vmul.u32 2654435761, %v1729_v8  ;;  %v6319_v42 = vadd.f32 %v4697_v21, %v165_v60  ;;  %v167_v45 = vld [vmem:[#allocation4 + $0x3d8] sm:$0xff] }
 0x2cd   :  { %v1675_v49 = vmul.f32 %v1525_v11, %v6248_v17  ;;  %v4213_v55 = vxor.u32 2147483648, %v3143_v15  ;;  %v777_v31 = vmul.f32 0.044715, %v627_v22  ;;  %v628_v59 = vmul.f32 %v478_v9, %v6311_v62 }
 0x2ce   :  { %v4488_v37 = vpop.eup %4487  ;;  %v2844_v35 = vmul.u32 2221713035, %v2694_v14  ;;  %v2395_v26 = vmul.u32 2146121005, %v2245_v6  ;;  %v6323_v41 = vadd.s32 %v4668_v3, %v1789_v0  ;;  %v479_v47 = vmul.f32 %v6319_v42, %v6319_v42 }
 0x2cf   :  { %vm3529_vm5 = vcmp.ge.s32.totalorder %v4213_v55, 2576980378  ;;  %v3743_v39 = vmul.f32 1.1111112, %v1675_v49  ;;  %v1376_v38 = vadd.f32 1.0, %v4488_v37  ;;  %v927_v53 = vadd.f32 %v777_v31, %v6302_v61 }
 0x2d0   :  { %v2994_v7 = vshrl.u32 %v2844_v35, 16  ;;  %v2545_v17 = vshrl.u32 %v2395_v26, 15  ;;  %v778_v30 = vmul.f32 0.044715, %v628_v59  ;;  %v1946_v44 = vadd.s32 %v4671_v5, %v6323_v41 }
 0x2d1   :  { %v3893_v29 = vsel %vm3529_vm5, %v3743_v39, 0.0  ;;  %v1526_v4 = vmul.f32 0.5, %v1376_v38  ;;  %v1077_v56 = vmul.f32 0.7978846, %v927_v53  ;;  %v629_v33 = vmul.f32 %v479_v47, %v6319_v42 }
 0x2d2   :  { %4043 = vst [vmem:[#allocation9 + $0x3a8] sm:$0xff] %v3893_v29  ;;  %v3144_v48 = vxor.u32 %v2994_v7, %v2844_v35  ;;  %v2695_v32 = vxor.u32 %v2545_v17, %v2395_v26  ;;  %v928_v16 = vadd.f32 %v778_v30, %v6311_v62  ;;  %v2096_v58 = vshrl.u32 %v1946_v44, 16 }
 0x2d3   :  { %v1676_v23 = vmul.f32 %v1526_v4, %v6286_v20  ;;  %4489 = vtanh.f32 %v1077_v56  ;;  %v1947_v2 = vadd.s32 %v4680_v12, %v6323_v41  ;;  %v779_v50 = vmul.f32 0.044715, %v629_v33  ;;  %v168_v56 = vld [vmem:[#allocation4 + $0x3e0] sm:$0xff] }
 0x2d4   :  { %v4214_v63 = vxor.u32 2147483648, %v3144_v48  ;;  %v2845_v34 = vmul.u32 2221713035, %v2695_v32  ;;  %v1078_v10 = vmul.f32 0.7978846, %v928_v16  ;;  %v2246_v46 = vxor.u32 %v2096_v58, %v1946_v44 }
 0x2d5   :  { %v3744_v36 = vmul.f32 1.1111112, %v1676_v23  ;;  %v2097_v24 = vshrl.u32 %v1947_v2, 16  ;;  %v6336_v28 = vadd.f32 %v4702_v25, %v166_v52  ;;  %v929_v57 = vadd.f32 %v779_v50, %v6319_v42 }
 0x2d6   :  { %vm3532_vm6 = vcmp.ge.s32.totalorder %v4214_v63, 2576980378  ;;  %v2995_v8 = vshrl.u32 %v2845_v34, 16  ;;  %4491 = vtanh.f32 %v1078_v10  ;;  %v2396_v20 = vmul.u32 2146121005, %v2246_v46 }
 0x2d7   :  { %v3894_v60 = vsel %vm3532_vm6, %v3744_v36, 0.0  ;;  %v2247_v11 = vxor.u32 %v2097_v24, %v1947_v2  ;;  %v480_v15 = vmul.f32 %v6336_v28, %v6336_v28  ;;  %v1948_v6 = vadd.s32 %v4682_v13, %v6323_v41 }
 0x2d8   :  { %4044 = vst [vmem:[#allocation9 + $0x3b0] sm:$0xff] %v3894_v60  ;;  %v3145_v22 = vxor.u32 %v2995_v8, %v2845_v34  ;;  %v2546_v14 = vshrl.u32 %v2396_v20, 15  ;;  %v6344_v9 = vadd.f32 %v4707_v27, %v167_v45  ;;  %v1079_v49 = vmul.f32 0.7978846, %v929_v57 }
 0x2d9   :  { %v4490_v0 = vpop.eup %4489  ;;  %v2397_v55 = vmul.u32 2146121005, %v2247_v11  ;;  %v630_v31 = vmul.f32 %v480_v15, %v6336_v28  ;;  %v1949_v37 = vadd.s32 %v4689_v18, %v6323_v41  ;;  %v2098_v39 = vshrl.u32 %v1948_v6, 16 }
 0x2da   :  { %v1377_v35 = vadd.f32 1.0, %v4490_v0  ;;  %v4215_v26 = vxor.u32 2147483648, %v3145_v22  ;;  %v2696_v59 = vxor.u32 %v2546_v14, %v2396_v20  ;;  %4493 = vtanh.f32 %v1079_v49 }
 0x2db   :  { %v2547_v38 = vshrl.u32 %v2397_v55, 15  ;;  %v780_v53 = vmul.f32 0.044715, %v630_v31  ;;  %v481_v7 = vmul.f32 %v6344_v9, %v6344_v9  ;;  %v2248_v4 = vxor.u32 %v2098_v39, %v1948_v6  ;;  %v169_v31 = vld [vmem:[#allocation4 + $0x3e8] sm:$0xff] }
 0x2dc   :  { %v4492_v17 = vpop.eup %4491  ;;  %v1527_v30 = vmul.f32 0.5, %v1377_v35  ;;  %vm6351_vm7 = vcmp.ge.s32.totalorder %v4215_v26, 2576980378  ;;  %v2846_v29 = vmul.u32 2221713035, %v2696_v59  ;;  %v2099_v33 = vshrl.u32 %v1949_v37, 16 }
 0x2dd   :  { %v1378_v47 = vadd.f32 1.0, %v4492_v17  ;;  %v2697_v48 = vxor.u32 %v2547_v38, %v2397_v55  ;;  %v930_v32 = vadd.f32 %v780_v53, %v6336_v28  ;;  %v631_v16 = vmul.f32 %v481_v7, %v6344_v9 }
 0x2de   :  { %v1677_v58 = vmul.f32 %v1527_v30, %v6302_v61  ;;  %v2996_v52 = vshrl.u32 %v2846_v29, 16  ;;  %v2398_v23 = vmul.u32 2146121005, %v2248_v4  ;;  %v6359_v10 = vadd.f32 %v4746_v40, %v168_v56 }
 0x2df   :  { %v1528_v2 = vmul.f32 0.5, %v1378_v47  ;;  %v2847_v63 = vmul.u32 2221713035, %v2697_v48  ;;  %v1080_v34 = vmul.f32 0.7978846, %v930_v32  ;;  %v2249_v60 = vxor.u32 %v2099_v33, %v1949_v37 }
 0x2e0   :  { %v3745_v46 = vmul.f32 1.1111112, %v1677_v58  ;;  %v3146_v36 = vxor.u32 %v2996_v52, %v2846_v29  ;;  %v2548_v50 = vshrl.u32 %v2398_v23, 15  ;;  %v781_v24 = vmul.f32 0.044715, %v631_v16  ;;  %v4494_v45 = vpop.eup %4493  ;;  %v170_v52 = vld [vmem:[#allocation4 + $0x3f0] sm:$0xff] }
 0x2e1   :  { %v1678_v8 = vmul.f32 %v1528_v2, %v6311_v62  ;;  %v2997_v20 = vshrl.u32 %v2847_v63, 16  ;;  %4495 = vtanh.f32 %v1080_v34  ;;  %v1379_v11 = vadd.f32 1.0, %v4494_v45 }
 0x2e2   :  { %v3895_v61 = vsel %vm6351_vm7, %v3745_v46, 0.0  ;;  %v4216_v57 = vxor.u32 2147483648, %v3146_v36  ;;  %v2698_v15 = vxor.u32 %v2548_v50, %v2398_v23  ;;  %v931_v6 = vadd.f32 %v781_v24, %v6344_v9 }
 0x2e3   :  { %4045 = vst [vmem:[#allocation9 + $0x3b8] sm:$0xff] %v3895_v61  ;;  %v3746_v22 = vmul.f32 1.1111112, %v1678_v8  ;;  %v3147_v14 = vxor.u32 %v2997_v20, %v2847_v63  ;;  %v2399_v0 = vmul.u32 2146121005, %v2249_v60  ;;  %v1529_v49 = vmul.f32 0.5, %v1379_v11 }
 0x2e4   :  { %vm3538_vm8 = vcmp.ge.s32.totalorder %v4216_v57, 2576980378  ;;  %v2848_v55 = vmul.u32 2221713035, %v2698_v15  ;;  %v482_v62 = vmul.f32 %v6359_v10, %v6359_v10  ;;  %v1081_v26 = vmul.f32 0.7978846, %v931_v6 }
 0x2e5   :  { %v3896_v37 = vsel %vm3538_vm8, %v3746_v22, 0.0  ;;  %v4217_v35 = vxor.u32 2147483648, %v3147_v14  ;;  %v2549_v59 = vshrl.u32 %v2399_v0, 15  ;;  %v1679_v39 = vmul.f32 %v1529_v49, %v6319_v42 }
 0x2e6   :  { %4046 = vst [vmem:[#allocation9 + $0x3c0] sm:$0xff] %v3896_v37  ;;  %v2998_v38 = vshrl.u32 %v2848_v55, 16  ;;  %v632_v53 = vmul.f32 %v482_v62, %v6359_v10  ;;  %v1950_v7 = vadd.s32 %v4749_v43, %v6323_v41  ;;  %4497 = vtanh.f32 %v1081_v26  ;;  %v172_v26 = vld [vmem:[#allocation4 + $0x400] sm:$0xff] }
 0x2e7   :  { %v4496_v17 = vpop.eup %4495  ;;  %vm6371_vm9 = vcmp.ge.s32.totalorder %v4217_v35, 2576980378  ;;  %v2699_v44 = vxor.u32 %v2549_v59, %v2399_v0  ;;  %v6376_v29 = vadd.f32 %v4757_v51, %v169_v31  ;;  %v3747_v4 = vmul.f32 1.1111112, %v1679_v39  ;;  %v173_v59 = vld [vmem:[#allocation4 + $0x408] sm:$0xff] }
 0x2e8   :  { %v1380_v56 = vadd.f32 1.0, %v4496_v17  ;;  %v3148_v47 = vxor.u32 %v2998_v38, %v2848_v55  ;;  %v782_v42 = vmul.f32 0.044715, %v632_v53  ;;  %v2100_v32 = vshrl.u32 %v1950_v7, 16  ;;  %v171_v55 = vld [vmem:[#allocation4 + $0x3f8] sm:$0xff] }
 0x2e9   :  { %v2849_v48 = vmul.u32 2221713035, %v2699_v44  ;;  %v483_v16 = vmul.f32 %v6376_v29, %v6376_v29  ;;  %v1951_v58 = vadd.s32 %v4762_v54, %v6323_v41  ;;  %v3897_v23 = vsel %vm6371_vm9, %v3747_v4, 0.0 }
 0x2ea   :  { %v1530_v33 = vmul.f32 0.5, %v1380_v56  ;;  %v4218_v2 = vxor.u32 2147483648, %v3148_v47  ;;  %v932_v63 = vadd.f32 %v782_v42, %v6359_v10  ;;  %4047 = vst [vmem:[#allocation9 + $0x3c8] sm:$0xff] %v3897_v23  ;;  %v2250_v46 = vxor.u32 %v2100_v32, %v1950_v7 }
 0x2eb   :  { %v2999_v34 = vshrl.u32 %v2849_v48, 16  ;;  %v633_v36 = vmul.f32 %v483_v16, %v6376_v29  ;;  %v2101_v50 = vshrl.u32 %v1951_v58, 16  ;;  %v6392_v8 = vadd.f32 %v4692_v19, %v170_v52 }
 0x2ec   :  { %v1680_v24 = vmul.f32 %v1530_v33, %v6336_v28  ;;  %vm6387_vm10 = vcmp.ge.s32.totalorder %v4218_v2, 2576980378  ;;  %v1082_v41 = vmul.f32 0.7978846, %v932_v63  ;;  %v4498_v20 = vpop.eup %4497  ;;  %v2400_v61 = vmul.u32 2146121005, %v2250_v46 }
 0x2ed   :  { %v3149_v60 = vxor.u32 %v2999_v34, %v2849_v48  ;;  %v783_v57 = vmul.f32 0.044715, %v633_v36  ;;  %v2251_v11 = vxor.u32 %v2101_v50, %v1951_v58  ;;  %v1381_v22 = vadd.f32 1.0, %v4498_v20 }
 0x2ee   :  { %v3748_v15 = vmul.f32 1.1111112, %v1680_v24  ;;  %4499 = vtanh.f32 %v1082_v41  ;;  %v484_v14 = vmul.f32 %v6392_v8, %v6392_v8  ;;  %v2550_v6 = vshrl.u32 %v2400_v61, 15 }
 0x2ef   :  { %v4219_v28 = vxor.u32 2147483648, %v3149_v60  ;;  %v933_v0 = vadd.f32 %v783_v57, %v6376_v29  ;;  %v2401_v49 = vmul.u32 2146121005, %v2251_v11  ;;  %v1531_v31 = vmul.f32 0.5, %v1381_v22 }
 0x2f0   :  { %v3898_v62 = vsel %vm6387_vm10, %v3748_v15, 0.0  ;;  %v634_v37 = vmul.f32 %v484_v14, %v6392_v8  ;;  %v1730_v35 = vadd.s32 168, %v4663_v1  ;;  %v2700_v39 = vxor.u32 %v2550_v6, %v2400_v61 }
 0x2f1   :  { %4048 = vst [vmem:[#allocation9 + $0x3d0] sm:$0xff] %v3898_v62  ;;  %vm6401_vm11 = vcmp.ge.s32.totalorder %v4219_v28, 2576980378  ;;  %v1083_v38 = vmul.f32 0.7978846, %v933_v0  ;;  %v2551_v53 = vshrl.u32 %v2401_v49, 15  ;;  %v1681_v7 = vmul.f32 %v1531_v31, %v6344_v9 }
 0x2f2   :  { %v784_v17 = vmul.f32 0.044715, %v634_v37  ;;  %v1790_v30 = vmul.u32 2654435761, %v1730_v35  ;;  %v6407_v44 = vadd.f32 %v4697_v21, %v171_v55  ;;  %v2850_v4 = vmul.u32 2221713035, %v2700_v39 }
 0x2f3   :  { %4501 = vtanh.f32 %v1083_v38  ;;  %v2701_v56 = vxor.u32 %v2551_v53, %v2401_v49  ;;  %v6410_v47 = vadd.f32 %v4702_v25, %v172_v26  ;;  %v3749_v48 = vmul.f32 1.1111112, %v1681_v7 }
 0x2f4   :  { %v4500_v42 = vpop.eup %4499  ;;  %v934_v32 = vadd.f32 %v784_v17, %v6392_v8  ;;  %v6414_v16 = vadd.s32 %v4668_v3, %v1790_v30  ;;  %v485_v9 = vmul.f32 %v6407_v44, %v6407_v44  ;;  %v3000_v52 = vshrl.u32 %v2850_v4, 16 }
 0x2f5   :  { %v1382_v58 = vadd.f32 1.0, %v4500_v42  ;;  %v2851_v23 = vmul.u32 2221713035, %v2701_v56  ;;  %v486_v33 = vmul.f32 %v6410_v47, %v6410_v47  ;;  %v3899_v2 = vsel %vm6401_vm11, %v3749_v48, 0.0 }
 0x2f6   :  { %v1084_v63 = vmul.f32 0.7978846, %v934_v32  ;;  %v1952_v34 = vadd.s32 %v4671_v5, %v6414_v16  ;;  %v635_v46 = vmul.f32 %v485_v9, %v6407_v44  ;;  %4049 = vst [vmem:[#allocation9 + $0x3d8] sm:$0xff] %v3899_v2  ;;  %v3150_v50 = vxor.u32 %v3000_v52, %v2850_v4  ;;  %v174_v9 = vld [vmem:[#allocation4 + $0x410] sm:$0xff] }
 0x2f7   :  { %v1532_v36 = vmul.f32 0.5, %v1382_v58  ;;  %v3001_v24 = vshrl.u32 %v2851_v23, 16  ;;  %v1953_v45 = vadd.s32 %v4680_v12, %v6414_v16  ;;  %v636_v60 = vmul.f32 %v486_v33, %v6410_v47 }
 0x2f8   :  { %4503 = vtanh.f32 %v1084_v63  ;;  %v2102_v41 = vshrl.u32 %v1952_v34, 16  ;;  %v785_v20 = vmul.f32 0.044715, %v635_v46  ;;  %v4220_v11 = vxor.u32 2147483648, %v3150_v50 }
 0x2f9   :  { %v4502_v61 = vpop.eup %4501  ;;  %v1682_v57 = vmul.f32 %v1532_v36, %v6359_v10  ;;  %v3151_v15 = vxor.u32 %v3001_v24, %v2851_v23  ;;  %v2103_v22 = vshrl.u32 %v1953_v45, 16  ;;  %v786_v0 = vmul.f32 0.044715, %v636_v60 }
 0x2fa   :  { %v1383_v14 = vadd.f32 1.0, %v4502_v61  ;;  %v2252_v28 = vxor.u32 %v2102_v41, %v1952_v34  ;;  %v935_v6 = vadd.f32 %v785_v20, %v6407_v44  ;;  %vm3550_vm12 = vcmp.ge.s32.totalorder %v4220_v11, 2576980378 }
 0x2fb   :  { %v3750_v49 = vmul.f32 1.1111112, %v1682_v57  ;;  %v4221_v55 = vxor.u32 2147483648, %v3151_v15  ;;  %v2253_v62 = vxor.u32 %v2103_v22, %v1953_v45  ;;  %v936_v26 = vadd.f32 %v786_v0, %v6410_v47 }
 0x2fc   :  { %v1533_v31 = vmul.f32 0.5, %v1383_v14  ;;  %v2402_v37 = vmul.u32 2146121005, %v2252_v28  ;;  %v1085_v35 = vmul.f32 0.7978846, %v935_v6  ;;  %v1954_v53 = vadd.s32 %v4682_v13, %v6414_v16 }
 0x2fd   :  { %v3900_v39 = vsel %vm3550_vm12, %v3750_v49, 0.0  ;;  %vm6431_vm13 = vcmp.ge.s32.totalorder %v4221_v55, 2576980378  ;;  %v2403_v38 = vmul.u32 2146121005, %v2253_v62  ;;  %v6439_v32 = vadd.f32 %v4707_v27, %v173_v59 }
 0x2fe   :  { %v4504_v7 = vpop.eup %4503  ;;  %4050 = vst [vmem:[#allocation9 + $0x3e0] sm:$0xff] %v3900_v39  ;;  %v1683_v17 = vmul.f32 %v1533_v31, %v6376_v29  ;;  %v2552_v30 = vshrl.u32 %v2402_v37, 15  ;;  %4505 = vtanh.f32 %v1085_v35  ;;  %v1086_v4 = vmul.f32 0.7978846, %v936_v26 }
 0x2ff   :  { %v1384_v56 = vadd.f32 1.0, %v4504_v7  ;;  %v2553_v42 = vshrl.u32 %v2403_v38, 15  ;;  %v2104_v48 = vshrl.u32 %v1954_v53, 16  ;;  %v1955_v23 = vadd.s32 %v4689_v18, %v6414_v16 }
 0x300   :  { %v3751_v58 = vmul.f32 1.1111112, %v1683_v17  ;;  %v2702_v52 = vxor.u32 %v2552_v30, %v2402_v37  ;;  %4507 = vtanh.f32 %v1086_v4  ;;  %v487_v29 = vmul.f32 %v6439_v32, %v6439_v32 }
 0x301   :  { %v1534_v33 = vmul.f32 0.5, %v1384_v56  ;;  %v2703_v2 = vxor.u32 %v2553_v42, %v2403_v38  ;;  %v2254_v63 = vxor.u32 %v2104_v48, %v1954_v53  ;;  %v2105_v36 = vshrl.u32 %v1955_v23, 16  ;;  %v175_v48 = vld [vmem:[#allocation4 + $0x418] sm:$0xff] }
 0x302   :  { %v3901_v34 = vsel %vm6431_vm13, %v3751_v58, 0.0  ;;  %v2852_v46 = vmul.u32 2221713035, %v2702_v52  ;;  %v6448_v50 = vadd.f32 %v4746_v40, %v174_v9  ;;  %v637_v20 = vmul.f32 %v487_v29, %v6439_v32 }
 0x303   :  { %4051 = vst [vmem:[#allocation9 + $0x3e8] sm:$0xff] %v3901_v34  ;;  %v1684_v24 = vmul.f32 %v1534_v33, %v6392_v8  ;;  %v2853_v45 = vmul.u32 2221713035, %v2703_v2  ;;  %v2404_v41 = vmul.u32 2146121005, %v2254_v63  ;;  %v2255_v57 = vxor.u32 %v2105_v36, %v1955_v23  ;;  %v176_v23 = vld [vmem:[#allocation4 + $0x420] sm:$0xff] }
 0x304   :  { %v4506_v60 = vpop.eup %4505  ;;  %v3002_v61 = vshrl.u32 %v2852_v46, 16  ;;  %v488_v11 = vmul.f32 %v6448_v50, %v6448_v50  ;;  %v1956_v15 = vadd.s32 %v4749_v43, %v6414_v16  ;;  %v787_v8 = vmul.f32 0.044715, %v637_v20  ;;  %v177_v36 = vld [vmem:[#allocation4 + $0x428] sm:$0xff] }
 0x305   :  { %v3752_v22 = vmul.f32 1.1111112, %v1684_v24  ;;  %v1385_v14 = vadd.f32 1.0, %v4506_v60  ;;  %v3003_v28 = vshrl.u32 %v2853_v45, 16  ;;  %v2554_v6 = vshrl.u32 %v2404_v41, 15 }
 0x306   :  { %v4508_v0 = vpop.eup %4507  ;;  %v3152_v49 = vxor.u32 %v3002_v61, %v2852_v46  ;;  %v2405_v55 = vmul.u32 2146121005, %v2255_v57  ;;  %v638_v62 = vmul.f32 %v488_v11, %v6448_v50  ;;  %v937_v39 = vadd.f32 %v787_v8, %v6439_v32 }
 0x307   :  { %v1535_v31 = vmul.f32 0.5, %v1385_v14  ;;  %v3153_v37 = vxor.u32 %v3003_v28, %v2853_v45  ;;  %v1386_v35 = vadd.f32 1.0, %v4508_v0  ;;  %v2704_v26 = vxor.u32 %v2554_v6, %v2404_v41 }
 0x308   :  { %v4222_v59 = vxor.u32 2147483648, %v3152_v49  ;;  %v2555_v10 = vshrl.u32 %v2405_v55, 15  ;;  %v788_v38 = vmul.f32 0.044715, %v638_v62  ;;  %v1087_v4 = vmul.f32 0.7978846, %v937_v39 }
 0x309   :  { %v1685_v53 = vmul.f32 %v1535_v31, %v6407_v44  ;;  %v4223_v7 = vxor.u32 2147483648, %v3153_v37  ;;  %v1536_v17 = vmul.f32 0.5, %v1386_v35  ;;  %v2854_v30 = vmul.u32 2221713035, %v2704_v26 }
 0x30a   :  { %vm3556_vm14 = vcmp.ge.s32.totalorder %v4222_v59, 2576980378  ;;  %v2705_v56 = vxor.u32 %v2555_v10, %v2405_v55  ;;  %v938_v42 = vadd.f32 %v788_v38, %v6448_v50  ;;  %4509 = vtanh.f32 %v1087_v4 }
 0x30b   :  { %v3902_v9 = vsel %vm3556_vm14, %v3752_v22, 0.0  ;;  %vm3559_vm15 = vcmp.ge.s32.totalorder %v4223_v7, 2576980378  ;;  %v3753_v58 = vmul.f32 1.1111112, %v1685_v53  ;;  %v1686_v52 = vmul.f32 %v1536_v17, %v6410_v47 }
 0x30c   :  { %4052 = vst [vmem:[#allocation9 + $0x3f0] sm:$0xff] %v3902_v9  ;;  %v3004_v33 = vshrl.u32 %v2854_v30, 16  ;;  %v2855_v2 = vmul.u32 2221713035, %v2705_v56  ;;  %v1088_v44 = vmul.f32 0.7978846, %v938_v42  ;;  %v6462_v46 = vadd.f32 %v4757_v51, %v175_v48 }
 0x30d   :  { %v3903_v63 = vsel %vm3559_vm15, %v3753_v58, 0.0  ;;  %v3754_v29 = vmul.f32 1.1111112, %v1686_v52  ;;  %v2106_v34 = vshrl.u32 %v1956_v15, 16  ;;  %v1957_v47 = vadd.s32 %v4762_v54, %v6414_v16 }
 0x30e   :  { %4053 = vst [vmem:[#allocation9 + $0x3f8] sm:$0xff] %v3903_v63  ;;  %v3154_v24 = vxor.u32 %v3004_v33, %v2854_v30  ;;  %v3005_v45 = vshrl.u32 %v2855_v2, 16  ;;  %4511 = vtanh.f32 %v1088_v44  ;;  %v489_v20 = vmul.f32 %v6462_v46, %v6462_v46 }
 0x30f   :  { %v2256_v41 = vxor.u32 %v2106_v34, %v1956_v15  ;;  %v6469_v60 = vadd.f32 %v4692_v19, %v176_v23  ;;  %v1731_v61 = vadd.s32 176, %v4663_v1  ;;  %v2107_v22 = vshrl.u32 %v1957_v47, 16 }
 0x310   :  { %v4224_v57 = vxor.u32 2147483648, %v3154_v24  ;;  %v3155_v11 = vxor.u32 %v3005_v45, %v2855_v2  ;;  %v6473_v14 = vadd.f32 %v4697_v21, %v177_v36  ;;  %v639_v6 = vmul.f32 %v489_v20, %v6462_v46  ;;  %v4510_v0 = vpop.eup %4509  ;;  %v178_v20 = vld [vmem:[#allocation4 + $0x430] sm:$0xff] }
 0x311   :  { %v2406_v28 = vmul.u32 2146121005, %v2256_v41  ;;  %v490_v16 = vmul.f32 %v6469_v60, %v6469_v60  ;;  %v1791_v15 = vmul.u32 2654435761, %v1731_v61  ;;  %v2257_v8 = vxor.u32 %v2107_v22, %v1957_v47  ;;  %v179_v22 = vld [vmem:[#allocation4 + $0x438] sm:$0xff] }
 0x312   :  { %vm3562_vm0 = vcmp.ge.s32.totalorder %v4224_v57, 2576980378  ;;  %v4225_v49 = vxor.u32 2147483648, %v3155_v11  ;;  %v491_v55 = vmul.f32 %v6473_v14, %v6473_v14  ;;  %v1387_v31 = vadd.f32 1.0, %v4510_v0 }
 0x313   :  { %v3904_v62 = vsel %vm3562_vm0, %v3754_v29, 0.0  ;;  %v2556_v37 = vshrl.u32 %v2406_v28, 15  ;;  %v789_v35 = vmul.f32 0.044715, %v639_v6  ;;  %v2407_v39 = vmul.u32 2146121005, %v2257_v8 }
 0x314   :  { %v4512_v26 = vpop.eup %4511  ;;  %4054 = vst [vmem:[#allocation9 + $0x400] sm:$0xff] %v3904_v62  ;;  %vm6480_vm1 = vcmp.ge.s32.totalorder %v4225_v49, 2576980378  ;;  %v640_v10 = vmul.f32 %v490_v16, %v6469_v60  ;;  %v6486_v38 = vadd.s32 %v4668_v3, %v1791_v15  ;;  %v1537_v53 = vmul.f32 0.5, %v1387_v31 }
 0x315   :  { %v1388_v7 = vadd.f32 1.0, %v4512_v26  ;;  %v2706_v17 = vxor.u32 %v2556_v37, %v2406_v28  ;;  %v939_v30 = vadd.f32 %v789_v35, %v6462_v46  ;;  %v2557_v4 = vshrl.u32 %v2407_v39, 15 }
 0x316   :  { %v790_v56 = vmul.f32 0.044715, %v640_v10  ;;  %v1958_v42 = vadd.s32 %v4671_v5, %v6486_v38  ;;  %v641_v48 = vmul.f32 %v491_v55, %v6473_v14  ;;  %v1687_v9 = vmul.f32 %v1537_v53, %v6439_v32 }
 0x317   :  { %v1538_v58 = vmul.f32 0.5, %v1388_v7  ;;  %v2856_v52 = vmul.u32 2221713035, %v2706_v17  ;;  %v1089_v23 = vmul.f32 0.7978846, %v939_v30  ;;  %v2707_v33 = vxor.u32 %v2557_v4, %v2407_v39 }
 0x318   :  { %v940_v2 = vadd.f32 %v790_v56, %v6469_v60  ;;  %v2108_v44 = vshrl.u32 %v1958_v42, 16  ;;  %v791_v63 = vmul.f32 0.044715, %v641_v48  ;;  %v3755_v29 = vmul.f32 1.1111112, %v1687_v9 }
 0x319   :  { %v1688_v34 = vmul.f32 %v1538_v58, %v6448_v50  ;;  %v3006_v36 = vshrl.u32 %v2856_v52, 16  ;;  %4513 = vtanh.f32 %v1089_v23  ;;  %v2857_v24 = vmul.u32 2221713035, %v2707_v33 }
 0x31a   :  { %v1090_v45 = vmul.f32 0.7978846, %v940_v2  ;;  %v2258_v47 = vxor.u32 %v2108_v44, %v1958_v42  ;;  %v941_v41 = vadd.f32 %v791_v63, %v6473_v14  ;;  %v3905_v32 = vsel %vm6480_vm1, %v3755_v29, 0.0 }
 0x31b   :  { %v3156_v61 = vxor.u32 %v3006_v36, %v2856_v52  ;;  %v3756_v57 = vmul.f32 1.1111112, %v1688_v34  ;;  %v1959_v11 = vadd.s32 %v4680_v12, %v6486_v38  ;;  %4055 = vst [vmem:[#allocation9 + $0x408] sm:$0xff] %v3905_v32  ;;  %v3007_v28 = vshrl.u32 %v2857_v24, 16 }
 0x31c   :  { %4515 = vtanh.f32 %v1090_v45  ;;  %v2408_v50 = vmul.u32 2146121005, %v2258_v47  ;;  %v1091_v6 = vmul.f32 0.7978846, %v941_v41  ;;  %v6501_v0 = vadd.f32 %v4702_v25, %v178_v20 }
 0x31d   :  { %v4226_v16 = vxor.u32 2147483648, %v3156_v61  ;;  %v2109_v15 = vshrl.u32 %v1959_v11, 16  ;;  %v1960_v49 = vadd.s32 %v4682_v13, %v6486_v38  ;;  %v3157_v8 = vxor.u32 %v3007_v28, %v2857_v24 }
 0x31e   :  { %v2558_v55 = vshrl.u32 %v2408_v50, 15  ;;  %4517 = vtanh.f32 %v1091_v6  ;;  %v6506_v62 = vadd.f32 %v4707_v27, %v179_v22  ;;  %v492_v35 = vmul.f32 %v6501_v0, %v6501_v0 }
 0x31f   :  { %v4514_v31 = vpop.eup %4513  ;;  %vm3568_vm2 = vcmp.ge.s32.totalorder %v4226_v16, 2576980378  ;;  %v2259_v37 = vxor.u32 %v2109_v15, %v1959_v11  ;;  %v2110_v26 = vshrl.u32 %v1960_v49, 16  ;;  %v4227_v10 = vxor.u32 2147483648, %v3157_v8 }
 0x320   :  { %v3906_v59 = vsel %vm3568_vm2, %v3756_v57, 0.0  ;;  %v1389_v39 = vadd.f32 1.0, %v4514_v31  ;;  %v2708_v53 = vxor.u32 %v2558_v55, %v2408_v50  ;;  %v642_v17 = vmul.f32 %v492_v35, %v6501_v0 }
 0x321   :  { %4056 = vst [vmem:[#allocation9 + $0x410] sm:$0xff] %v3906_v59  ;;  %v2409_v7 = vmul.u32 2146121005, %v2259_v37  ;;  %v2260_v30 = vxor.u32 %v2110_v26, %v1960_v49  ;;  %v493_v4 = vmul.f32 %v6506_v62, %v6506_v62  ;;  %vm6513_vm3 = vcmp.ge.s32.totalorder %v4227_v10, 2576980378  ;;  %v180_v49 = vld [vmem:[#allocation4 + $0x440] sm:$0xff] }
 0x322   :  { %v4516_v56 = vpop.eup %4515  ;;  %v1539_v42 = vmul.f32 0.5, %v1389_v39  ;;  %v2858_v9 = vmul.u32 2221713035, %v2708_v53  ;;  %v1961_v58 = vadd.s32 %v4689_v18, %v6486_v38  ;;  %v792_v33 = vmul.f32 0.044715, %v642_v17  ;;  %v181_v37 = vld [vmem:[#allocation4 + $0x448] sm:$0xff] }
 0x323   :  { %v1390_v52 = vadd.f32 1.0, %v4516_v56  ;;  %v2559_v23 = vshrl.u32 %v2409_v7, 15  ;;  %v2410_v2 = vmul.u32 2146121005, %v2260_v30  ;;  %v643_v34 = vmul.f32 %v493_v4, %v6506_v62 }
 0x324   :  { %v4518_v44 = vpop.eup %4517  ;;  %v1689_v63 = vmul.f32 %v1539_v42, %v6462_v46  ;;  %v3008_v29 = vshrl.u32 %v2858_v9, 16  ;;  %v2111_v36 = vshrl.u32 %v1961_v58, 16  ;;  %v942_v41 = vadd.f32 %v792_v33, %v6501_v0 }
 0x325   :  { %v1540_v24 = vmul.f32 0.5, %v1390_v52  ;;  %v1391_v45 = vadd.f32 1.0, %v4518_v44  ;;  %v2709_v47 = vxor.u32 %v2559_v23, %v2409_v7  ;;  %v2560_v61 = vshrl.u32 %v2410_v2, 15  ;;  %v182_v7 = vld [vmem:[#allocation4 + $0x450] sm:$0xff] }
 0x326   :  { %v3757_v20 = vmul.f32 1.1111112, %v1689_v63  ;;  %v3158_v32 = vxor.u32 %v3008_v29, %v2858_v9  ;;  %v793_v57 = vmul.f32 0.044715, %v643_v34  ;;  %v1092_v50 = vmul.f32 0.7978846, %v942_v41 }
 0x327   :  { %v1690_v11 = vmul.f32 %v1540_v24, %v6469_v60  ;;  %v1541_v22 = vmul.f32 0.5, %v1391_v45  ;;  %v2859_v28 = vmul.u32 2221713035, %v2709_v47  ;;  %v2710_v16 = vxor.u32 %v2560_v61, %v2410_v2 }
 0x328   :  { %v3907_v46 = vsel %vm6513_vm3, %v3757_v20, 0.0  ;;  %v4228_v6 = vxor.u32 2147483648, %v3158_v32  ;;  %v943_v15 = vadd.f32 %v793_v57, %v6506_v62  ;;  %4519 = vtanh.f32 %v1092_v50 }
 0x329   :  { %4057 = vst [vmem:[#allocation9 + $0x418] sm:$0xff] %v3907_v46  ;;  %v3758_v8 = vmul.f32 1.1111112, %v1690_v11  ;;  %v1691_v55 = vmul.f32 %v1541_v22, %v6473_v14  ;;  %v3009_v31 = vshrl.u32 %v2859_v28, 16  ;;  %v2860_v60 = vmul.u32 2221713035, %v2710_v16 }
 0x32a   :  { %vm3574_vm4 = vcmp.ge.s32.totalorder %v4228_v6, 2576980378  ;;  %v1093_v35 = vmul.f32 0.7978846, %v943_v15  ;;  %v2261_v26 = vxor.u32 %v2111_v36, %v1961_v58  ;;  %v6528_v53 = vadd.f32 %v4746_v40, %v180_v49 }
 0x32b   :  { %v3908_v59 = vsel %vm3574_vm4, %v3758_v8, 0.0  ;;  %v3159_v39 = vxor.u32 %v3009_v31, %v2859_v28  ;;  %v3759_v10 = vmul.f32 1.1111112, %v1691_v55  ;;  %v3010_v17 = vshrl.u32 %v2860_v60, 16 }
 0x32c   :  { %4058 = vst [vmem:[#allocation9 + $0x420] sm:$0xff] %v3908_v59  ;;  %4521 = vtanh.f32 %v1093_v35  ;;  %v2411_v30 = vmul.u32 2146121005, %v2261_v26  ;;  %v1962_v14 = vadd.s32 %v4749_v43, %v6486_v38  ;;  %v494_v56 = vmul.f32 %v6528_v53, %v6528_v53 }
 0x32d   :  { %v4229_v4 = vxor.u32 2147483648, %v3159_v39  ;;  %v6535_v42 = vadd.f32 %v4757_v51, %v181_v37  ;;  %v1963_v48 = vadd.s32 %v4762_v54, %v6486_v38  ;;  %v3160_v9 = vxor.u32 %v3010_v17, %v2860_v60  ;;  %v183_v17 = vld [vmem:[#allocation4 + $0x458] sm:$0xff] }
 0x32e   :  { %v2561_v58 = vshrl.u32 %v2411_v30, 15  ;;  %v2112_v52 = vshrl.u32 %v1962_v14, 16  ;;  %v6540_v23 = vadd.f32 %v4692_v19, %v182_v7  ;;  %v4520_v33 = vpop.eup %4519  ;;  %v644_v2 = vmul.f32 %v494_v56, %v6528_v53  ;;  %v184_v56 = vld [vmem:[#allocation4 + $0x460] sm:$0xff] }
 0x32f   :  { %vm3577_vm5 = vcmp.ge.s32.totalorder %v4229_v4, 2576980378  ;;  %v495_v44 = vmul.f32 %v6535_v42, %v6535_v42  ;;  %v2113_v63 = vshrl.u32 %v1963_v48, 16  ;;  %v1392_v34 = vadd.f32 1.0, %v4520_v33 }
 0x330   :  { %v3909_v29 = vsel %vm3577_vm5, %v3759_v10, 0.0  ;;  %v4230_v36 = vxor.u32 2147483648, %v3160_v9  ;;  %v2711_v24 = vxor.u32 %v2561_v58, %v2411_v30  ;;  %v794_v38 = vmul.f32 0.044715, %v644_v2  ;;  %v186_v9 = vld [vmem:[#allocation4 + $0x470] sm:$0xff] }
 0x331   :  { %4059 = vst [vmem:[#allocation9 + $0x428] sm:$0xff] %v3909_v29  ;;  %v2262_v45 = vxor.u32 %v2112_v52, %v1962_v14  ;;  %v645_v47 = vmul.f32 %v495_v44, %v6535_v42  ;;  %v2263_v41 = vxor.u32 %v2113_v63, %v1963_v48  ;;  %v1542_v32 = vmul.f32 0.5, %v1392_v34  ;;  %v185_v48 = vld [vmem:[#allocation4 + $0x468] sm:$0xff] }
 0x332   :  { %v4522_v20 = vpop.eup %4521  ;;  %vm6546_vm6 = vcmp.ge.s32.totalorder %v4230_v36, 2576980378  ;;  %v2861_v57 = vmul.u32 2221713035, %v2711_v24  ;;  %v496_v11 = vmul.f32 %v6540_v23, %v6540_v23  ;;  %v944_v28 = vadd.f32 %v794_v38, %v6528_v53 }
 0x333   :  { %v1393_v22 = vadd.f32 1.0, %v4522_v20  ;;  %v2412_v50 = vmul.u32 2146121005, %v2262_v45  ;;  %v795_v46 = vmul.f32 0.044715, %v645_v47  ;;  %v1692_v6 = vmul.f32 %v1542_v32, %v6501_v0 }
 0x334   :  { %v3011_v16 = vshrl.u32 %v2861_v57, 16  ;;  %v2413_v15 = vmul.u32 2146121005, %v2263_v41  ;;  %v646_v49 = vmul.f32 %v496_v11, %v6540_v23  ;;  %v1094_v55 = vmul.f32 0.7978846, %v944_v28 }
 0x335   :  { %v1543_v8 = vmul.f32 0.5, %v1393_v22  ;;  %v2562_v31 = vshrl.u32 %v2412_v50, 15  ;;  %v945_v37 = vadd.f32 %v795_v46, %v6535_v42  ;;  %v3760_v60 = vmul.f32 1.1111112, %v1692_v6 }
 0x336   :  { %v3161_v35 = vxor.u32 %v3011_v16, %v2861_v57  ;;  %v2563_v26 = vshrl.u32 %v2413_v15, 15  ;;  %v796_v59 = vmul.f32 0.044715, %v646_v49  ;;  %4523 = vtanh.f32 %v1094_v55 }
 0x337   :  { %v1693_v39 = vmul.f32 %v1543_v8, %v6506_v62  ;;  %v2712_v10 = vxor.u32 %v2562_v31, %v2412_v50  ;;  %v1095_v7 = vmul.f32 0.7978846, %v945_v37  ;;  %v3910_v0 = vsel %vm6546_vm6, %v3760_v60, 0.0 }
 0x338   :  { %v4231_v30 = vxor.u32 2147483648, %v3161_v35  ;;  %v2713_v14 = vxor.u32 %v2563_v26, %v2413_v15  ;;  %v946_v4 = vadd.f32 %v796_v59, %v6540_v23  ;;  %4060 = vst [vmem:[#allocation9 + $0x430] sm:$0xff] %v3910_v0  ;;  %v1732_v62 = vadd.s32 184, %v4663_v1 }
 0x339   :  { %v3761_v58 = vmul.f32 1.1111112, %v1693_v39  ;;  %v2862_v52 = vmul.u32 2221713035, %v2712_v10  ;;  %4525 = vtanh.f32 %v1095_v7  ;;  %v6562_v44 = vadd.f32 %v4697_v21, %v183_v17 }
 0x33a   :  { %vm3583_vm7 = vcmp.ge.s32.totalorder %v4231_v30, 2576980378  ;;  %v2863_v33 = vmul.u32 2221713035, %v2713_v14  ;;  %v1096_v2 = vmul.f32 0.7978846, %v946_v4  ;;  %v6565_v36 = vadd.f32 %v4702_v25, %v184_v56 }
 0x33b   :  { %v3911_v63 = vsel %vm3583_vm7, %v3761_v58, 0.0  ;;  %v3012_v29 = vshrl.u32 %v2862_v52, 16  ;;  %v1792_v34 = vmul.u32 2654435761, %v1732_v62  ;;  %v497_v38 = vmul.f32 %v6562_v44, %v6562_v44 }
 0x33c   :  { %4061 = vst [vmem:[#allocation9 + $0x438] sm:$0xff] %v3911_v63  ;;  %v3013_v24 = vshrl.u32 %v2863_v33, 16  ;;  %4527 = vtanh.f32 %v1096_v2  ;;  %v6570_v45 = vadd.f32 %v4707_v27, %v185_v48  ;;  %v4524_v47 = vpop.eup %4523  ;;  %v498_v32 = vmul.f32 %v6565_v36, %v6565_v36 }
 0x33d   :  { %v3162_v41 = vxor.u32 %v3012_v29, %v2862_v52  ;;  %v6573_v20 = vadd.s32 %v4668_v3, %v1792_v34  ;;  %v6578_v61 = vadd.f32 %v4746_v40, %v186_v9  ;;  %v1394_v57 = vadd.f32 1.0, %v4524_v47 }
 0x33e   :  { %v3163_v11 = vxor.u32 %v3013_v24, %v2863_v33  ;;  %v647_v22 = vmul.f32 %v497_v38, %v6562_v44  ;;  %v499_v28 = vmul.f32 %v6570_v45, %v6570_v45  ;;  %v648_v15 = vmul.f32 %v498_v32, %v6565_v36 }
 0x33f   :  { %v4526_v50 = vpop.eup %4525  ;;  %v4232_v46 = vxor.u32 2147483648, %v3162_v41  ;;  %v1964_v6 = vadd.s32 %v4671_v5, %v6573_v20  ;;  %v1965_v16 = vadd.s32 %v4680_v12, %v6573_v20  ;;  %v1544_v49 = vmul.f32 0.5, %v1394_v57  ;;  %v187_v57 = vld [vmem:[#allocation4 + $0x478] sm:$0xff] }
 0x340   :  { %v1395_v8 = vadd.f32 1.0, %v4526_v50  ;;  %v4233_v55 = vxor.u32 2147483648, %v3163_v11  ;;  %v797_v31 = vmul.f32 0.044715, %v647_v22  ;;  %v798_v26 = vmul.f32 0.044715, %v648_v15 }
 0x341   :  { %vm6588_vm8 = vcmp.ge.s32.totalorder %v4232_v46, 2576980378  ;;  %v2114_v60 = vshrl.u32 %v1964_v6, 16  ;;  %v2115_v35 = vshrl.u32 %v1965_v16, 16  ;;  %v1694_v39 = vmul.f32 %v1544_v49, %v6528_v53 }
 0x342   :  { %v4528_v59 = vpop.eup %4527  ;;  %v1545_v10 = vmul.f32 0.5, %v1395_v8  ;;  %vm6593_vm9 = vcmp.ge.s32.totalorder %v4233_v55, 2576980378  ;;  %v947_v17 = vadd.f32 %v797_v31, %v6562_v44  ;;  %v948_v4 = vadd.f32 %v798_v26, %v6565_v36 }
 0x343   :  { %v1396_v0 = vadd.f32 1.0, %v4528_v59  ;;  %v2264_v30 = vxor.u32 %v2114_v60, %v1964_v6  ;;  %v2265_v14 = vxor.u32 %v2115_v35, %v1965_v16  ;;  %v3762_v56 = vmul.f32 1.1111112, %v1694_v39 }
 0x344   :  { %v1695_v48 = vmul.f32 %v1545_v10, %v6535_v42  ;;  %v1097_v9 = vmul.f32 0.7978846, %v947_v17  ;;  %v1966_v58 = vadd.s32 %v4682_v13, %v6573_v20  ;;  %v649_v33 = vmul.f32 %v499_v28, %v6570_v45 }
 0x345   :  { %v1546_v53 = vmul.f32 0.5, %v1396_v0  ;;  %v2414_v52 = vmul.u32 2146121005, %v2264_v30  ;;  %v2415_v62 = vmul.u32 2146121005, %v2265_v14  ;;  %v3912_v2 = vsel %vm6588_vm8, %v3762_v56, 0.0 }
 0x346   :  { %v3763_v63 = vmul.f32 1.1111112, %v1695_v48  ;;  %4529 = vtanh.f32 %v1097_v9  ;;  %v1098_v29 = vmul.f32 0.7978846, %v948_v4  ;;  %4062 = vst [vmem:[#allocation9 + $0x440] sm:$0xff] %v3912_v2  ;;  %v2116_v38 = vshrl.u32 %v1966_v58, 16 }
 0x347   :  { %v1696_v34 = vmul.f32 %v1546_v53, %v6540_v23  ;;  %v2564_v24 = vshrl.u32 %v2414_v52, 15  ;;  %v2565_v42 = vshrl.u32 %v2415_v62, 15  ;;  %v799_v41 = vmul.f32 0.044715, %v649_v33 }
 0x348   :  { %v3913_v47 = vsel %vm6593_vm9, %v3763_v63, 0.0  ;;  %4531 = vtanh.f32 %v1098_v29  ;;  %v1967_v32 = vadd.s32 %v4689_v18, %v6573_v20  ;;  %v2266_v50 = vxor.u32 %v2116_v38, %v1966_v58 }
 0x349   :  { %4063 = vst [vmem:[#allocation9 + $0x448] sm:$0xff] %v3913_v47  ;;  %v2714_v11 = vxor.u32 %v2564_v24, %v2414_v52  ;;  %v3764_v22 = vmul.f32 1.1111112, %v1696_v34  ;;  %v2715_v28 = vxor.u32 %v2565_v42, %v2415_v62  ;;  %v949_v46 = vadd.f32 %v799_v41, %v6570_v45 }
 0x34a   :  { %v2117_v23 = vshrl.u32 %v1967_v32, 16  ;;  %v500_v6 = vmul.f32 %v6578_v61, %v6578_v61  ;;  %v1968_v16 = vadd.s32 %v4749_v43, %v6573_v20  ;;  %v2416_v8 = vmul.u32 2146121005, %v2266_v50  ;;  %v188_v50 = vld [vmem:[#allocation4 + $0x480] sm:$0xff] }
 0x34b   :  { %v2864_v15 = vmul.u32 2221713035, %v2714_v11  ;;  %v2865_v49 = vmul.u32 2221713035, %v2715_v28  ;;  %v6616_v55 = vadd.f32 %v4757_v51, %v187_v57  ;;  %v1099_v37 = vmul.f32 0.7978846, %v949_v46 }
 0x34c   :  { %v4530_v31 = vpop.eup %4529  ;;  %v2267_v60 = vxor.u32 %v2117_v23, %v1967_v32  ;;  %v650_v35 = vmul.f32 %v500_v6, %v6578_v61  ;;  %v2118_v26 = vshrl.u32 %v1968_v16, 16  ;;  %v2566_v7 = vshrl.u32 %v2416_v8, 15 }
 0x34d   :  { %v3014_v59 = vshrl.u32 %v2864_v15, 16  ;;  %v1397_v39 = vadd.f32 1.0, %v4530_v31  ;;  %v3015_v10 = vshrl.u32 %v2865_v49, 16  ;;  %4533 = vtanh.f32 %v1099_v37 }
 0x34e   :  { %v4532_v17 = vpop.eup %4531  ;;  %v2417_v0 = vmul.u32 2146121005, %v2267_v60  ;;  %v800_v30 = vmul.f32 0.044715, %v650_v35  ;;  %v2268_v14 = vxor.u32 %v2118_v26, %v1968_v16  ;;  %v2716_v58 = vxor.u32 %v2566_v7, %v2416_v8 }
 0x34f   :  { %v3164_v4 = vxor.u32 %v3014_v59, %v2864_v15  ;;  %v1547_v56 = vmul.f32 0.5, %v1397_v39  ;;  %v3165_v48 = vxor.u32 %v3015_v10, %v2865_v49  ;;  %v1398_v9 = vadd.f32 1.0, %v4532_v17 }
 0x350   :  { %v2567_v53 = vshrl.u32 %v2417_v0, 15  ;;  %v950_v52 = vadd.f32 %v800_v30, %v6578_v61  ;;  %v2418_v62 = vmul.u32 2146121005, %v2268_v14  ;;  %v2866_v34 = vmul.u32 2221713035, %v2716_v58 }
 0x351   :  { %v4234_v33 = vxor.u32 2147483648, %v3164_v4  ;;  %v1697_v2 = vmul.f32 %v1547_v56, %v6562_v44  ;;  %v4235_v63 = vxor.u32 2147483648, %v3165_v48  ;;  %v1548_v29 = vmul.f32 0.5, %v1398_v9  ;;  %v189_v48 = vld [vmem:[#allocation4 + $0x488] sm:$0xff] }
 0x352   :  { %v2717_v24 = vxor.u32 %v2567_v53, %v2417_v0  ;;  %v1100_v42 = vmul.f32 0.7978846, %v950_v52  ;;  %v2568_v38 = vshrl.u32 %v2418_v62, 15  ;;  %v3016_v11 = vshrl.u32 %v2866_v34, 16 }
 0x353   :  { %vm3592_vm10 = vcmp.ge.s32.totalorder %v4234_v33, 2576980378  ;;  %vm3595_vm11 = vcmp.ge.s32.totalorder %v4235_v63, 2576980378  ;;  %v3765_v47 = vmul.f32 1.1111112, %v1697_v2  ;;  %v1698_v41 = vmul.f32 %v1548_v29, %v6565_v36  ;;  %v4534_v32 = vpop.eup %4533 }
 0x354   :  { %v3914_v57 = vsel %vm3592_vm10, %v3764_v22, 0.0  ;;  %v2867_v28 = vmul.u32 2221713035, %v2717_v24  ;;  %4535 = vtanh.f32 %v1100_v42  ;;  %v1399_v23 = vadd.f32 1.0, %v4534_v32  ;;  %v190_v2 = vld [vmem:[#allocation4 + $0x490] sm:$0xff] }
 0x355   :  { %4064 = vst [vmem:[#allocation9 + $0x450] sm:$0xff] %v3914_v57  ;;  %v3915_v46 = vsel %vm3595_vm11, %v3765_v47, 0.0  ;;  %v3766_v44 = vmul.f32 1.1111112, %v1698_v41  ;;  %v2718_v6 = vxor.u32 %v2568_v38, %v2418_v62  ;;  %v3166_v16 = vxor.u32 %v3016_v11, %v2866_v34 }
 0x356   :  { %4065 = vst [vmem:[#allocation9 + $0x458] sm:$0xff] %v3915_v46  ;;  %v3017_v15 = vshrl.u32 %v2867_v28, 16  ;;  %v501_v49 = vmul.f32 %v6616_v55, %v6616_v55  ;;  %v1969_v36 = vadd.s32 %v4762_v54, %v6573_v20  ;;  %v1549_v8 = vmul.f32 0.5, %v1399_v23 }
 0x357   :  { %v2868_v22 = vmul.u32 2221713035, %v2718_v6  ;;  %v6627_v31 = vadd.f32 %v4692_v19, %v188_v50  ;;  %v1733_v37 = vadd.s32 192, %v4663_v1  ;;  %v4236_v60 = vxor.u32 2147483648, %v3166_v16 }
 0x358   :  { %v3167_v35 = vxor.u32 %v3017_v15, %v2867_v28  ;;  %v651_v26 = vmul.f32 %v501_v49, %v6616_v55  ;;  %v2119_v59 = vshrl.u32 %v1969_v36, 16  ;;  %v1699_v39 = vmul.f32 %v1549_v8, %v6570_v45 }
 0x359   :  { %v3018_v10 = vshrl.u32 %v2868_v22, 16  ;;  %v502_v7 = vmul.f32 %v6627_v31, %v6627_v31  ;;  %v1793_v17 = vmul.u32 2654435761, %v1733_v37  ;;  %vm3598_vm12 = vcmp.ge.s32.totalorder %v4236_v60, 2576980378 }
 0x35a   :  { %v4536_v20 = vpop.eup %4535  ;;  %v4237_v0 = vxor.u32 2147483648, %v3167_v35  ;;  %v801_v30 = vmul.f32 0.044715, %v651_v26  ;;  %v2269_v19 = vxor.u32 %v2119_v59, %v1969_v36  ;;  %v3916_v14 = vsel %vm3598_vm12, %v3766_v44, 0.0  ;;  %v191_v44 = vld [vmem:[#allocation4 + $0x498] sm:$0xff] }
 0x35b   :  { %v3767_v4 = vmul.f32 1.1111112, %v1699_v39  ;;  %v1400_v1 = vadd.f32 1.0, %v4536_v20  ;;  %v3168_v56 = vxor.u32 %v3018_v10, %v2868_v22  ;;  %4066 = vst [vmem:[#allocation9 + $0x460] sm:$0xff] %v3916_v14  ;;  %v652_v58 = vmul.f32 %v502_v7, %v6627_v31 }
 0x35c   :  { %vm3601_vm13 = vcmp.ge.s32.totalorder %v4237_v0, 2576980378  ;;  %v951_v9 = vadd.f32 %v801_v30, %v6616_v55  ;;  %v2419_v45 = vmul.u32 2146121005, %v2269_v19  ;;  %v6637_v33 = vadd.s32 %v4668_v3, %v1793_v17 }
 0x35d   :  { %v3917_v53 = vsel %vm3601_vm13, %v3767_v4, 0.0  ;;  %v1550_v52 = vmul.f32 0.5, %v1400_v1  ;;  %v4238_v62 = vxor.u32 2147483648, %v3168_v56  ;;  %v802_v34 = vmul.f32 0.044715, %v652_v58 }
 0x35e   :  { %4067 = vst [vmem:[#allocation9 + $0x468] sm:$0xff] %v3917_v53  ;;  %v1101_v63 = vmul.f32 0.7978846, %v951_v9  ;;  %v2569_v29 = vshrl.u32 %v2419_v45, 15  ;;  %v6640_v24 = vadd.f32 %v4697_v21, %v189_v48  ;;  %v1970_v47 = vadd.s32 %v4671_v5, %v6637_v33 }
 0x35f   :  { %v1700_v42 = vmul.f32 %v1550_v52, %v6578_v61  ;;  %vm6643_vm14 = vcmp.ge.s32.totalorder %v4238_v62, 2576980378  ;;  %v1971_v3 = vadd.s32 %v4680_v12, %v6637_v33  ;;  %v952_v32 = vadd.f32 %v802_v34, %v6627_v31 }
 0x360   :  { %4537 = vtanh.f32 %v1101_v63  ;;  %v2719_v41 = vxor.u32 %v2569_v29, %v2419_v45  ;;  %v503_v21 = vmul.f32 %v6640_v24, %v6640_v24  ;;  %v2120_v11 = vshrl.u32 %v1970_v47, 16 }
 0x361   :  { %v3768_v57 = vmul.f32 1.1111112, %v1700_v42  ;;  %v2121_v61 = vshrl.u32 %v1971_v3, 16  ;;  %v6655_v28 = vadd.f32 %v4702_v25, %v190_v2  ;;  %v1102_v46 = vmul.f32 0.7978846, %v952_v32 }
 0x362   :  { %v2869_v50 = vmul.u32 2221713035, %v2719_v41  ;;  %v653_v5 = vmul.f32 %v503_v21, %v6640_v24  ;;  %v1972_v12 = vadd.s32 %v4682_v13, %v6637_v33  ;;  %v2270_v6 = vxor.u32 %v2120_v11, %v1970_v47  ;;  %v192_v41 = vld [vmem:[#allocation4 + $0x4a0] sm:$0xff] }
 0x363   :  { %v3918_v23 = vsel %vm6643_vm14, %v3768_v57, 0.0  ;;  %v2271_v16 = vxor.u32 %v2121_v61, %v1971_v3  ;;  %v504_v15 = vmul.f32 %v6655_v28, %v6655_v28  ;;  %4539 = vtanh.f32 %v1102_v46 }
 0x364   :  { %4068 = vst [vmem:[#allocation9 + $0x470] sm:$0xff] %v3918_v23  ;;  %v3019_v49 = vshrl.u32 %v2869_v50, 16  ;;  %v803_v25 = vmul.f32 0.044715, %v653_v5  ;;  %v2122_v36 = vshrl.u32 %v1972_v12, 16  ;;  %v6666_v13 = vadd.f32 %v4707_v27, %v191_v44 }
 0x365   :  { %v2420_v8 = vmul.u32 2146121005, %v2270_v6  ;;  %v2421_v22 = vmul.u32 2146121005, %v2271_v16  ;;  %v654_v37 = vmul.f32 %v504_v15, %v6655_v28  ;;  %v1973_v39 = vadd.s32 %v4689_v18, %v6637_v33 }
 0x366   :  { %v4538_v60 = vpop.eup %4537  ;;  %v3169_v35 = vxor.u32 %v3019_v49, %v2869_v50  ;;  %v953_v26 = vadd.f32 %v803_v25, %v6640_v24  ;;  %v2272_v59 = vxor.u32 %v2122_v36, %v1972_v12  ;;  %v505_v14 = vmul.f32 %v6666_v13, %v6666_v13 }
 0x367   :  { %v1401_v10 = vadd.f32 1.0, %v4538_v60  ;;  %v2570_v7 = vshrl.u32 %v2420_v8, 15  ;;  %v2571_v17 = vshrl.u32 %v2421_v22, 15  ;;  %v804_v20 = vmul.f32 0.044715, %v654_v37 }
 0x368   :  { %v4239_v0 = vxor.u32 2147483648, %v3169_v35  ;;  %v1103_v30 = vmul.f32 0.7978846, %v953_v26  ;;  %v2422_v19 = vmul.u32 2146121005, %v2272_v59  ;;  %v655_v45 = vmul.f32 %v505_v14, %v6666_v13 }
 0x369   :  { %v1551_v27 = vmul.f32 0.5, %v1401_v10  ;;  %v2720_v4 = vxor.u32 %v2570_v7, %v2420_v8  ;;  %v2721_v1 = vxor.u32 %v2571_v17, %v2421_v22  ;;  %v954_v56 = vadd.f32 %v804_v20, %v6655_v28  ;;  %v4540_v48 = vpop.eup %4539  ;;  %v193_v8 = vld [vmem:[#allocation4 + $0x4a8] sm:$0xff] }
 0x36a   :  { %vm6674_vm15 = vcmp.ge.s32.totalorder %v4239_v0, 2576980378  ;;  %4541 = vtanh.f32 %v1103_v30  ;;  %v2572_v18 = vshrl.u32 %v2422_v19, 15  ;;  %v1402_v53 = vadd.f32 1.0, %v4540_v48 }
 0x36b   :  { %v1701_v58 = vmul.f32 %v1551_v27, %v6616_v55  ;;  %v2870_v52 = vmul.u32 2221713035, %v2720_v4  ;;  %v2871_v62 = vmul.u32 2221713035, %v2721_v1  ;;  %v1104_v2 = vmul.f32 0.7978846, %v954_v56 }
 0x36c   :  { %v2722_v63 = vxor.u32 %v2572_v18, %v2422_v19  ;;  %v805_v29 = vmul.f32 0.044715, %v655_v45  ;;  %v2123_v34 = vshrl.u32 %v1973_v39, 16  ;;  %v1552_v38 = vmul.f32 0.5, %v1402_v53 }
 0x36d   :  { %v3769_v42 = vmul.f32 1.1111112, %v1701_v58  ;;  %v3020_v47 = vshrl.u32 %v2870_v52, 16  ;;  %v3021_v3 = vshrl.u32 %v2871_v62, 16  ;;  %4543 = vtanh.f32 %v1104_v2 }
 0x36e   :  { %v2872_v32 = vmul.u32 2221713035, %v2722_v63  ;;  %v955_v21 = vadd.f32 %v805_v29, %v6666_v13  ;;  %v2273_v57 = vxor.u32 %v2123_v34, %v1973_v39  ;;  %v1702_v11 = vmul.f32 %v1552_v38, %v6627_v31 }
 0x36f   :  { %v3919_v55 = vsel %vm6674_vm15, %v3769_v42, 0.0  ;;  %v3170_v61 = vxor.u32 %v3020_v47, %v2870_v52  ;;  %v3171_v50 = vxor.u32 %v3021_v3, %v2871_v62  ;;  %v6685_v23 = vadd.f32 %v4746_v40, %v192_v41 }
 0x370   :  { %v4542_v46 = vpop.eup %4541  ;;  %4069 = vst [vmem:[#allocation9 + $0x478] sm:$0xff] %v3919_v55  ;;  %v3022_v5 = vshrl.u32 %v2872_v32, 16  ;;  %v1105_v12 = vmul.f32 0.7978846, %v955_v21  ;;  %v2423_v44 = vmul.u32 2146121005, %v2273_v57  ;;  %v1974_v37 = vadd.s32 %v4749_v43, %v6637_v33 }
 0x371   :  { %v4240_v6 = vxor.u32 2147483648, %v3170_v61  ;;  %v3770_v16 = vmul.f32 1.1111112, %v1702_v11  ;;  %v1403_v15 = vadd.f32 1.0, %v4542_v46  ;;  %v4241_v49 = vxor.u32 2147483648, %v3171_v50 }
 0x372   :  { %v3172_v25 = vxor.u32 %v3022_v5, %v2872_v32  ;;  %4545 = vtanh.f32 %v1105_v12  ;;  %v2573_v36 = vshrl.u32 %v2423_v44, 15  ;;  %v506_v31 = vmul.f32 %v6685_v23, %v6685_v23 }
 0x373   :  { %vm3610_vm0 = vcmp.ge.s32.totalorder %v4240_v6, 2576980378  ;;  %v1553_v22 = vmul.f32 0.5, %v1403_v15  ;;  %v4544_v60 = vpop.eup %4543  ;;  %v2124_v7 = vshrl.u32 %v1974_v37, 16  ;;  %v357_v17 = vadd.f32 %v4757_v51, %v193_v8 }
 0x374   :  { %v3920_v35 = vsel %vm3610_vm0, %v3770_v16, 0.0  ;;  %v4242_v40 = vxor.u32 2147483648, %v3172_v25  ;;  %v2723_v26 = vxor.u32 %v2573_v36, %v2423_v44  ;;  %v656_v59 = vmul.f32 %v506_v31, %v6685_v23 }
 0x375   :  { %4070 = vst [vmem:[#allocation9 + $0x480] sm:$0xff] %v3920_v35  ;;  %v1703_v39 = vmul.f32 %v1553_v22, %v6640_v24  ;;  %v1404_v10 = vadd.f32 1.0, %v4544_v60  ;;  %vm6694_vm1 = vcmp.ge.s32.totalorder %v4241_v49, 2576980378  ;;  %v1975_v43 = vadd.s32 %v4762_v54, %v6637_v33 }
 0x376   :  { %v2873_v0 = vmul.u32 2221713035, %v2723_v26  ;;  %v806_v30 = vmul.f32 0.044715, %v656_v59  ;;  %v2274_v27 = vxor.u32 %v2124_v7, %v1974_v37  ;;  %v507_v4 = vmul.f32 %v357_v17, %v357_v17 }
 0x377   :  { %v3771_v19 = vmul.f32 1.1111112, %v1703_v39  ;;  %v1554_v14 = vmul.f32 0.5, %v1404_v10  ;;  %vm6700_vm2 = vcmp.ge.s32.totalorder %v4242_v40, 2576980378  ;;  %v2125_v48 = vshrl.u32 %v1975_v43, 16 }
 0x378   :  { %v4546_v1 = vpop.eup %4545  ;;  %v3023_v56 = vshrl.u32 %v2873_v0, 16  ;;  %v956_v51 = vadd.f32 %v806_v30, %v6685_v23  ;;  %v2424_v54 = vmul.u32 2146121005, %v2274_v27  ;;  %v657_v53 = vmul.f32 %v507_v4, %v357_v17 }
 0x379   :  { %v3921_v9 = vsel %vm6694_vm1, %v3771_v19, 0.0  ;;  %v1704_v18 = vmul.f32 %v1554_v14, %v6655_v28  ;;  %v1405_v45 = vadd.f32 1.0, %v4546_v1  ;;  %v2275_v52 = vxor.u32 %v2125_v48, %v1975_v43 }
 0x37a   :  { %4071 = vst [vmem:[#allocation9 + $0x488] sm:$0xff] %v3921_v9  ;;  %v3173_v33 = vxor.u32 %v3023_v56, %v2873_v0  ;;  %v1106_v58 = vmul.f32 0.7978846, %v956_v51  ;;  %v2574_v63 = vshrl.u32 %v2424_v54, 15  ;;  %v807_v34 = vmul.f32 0.044715, %v657_v53 }
 0x37b   :  { %v3772_v62 = vmul.f32 1.1111112, %v1704_v18  ;;  %v1555_v2 = vmul.f32 0.5, %v1405_v45  ;;  %v2425_v42 = vmul.u32 2146121005, %v2275_v52 }
 0x37c   :  { %v4243_v29 = vxor.u32 2147483648, %v3173_v33  ;;  %4547 = vtanh.f32 %v1106_v58  ;;  %v2724_v28 = vxor.u32 %v2574_v63, %v2424_v54  ;;  %v957_v3 = vadd.f32 %v807_v34, %v357_v17 }
 0x37d   :  { %v3922_v38 = vsel %vm6700_vm2, %v3772_v62, 0.0  ;;  %v1705_v47 = vmul.f32 %v1555_v2, %v6666_v13  ;;  %v2575_v41 = vshrl.u32 %v2425_v42, 15 }
 0x37e   :  { %4072 = vst [vmem:[#allocation9 + $0x490] sm:$0xff] %v3922_v38  ;;  %vm3619_vm3 = vcmp.ge.s32.totalorder %v4243_v29, 2576980378  ;;  %v2874_v21 = vmul.u32 2221713035, %v2724_v28 }
 0x37f   :  { %v3773_v32 = vmul.f32 1.1111112, %v1705_v47  ;;  %v1107_v57 = vmul.f32 0.7978846, %v957_v3  ;;  %v2725_v55 = vxor.u32 %v2575_v41, %v2425_v42 }
 0x380   :  { %v3024_v61 = vshrl.u32 %v2874_v21, 16 }
 0x381   :  { %v3923_v11 = vsel %vm3619_vm3, %v3773_v32, 0.0  ;;  %4549 = vtanh.f32 %v1107_v57  ;;  %v2875_v46 = vmul.u32 2221713035, %v2725_v55 }
 0x382   :  { %v4548_v50 = vpop.eup %4547  ;;  %4073 = vst [vmem:[#allocation9 + $0x498] sm:$0xff] %v3923_v11  ;;  %v3174_v12 = vxor.u32 %v3024_v61, %v2874_v21 }
 0x383   :  { %v1406_v5 = vadd.f32 1.0, %v4548_v50  ;;  %v3025_v44 = vshrl.u32 %v2875_v46, 16 }
 0x384   :  { %v4244_v13 = vxor.u32 2147483648, %v3174_v12 }
 0x385   :  { %v1556_v6 = vmul.f32 0.5, %v1406_v5  ;;  %v3175_v16 = vxor.u32 %v3025_v44, %v2875_v46 }
 0x386   :  { %vm3622_vm4 = vcmp.ge.s32.totalorder %v4244_v13, 2576980378 }
 0x387   :  { %v1706_v15 = vmul.f32 %v1556_v6, %v6685_v23  ;;  %v4550_v49 = vpop.eup %4549  ;;  %v4245_v31 = vxor.u32 2147483648, %v3175_v16 }
 0x388   :  { %v1407_v36 = vadd.f32 1.0, %v4550_v49 }
 0x389   :  { %v3774_v25 = vmul.f32 1.1111112, %v1706_v15  ;;  %vm3625_vm5 = vcmp.ge.s32.totalorder %v4245_v31, 2576980378 }
 0x38a   :  { %v1557_v22 = vmul.f32 0.5, %v1407_v36 }
 0x38b   :  { %v3924_v8 = vsel %vm3622_vm4, %v3774_v25, 0.0 }
 0x38c   :  { %4074 = vst [vmem:[#allocation9 + $0x4a0] sm:$0xff] %v3924_v8  ;;  %v1707_v37 = vmul.f32 %v1557_v22, %v357_v17 }
 0x38e   :  { %v3775_v60 = vmul.f32 1.1111112, %v1707_v37 }
 0x390   :  { %v3925_v23 = vsel %vm3625_vm5, %v3775_v60, 0.0 }
 0x391   :  { %4075 = vst [vmem:[#allocation9 + $0x4a8] sm:$0xff] %v3925_v23 }
 0x392   :  { %4088 = dma.vmem_to_hbm [thread:$0]  %s4081_s24, 19200, %s4083_s27, [#allocation6], %s4630_s20, %s4630_s20, %s4631_s21  }
 0x393   :  { %4627 = dma.done.wait [#allocation6], 19200  }
 0x394   :  { %4628 = vsyncadd [#allocation6], 4294948096 }
 0x395   :  { %4093 = vsyncpa [#allocation5], 1 }
 0x396   :  { %4094 = vsyncpa [#allocation8], 1 }
 0x397   :  { %4095 = vsyncpa [#allocation6], 1 }

</bundles_post_ra>
